<compile_context>
chip_gen: v7x
topology: tpu7x:2x2x1
jax: 0.10.0
libtpu: 0.0.40
codegen_flags: <defaults>
</compile_context>

<pallas_src>
import functools

import jax
import jax.numpy as jnp
from jax.experimental import pallas as pl
from jax.experimental.pallas import tpu as pltpu


def _round_up(x, m):
    return (x + m - 1) // m * m


def _cdiv(a, b):
    return (a + b - 1) // b


@functools.lru_cache(maxsize=1)
def _vmem_cap_bytes():
    # 3/4 of physical VMEM: ~48 MiB on v7x (64 MiB), ~96 MiB on v5e/v6e (128 MiB).
    try:
        phys = pltpu.get_tpu_info().vmem_capacity_bytes
    except Exception:
        phys = 64 * 1024 * 1024          # conservative (v7x) fallback
    return int(phys) * 3 // 4


def _vmem_limit_bytes(*buffer_bytes):
    # BlockSpec double-buffers every operand (2x) + 25% slack for compiler temps.
    est = int(2.5 * sum(buffer_bytes))
    return min(_vmem_cap_bytes(), max(32 * 1024 * 1024, est))


def _pick_tile_m(M, tile_m, min_steps=2):
    """Split M into >=min_steps roughly-equal, 8-aligned tiles (minimal padding)."""
    steps = max(1, _cdiv(M, tile_m))
    if M > 8:
        steps = max(steps, min_steps)      # keep both v7x TensorCores busy
    tm = _round_up(_cdiv(M, steps), 8)
    steps = _cdiv(M, tm)
    return tm, tm * steps


# ----------------------------------------------------------------------------
# Pallas kernel 1: fused  out = relu(x @ w + b), tiled over M (conv1 / conv2)
# ----------------------------------------------------------------------------
def _matmul_bias_relu_kernel(x_ref, w_ref, b_ref, o_ref):
    acc = jnp.dot(x_ref[...], w_ref[...], preferred_element_type=jnp.float32)
    acc = jnp.maximum(acc + b_ref[...], 0.0)
    o_ref[...] = acc.astype(o_ref.dtype)


def matmul_bias_relu(x, w, b, *, out_dtype=jnp.bfloat16, tile_m=2048):
    """x: (M, K), w: (K, N), b: (N,) -> relu(x@w+b) as (M, N) out_dtype."""
    M, K = x.shape
    Kw, N = w.shape
    assert K == Kw, (K, Kw)
    x = x.astype(jnp.bfloat16)

    tm, Mp = _pick_tile_m(M, tile_m)
    if Mp != M:
        x = jnp.pad(x, ((0, Mp - M), (0, 0)))

    out_bytes = jnp.dtype(out_dtype).itemsize
    vmem = _vmem_limit_bytes(tm * K * 2, K * N * 2, 8 * 128 * 4, tm * N * out_bytes)

    out = pl.pallas_call(
        _matmul_bias_relu_kernel,
        out_shape=jax.ShapeDtypeStruct((Mp, N), out_dtype),
        grid=(Mp // tm,),
        in_specs=[
            pl.BlockSpec((tm, K), lambda i: (i, 0)),
            pl.BlockSpec((K, N), lambda i: (0, 0)),
            pl.BlockSpec((1, N), lambda i: (0, 0)),
        ],
        out_specs=pl.BlockSpec((tm, N), lambda i: (i, 0)),
        compiler_params=pltpu.CompilerParams(
            dimension_semantics=("parallel",),
            vmem_limit_bytes=vmem,
        ),
    )(x, w.astype(jnp.bfloat16), b.reshape(1, N).astype(jnp.float32))
    return out if Mp == M else out[:M]


# ----------------------------------------------------------------------------
# im2col glue (plain JAX, NHWC).  Feature order = (KH, KW, Cin), matching the
# one-time conv-weight permutation in prepare_params.
# ----------------------------------------------------------------------------
def im2col_nhwc(x, K, S):
    B, H, W, C = x.shape
    OH = (H - K) // S + 1
    OW = (W - K) // S + 1
    cols = []
    for kh in range(K):
        for kw in range(K):
            cols.append(x[:, kh:kh + S * OH:S, kw:kw + S * OW:S, :])  # (B,OH,OW,C)
    patches = jnp.stack(cols, axis=3)                  # (B, OH, OW, K*K, C)
    return patches.reshape(B * OH * OW, K * K * C), (B, OH, OW)


def conv2d_relu(x_nhwc, w_mat, b, K, S):
    patches, (B, OH, OW) = im2col_nhwc(x_nhwc, K, S)
    out = matmul_bias_relu(patches, w_mat, b, out_dtype=jnp.bfloat16)
    return out.reshape(B, OH, OW, -1)                  # NHWC


# ----------------------------------------------------------------------------
# Pallas kernel 2: fused conv3 + flatten + l1(+relu) + l2
#   grid = (batch blocks [parallel], position blocks [arbitrary, streams l1_w])
#   h_ref : (bb, 512) f32 accumulator scratch (the 3136-wide activation never
#           leaves VMEM; the conv3 output never touches HBM).
# ----------------------------------------------------------------------------
_P3 = 49          # 7*7 conv3 output positions
_P3_PAD = 56      # padded so the position axis splits into 8-row blocks
_PBLK = 8         # positions (and 8*64 l1 rows) handled per reduction step


def _conv3_head_kernel(p3_ref, w3_ref, b3_ref, w1_ref, b1_ref, w2_ref, b2_ref,
                       o_ref, h_ref):
    j = pl.program_id(1)

    @pl.when(j == 0)
    def _init():
        h_ref[...] = jnp.zeros_like(h_ref)

    w3 = w3_ref[...]                                    # (576, 64) bf16
    b3 = b3_ref[...]                                    # (1, 64)   f32
    c3 = w3.shape[1]
    h = h_ref[...]
    for p in range(p3_ref.shape[1]):                    # unrolled, 8 positions
        xp = p3_ref[:, p, :]                            # (bb, 576) conv3 patch
        c = jnp.dot(xp, w3, preferred_element_type=jnp.float32) + b3
        c = jnp.maximum(c, 0.0).astype(jnp.bfloat16)    # conv3 ReLU
        w1p = w1_ref[pl.ds(p * c3, c3), :]              # (64, 512) l1 slice
        h = h + jnp.dot(c, w1p, preferred_element_type=jnp.float32)
    h_ref[...] = h

    @pl.when(j == pl.num_programs(1) - 1)
    def _finalize():
        hid = jnp.maximum(h_ref[...] + b1_ref[...], 0.0).astype(jnp.bfloat16)
        out = jnp.dot(hid, w2_ref[...], preferred_element_type=jnp.float32)
        o_ref[:, 0, :] = (out + b2_ref[...]).astype(o_ref.dtype)


def conv3_mlp_head(patches, w3, b3, w1p, b1, w2p, b2p, num_actions):
    """patches: (B, 49, 576) conv3 patches -> (B, num_actions) f32 Q-values."""
    B, P, KKC = patches.shape
    assert P == _P3 and KKC == w3.shape[0], (patches.shape, w3.shape)
    C3 = w3.shape[1]
    H1 = w1p.shape[1]
    NP = w2p.shape[1]

    batch_steps = 2 if B > 1 else 1          # >= 2 steps -> both v7x cores work
    bb = _cdiv(B, batch_steps)
    Bp = bb * batch_steps

    p3 = jnp.pad(patches.astype(jnp.bfloat16),
                 ((0, Bp - B), (0, _P3_PAD - _P3), (0, 0)))

    vmem = _vmem_limit_bytes(
        bb * _PBLK * KKC * 2,                # patch block
        KKC * C3 * 2, 8 * 128 * 4,           # w3, b3
        _PBLK * C3 * H1 * 2, 8 * H1 * 4,     # streamed w1 block, b1
        H1 * NP * 2, 8 * NP * 4,             # w2, b2
        bb * 8 * NP * 4,                     # output block
        bb * H1 * 4,                         # accumulator scratch
    )

    out = pl.pallas_call(
        _conv3_head_kernel,
        out_shape=jax.ShapeDtypeStruct((Bp, 1, NP), jnp.float32),
        grid=(batch_steps, _P3_PAD // _PBLK),
        in_specs=[
            pl.BlockSpec((bb, _PBLK, KKC), lambda i, j: (i, j, 0)),
            pl.BlockSpec((KKC, C3), lambda i, j: (0, 0)),
            pl.BlockSpec((1, C3), lambda i, j: (0, 0)),
            pl.BlockSpec((_PBLK * C3, H1), lambda i, j: (j, 0)),   # stream l1_w
            pl.BlockSpec((1, H1), lambda i, j: (0, 0)),
            pl.BlockSpec((H1, NP), lambda i, j: (0, 0)),
            pl.BlockSpec((1, NP), lambda i, j: (0, 0)),
        ],
        out_specs=pl.BlockSpec((bb, 1, NP), lambda i, j: (i, 0, 0)),
        scratch_shapes=[pltpu.VMEM((bb, H1), jnp.float32)],
        compiler_params=pltpu.CompilerParams(
            dimension_semantics=("parallel", "arbitrary"),
            vmem_limit_bytes=vmem,
        ),
    )(p3, w3.astype(jnp.bfloat16), b3.reshape(1, C3).astype(jnp.float32),
      w1p.astype(jnp.bfloat16), b1.reshape(1, H1).astype(jnp.float32),
      w2p.astype(jnp.bfloat16), b2p.reshape(1, NP).astype(jnp.float32))
    return out[:B, 0, :num_actions]


# ----------------------------------------------------------------------------
# Conv_Q forward (activations NHWC bf16 between layers; f32 Q-values out)
# ----------------------------------------------------------------------------
@functools.partial(jax.jit, static_argnames=("num_actions",))
def conv_q_forward(state, prep, *, num_actions):
    x = jnp.transpose(state, (0, 2, 3, 1)).astype(jnp.bfloat16)   # NCHW->NHWC once
    q = conv2d_relu(x, prep["c1_w"], prep["c1_b"], K=8, S=4)      # (B, 20, 20, 32)
    q = conv2d_relu(q, prep["c2_w"], prep["c2_b"], K=4, S=2)      # (B,  9,  9, 64)
    p3, _ = im2col_nhwc(q, K=3, S=1)                              # (B*49, 576)
    p3 = p3.reshape(q.shape[0], _P3, 576)
    return conv3_mlp_head(p3, prep["c3_w"], prep["c3_b"],
                          prep["l1_w"], prep["l1_b"],
                          prep["l2_w"], prep["l2_b"], num_actions)


# ----------------------------------------------------------------------------
# One-time weight prep: conv weights -> (KH*KW*Cin, Cout); l1 columns permuted
# from torch's NCHW flatten (c,h,w) to our NHWC (h,w,c) flatten and row-padded
# to 56 positions (zeros contribute nothing); l2 lane-padded to 128.
# ----------------------------------------------------------------------------
def prepare_params(params, num_actions):
    def conv_w(w):
        Cout, Cin, K, _ = w.shape
        return jnp.transpose(w, (2, 3, 1, 0)).reshape(K * K * Cin, Cout).astype(jnp.bfloat16)

    l1 = params["l1_w"].reshape(512, 64, 7, 7)
    l1 = jnp.transpose(l1, (2, 3, 1, 0)).reshape(3136, 512)       # rows = p*64 + c
    l1 = jnp.pad(l1, ((0, _P3_PAD * 64 - 3136), (0, 0))).astype(jnp.bfloat16)

    np_pad = _round_up(num_actions, 128)
    l2 = jnp.pad(params["l2_w"].T, ((0, 0), (0, np_pad - num_actions))).astype(jnp.bfloat16)
    l2b = jnp.pad(params["l2_b"], (0, np_pad - num_actions)).astype(jnp.float32)

    return {
        "c1_w": conv_w(params["c1_w"]), "c1_b": params["c1_b"].astype(jnp.float32),
        "c2_w": conv_w(params["c2_w"]), "c2_b": params["c2_b"].astype(jnp.float32),
        "c3_w": conv_w(params["c3_w"]), "c3_b": params["c3_b"].astype(jnp.float32),
        "l1_w": l1, "l1_b": params["l1_b"].astype(jnp.float32),
        "l2_w": l2, "l2_b": l2b,
    }


# ----------------------------------------------------------------------------
# Deterministic parameter init (PyTorch default U(-1/sqrt(fan_in), 1/sqrt(fan_in)))
# and a pure-JAX f32 reference for a sanity check.
# ----------------------------------------------------------------------------
def init_params(key, frames, num_actions):
    ks = jax.random.split(key, 10)

    def u(k, shape, fan_in):
        bound = 1.0 / float(fan_in) ** 0.5
        return jax.random.uniform(k, shape, jnp.float32, -bound, bound)

    return {
        "c1_w": u(ks[0], (32, frames, 8, 8), frames * 8 * 8),
        "c1_b": u(ks[1], (32,), frames * 8 * 8),
        "c2_w": u(ks[2], (64, 32, 4, 4), 32 * 4 * 4),
        "c2_b": u(ks[3], (64,), 32 * 4 * 4),
        "c3_w": u(ks[4], (64, 64, 3, 3), 64 * 3 * 3),
        "c3_b": u(ks[5], (64,), 64 * 3 * 3),
        "l1_w": u(ks[6], (512, 3136), 3136),
        "l1_b": u(ks[7], (512,), 3136),
        "l2_w": u(ks[8], (num_actions, 512), 512),
        "l2_b": u(ks[9], (num_actions,), 512),
    }


def conv_q_reference(state, params):
    def conv(x, w, b, s):
        y = jax.lax.conv_general_dilated(x, w, (s, s), "VALID",
                                         dimension_numbers=("NCHW", "OIHW", "NCHW"))
        return jax.nn.relu(y + b[None, :, None, None])

    q = conv(state, params["c1_w"], params["c1_b"], 4)
    q = conv(q, params["c2_w"], params["c2_b"], 2)
    q = conv(q, params["c3_w"], params["c3_b"], 1)
    q = q.reshape(q.shape[0], -1)                                  # NCHW flatten
    q = jax.nn.relu(q @ params["l1_w"].T + params["l1_b"])
    return q @ params["l2_w"].T + params["l2_b"]


if __name__ == "__main__":
    frames = 4
    num_actions = 6
    batch = 2

    key = jax.random.PRNGKey(0)
    k_param, k_x = jax.random.split(key)
    params = init_params(k_param, frames, num_actions)
    prep = prepare_params(params, num_actions)

    # 84x84 spatial is forced by the module's hard-coded 3136 = 64*7*7.
    x = jax.random.normal(k_x, (batch, frames, 84, 84), jnp.float32)

    q = conv_q_forward(x, prep, num_actions=num_actions)
    jax.block_until_ready(q)
    assert q.shape == (batch, num_actions), q.shape

    # Loose sanity check vs. the f32 XLA reference (bf16 MXU path, f32 accum).
    q_ref = conv_q_reference(x, params)
    err = float(jnp.max(jnp.abs(q.astype(jnp.float32) - q_ref)))
    scale = 1.0 + float(jnp.max(jnp.abs(q_ref)))
    assert err <= 5e-2 * scale, (err, scale)

    print("KERNEL_OK")
</pallas_src>

<mosaic_0001>
module attributes {stable_mosaic.version = 11 : i64} {
  func.func @_matmul_bias_relu_kernel(%arg0: i32, %arg1: memref<400x256xbf16, #tpu.memory_space<vmem>>, %arg2: memref<256x32xbf16, #tpu.memory_space<vmem>>, %arg3: memref<1x32xf32, #tpu.memory_space<vmem>>, %arg4: memref<400x32xbf16, #tpu.memory_space<vmem>>) attributes {dimension_semantics = [#tpu.dimension_semantics<parallel>], iteration_bounds = array<i64: 2>, scalar_prefetch = 0 : i64, scratch_operands = 0 : i64, tpu.core_type = #tpu.core_type<tc>, window_params = [{transform_indices = @transform_0, window_bounds = array<i64: 400, 256>}, {pipeline_mode = #tpu.pipeline_mode<synchronous>, transform_indices = @transform_1, window_bounds = array<i64: 256, 32>}, {pipeline_mode = #tpu.pipeline_mode<synchronous>, transform_indices = @transform_2, window_bounds = array<i64: 1, 32>}, {transform_indices = @transform_3, window_bounds = array<i64: 400, 32>}]} {
    %c0 = arith.constant 0 : index
    %c0_0 = arith.constant 0 : index
    %0 = vector.load %arg1[%c0, %c0_0] : memref<400x256xbf16, #tpu.memory_space<vmem>>, vector<400x256xbf16>
    %c0_1 = arith.constant 0 : index
    %c0_2 = arith.constant 0 : index
    %1 = vector.load %arg2[%c0_1, %c0_2] : memref<256x32xbf16, #tpu.memory_space<vmem>>, vector<256x32xbf16>
    %cst = arith.constant dense<0.000000e+00> : vector<400x32xf32>
    %2 = tpu.matmul %0, %1, %cst {dimension_numbers = #tpu.dot_dimension_numbers<[1], [0], [0], [1], [0, 0, 1, 1], [], []>} : vector<400x256xbf16>, vector<256x32xbf16>, vector<400x32xf32> -> vector<400x32xf32>
    %c0_3 = arith.constant 0 : index
    %c0_4 = arith.constant 0 : index
    %3 = vector.load %arg3[%c0_3, %c0_4] : memref<1x32xf32, #tpu.memory_space<vmem>>, vector<1x32xf32>
    %4 = vector.broadcast %3 : vector<1x32xf32> to vector<400x32xf32>
    %5 = arith.addf %2, %4 : vector<400x32xf32>
    %cst_5 = arith.constant 0.000000e+00 : f32
    %6 = vector.broadcast %cst_5 : f32 to vector<400x32xf32>
    %7 = arith.maximumf %5, %6 : vector<400x32xf32>
    %8 = arith.truncf %7 : vector<400x32xf32> to vector<400x32xbf16>
    %c0_6 = arith.constant 0 : index
    %c0_7 = arith.constant 0 : index
    %9 = vector.load %arg4[%c0_6, %c0_7] : memref<400x32xbf16, #tpu.memory_space<vmem>>, vector<400x32xbf16>
    tpu.vector_store %arg4[%c0_6, %c0_7], %8 {strides = array<i32>} : memref<400x32xbf16, #tpu.memory_space<vmem>>, vector<400x32xbf16>,
    return
  }
  func.func @transform_0(%arg0: i32) -> (i32, i32) {
    %c0_i32 = arith.constant 0 : i32
    %c0_i32_0 = arith.constant 0 : i32
    return %arg0, %c0_i32 : i32, i32
  }
  func.func @transform_1(%arg0: i32) -> (i32, i32) {
    %c0_i32 = arith.constant 0 : i32
    %c0_i32_0 = arith.constant 0 : i32
    %c0_i32_1 = arith.constant 0 : i32
    return %c0_i32, %c0_i32_0 : i32, i32
  }
  func.func @transform_2(%arg0: i32) -> (i32, i32) {
    %c0_i32 = arith.constant 0 : i32
    %c0_i32_0 = arith.constant 0 : i32
    %c0_i32_1 = arith.constant 0 : i32
    return %c0_i32, %c0_i32_0 : i32, i32
  }
  func.func @transform_3(%arg0: i32) -> (i32, i32) {
    %c0_i32 = arith.constant 0 : i32
    %c0_i32_0 = arith.constant 0 : i32
    return %arg0, %c0_i32 : i32, i32
  }
}

module attributes {stable_mosaic.version = 11 : i64} {
  func.func @_matmul_bias_relu_kernel(%arg0: i32, %arg1: memref<88x512xbf16, #tpu.memory_space<vmem>>, %arg2: memref<512x64xbf16, #tpu.memory_space<vmem>>, %arg3: memref<1x64xf32, #tpu.memory_space<vmem>>, %arg4: memref<88x64xbf16, #tpu.memory_space<vmem>>) attributes {dimension_semantics = [#tpu.dimension_semantics<parallel>], iteration_bounds = array<i64: 2>, scalar_prefetch = 0 : i64, scratch_operands = 0 : i64, tpu.core_type = #tpu.core_type<tc>, window_params = [{transform_indices = @transform_0, window_bounds = array<i64: 88, 512>}, {pipeline_mode = #tpu.pipeline_mode<synchronous>, transform_indices = @transform_1, window_bounds = array<i64: 512, 64>}, {pipeline_mode = #tpu.pipeline_mode<synchronous>, transform_indices = @transform_2, window_bounds = array<i64: 1, 64>}, {transform_indices = @transform_3, window_bounds = array<i64: 88, 64>}]} {
    %c0 = arith.constant 0 : index
    %c0_0 = arith.constant 0 : index
    %0 = vector.load %arg1[%c0, %c0_0] : memref<88x512xbf16, #tpu.memory_space<vmem>>, vector<88x512xbf16>
    %c0_1 = arith.constant 0 : index
    %c0_2 = arith.constant 0 : index
    %1 = vector.load %arg2[%c0_1, %c0_2] : memref<512x64xbf16, #tpu.memory_space<vmem>>, vector<512x64xbf16>
    %cst = arith.constant dense<0.000000e+00> : vector<88x64xf32>
    %2 = tpu.matmul %0, %1, %cst {dimension_numbers = #tpu.dot_dimension_numbers<[1], [0], [0], [1], [0, 0, 1, 1], [], []>} : vector<88x512xbf16>, vector<512x64xbf16>, vector<88x64xf32> -> vector<88x64xf32>
    %c0_3 = arith.constant 0 : index
    %c0_4 = arith.constant 0 : index
    %3 = vector.load %arg3[%c0_3, %c0_4] : memref<1x64xf32, #tpu.memory_space<vmem>>, vector<1x64xf32>
    %4 = vector.broadcast %3 : vector<1x64xf32> to vector<88x64xf32>
    %5 = arith.addf %2, %4 : vector<88x64xf32>
    %cst_5 = arith.constant 0.000000e+00 : f32
    %6 = vector.broadcast %cst_5 : f32 to vector<88x64xf32>
    %7 = arith.maximumf %5, %6 : vector<88x64xf32>
    %8 = arith.truncf %7 : vector<88x64xf32> to vector<88x64xbf16>
    %c0_6 = arith.constant 0 : index
    %c0_7 = arith.constant 0 : index
    %9 = vector.load %arg4[%c0_6, %c0_7] : memref<88x64xbf16, #tpu.memory_space<vmem>>, vector<88x64xbf16>
    tpu.vector_store %arg4[%c0_6, %c0_7], %8 {strides = array<i32>} : memref<88x64xbf16, #tpu.memory_space<vmem>>, vector<88x64xbf16>,
    return
  }
  func.func @transform_0(%arg0: i32) -> (i32, i32) {
    %c0_i32 = arith.constant 0 : i32
    %c0_i32_0 = arith.constant 0 : i32
    return %arg0, %c0_i32 : i32, i32
  }
  func.func @transform_1(%arg0: i32) -> (i32, i32) {
    %c0_i32 = arith.constant 0 : i32
    %c0_i32_0 = arith.constant 0 : i32
    %c0_i32_1 = arith.constant 0 : i32
    return %c0_i32, %c0_i32_0 : i32, i32
  }
  func.func @transform_2(%arg0: i32) -> (i32, i32) {
    %c0_i32 = arith.constant 0 : i32
    %c0_i32_0 = arith.constant 0 : i32
    %c0_i32_1 = arith.constant 0 : i32
    return %c0_i32, %c0_i32_0 : i32, i32
  }
  func.func @transform_3(%arg0: i32) -> (i32, i32) {
    %c0_i32 = arith.constant 0 : i32
    %c0_i32_0 = arith.constant 0 : i32
    return %arg0, %c0_i32 : i32, i32
  }
}

module attributes {stable_mosaic.version = 11 : i64} {
  func.func @_conv3_head_kernel(%arg0: i32, %arg1: i32, %arg2: memref<1x8x576xbf16, #tpu.memory_space<vmem>>, %arg3: memref<576x64xbf16, #tpu.memory_space<vmem>>, %arg4: memref<1x64xf32, #tpu.memory_space<vmem>>, %arg5: memref<512x512xbf16, #tpu.memory_space<vmem>>, %arg6: memref<1x512xf32, #tpu.memory_space<vmem>>, %arg7: memref<512x128xbf16, #tpu.memory_space<vmem>>, %arg8: memref<1x128xf32, #tpu.memory_space<vmem>>, %arg9: memref<1x1x128xf32, #tpu.memory_space<vmem>>, %arg10: memref<1x512xf32, #tpu.memory_space<vmem>>) attributes {dimension_semantics = [#tpu.dimension_semantics<parallel>, #tpu.dimension_semantics<arbitrary>], iteration_bounds = array<i64: 2, 7>, scalar_prefetch = 0 : i64, scratch_operands = 1 : i64, tpu.core_type = #tpu.core_type<tc>, window_params = [{transform_indices = @transform_0, window_bounds = array<i64: 1, 8, 576>}, {pipeline_mode = #tpu.pipeline_mode<synchronous>, transform_indices = @transform_1, window_bounds = array<i64: 576, 64>}, {pipeline_mode = #tpu.pipeline_mode<synchronous>, transform_indices = @transform_2, window_bounds = array<i64: 1, 64>}, {transform_indices = @transform_3, window_bounds = array<i64: 512, 512>}, {pipeline_mode = #tpu.pipeline_mode<synchronous>, transform_indices = @transform_4, window_bounds = array<i64: 1, 512>}, {pipeline_mode = #tpu.pipeline_mode<synchronous>, transform_indices = @transform_5, window_bounds = array<i64: 512, 128>}, {pipeline_mode = #tpu.pipeline_mode<synchronous>, transform_indices = @transform_6, window_bounds = array<i64: 1, 128>}, {transform_indices = @transform_7, window_bounds = array<i64: 1, 1, 128>}]} {
    %c0_i32 = arith.constant 0 : i32
    %0 = arith.cmpi eq, %arg1, %c0_i32 : i32
    %1 = arith.extui %0 : i1 to i32
    %c0_i32_0 = arith.constant 0 : i32
    %2 = arith.cmpi ne, %1, %c0_i32_0 : i32
    scf.if %2 {
      %cst_58 = arith.constant 0.000000e+00 : f32
      %90 = vector.broadcast %cst_58 : f32 to vector<1x512xf32>
      %c0_59 = arith.constant 0 : index
      %c0_60 = arith.constant 0 : index
      %91 = vector.load %arg10[%c0_59, %c0_60] : memref<1x512xf32, #tpu.memory_space<vmem>>, vector<1x512xf32>
      tpu.vector_store %arg10[%c0_59, %c0_60], %90 {strides = array<i32>} : memref<1x512xf32, #tpu.memory_space<vmem>>, vector<1x512xf32>,
    } else {
    }
    %c0 = arith.constant 0 : index
    %c0_1 = arith.constant 0 : index
    %3 = vector.load %arg3[%c0, %c0_1] : memref<576x64xbf16, #tpu.memory_space<vmem>>, vector<576x64xbf16>
    %c0_2 = arith.constant 0 : index
    %c0_3 = arith.constant 0 : index
    %4 = vector.load %arg4[%c0_2, %c0_3] : memref<1x64xf32, #tpu.memory_space<vmem>>, vector<1x64xf32>
    %c0_4 = arith.constant 0 : index
    %c0_5 = arith.constant 0 : index
    %5 = vector.load %arg10[%c0_4, %c0_5] : memref<1x512xf32, #tpu.memory_space<vmem>>, vector<1x512xf32>
    %c0_6 = arith.constant 0 : index
    %c0_7 = arith.constant 0 : index
    %c0_8 = arith.constant 0 : index
    %6 = vector.load %arg2[%c0_6, %c0_7, %c0_8] : memref<1x8x576xbf16, #tpu.memory_space<vmem>>, vector<1x1x576xbf16>
    %7 = vector.shape_cast %6 : vector<1x1x576xbf16> to vector<1x576xbf16>
    %cst = arith.constant dense<0.000000e+00> : vector<1x64xf32>
    %8 = tpu.matmul %7, %3, %cst {dimension_numbers = #tpu.dot_dimension_numbers<[1], [0], [0], [1], [0, 0, 1, 1], [], []>} : vector<1x576xbf16>, vector<576x64xbf16>, vector<1x64xf32> -> vector<1x64xf32>
    %9 = arith.addf %8, %4 : vector<1x64xf32>
    %cst_9 = arith.constant 0.000000e+00 : f32
    %10 = vector.broadcast %cst_9 : f32 to vector<1x64xf32>
    %11 = arith.maximumf %9, %10 : vector<1x64xf32>
    %12 = arith.truncf %11 : vector<1x64xf32> to vector<1x64xbf16>
    %c0_10 = arith.constant 0 : index
    %c0_11 = arith.constant 0 : index
    %13 = vector.load %arg5[%c0_10, %c0_11] : memref<512x512xbf16, #tpu.memory_space<vmem>>, vector<64x512xbf16>
    %cst_12 = arith.constant dense<0.000000e+00> : vector<1x512xf32>
    %14 = tpu.matmul %12, %13, %cst_12 {dimension_numbers = #tpu.dot_dimension_numbers<[1], [0], [0], [1], [0, 0, 1, 1], [], []>} : vector<1x64xbf16>, vector<64x512xbf16>, vector<1x512xf32> -> vector<1x512xf32>
    %15 = arith.addf %5, %14 : vector<1x512xf32>
    %c0_13 = arith.constant 0 : index
    %c1 = arith.constant 1 : index
    %c0_14 = arith.constant 0 : index
    %16 = vector.load %arg2[%c0_13, %c1, %c0_14] : memref<1x8x576xbf16, #tpu.memory_space<vmem>>, vector<1x1x576xbf16>
    %17 = vector.shape_cast %16 : vector<1x1x576xbf16> to vector<1x576xbf16>
    %cst_15 = arith.constant dense<0.000000e+00> : vector<1x64xf32>
    %18 = tpu.matmul %17, %3, %cst_15 {dimension_numbers = #tpu.dot_dimension_numbers<[1], [0], [0], [1], [0, 0, 1, 1], [], []>} : vector<1x576xbf16>, vector<576x64xbf16>, vector<1x64xf32> -> vector<1x64xf32>
    %19 = arith.addf %18, %4 : vector<1x64xf32>
    %cst_16 = arith.constant 0.000000e+00 : f32
    %20 = vector.broadcast %cst_16 : f32 to vector<1x64xf32>
    %21 = arith.maximumf %19, %20 : vector<1x64xf32>
    %22 = arith.truncf %21 : vector<1x64xf32> to vector<1x64xbf16>
    %c64 = arith.constant 64 : index
    %c0_17 = arith.constant 0 : index
    %23 = vector.load %arg5[%c64, %c0_17] : memref<512x512xbf16, #tpu.memory_space<vmem>>, vector<64x512xbf16>
    %cst_18 = arith.constant dense<0.000000e+00> : vector<1x512xf32>
    %24 = tpu.matmul %22, %23, %cst_18 {dimension_numbers = #tpu.dot_dimension_numbers<[1], [0], [0], [1], [0, 0, 1, 1], [], []>} : vector<1x64xbf16>, vector<64x512xbf16>, vector<1x512xf32> -> vector<1x512xf32>
    %25 = arith.addf %15, %24 : vector<1x512xf32>
    %c0_19 = arith.constant 0 : index
    %c2 = arith.constant 2 : index
    %c0_20 = arith.constant 0 : index
    %26 = vector.load %arg2[%c0_19, %c2, %c0_20] : memref<1x8x576xbf16, #tpu.memory_space<vmem>>, vector<1x1x576xbf16>
    %27 = vector.shape_cast %26 : vector<1x1x576xbf16> to vector<1x576xbf16>
    %cst_21 = arith.constant dense<0.000000e+00> : vector<1x64xf32>
    %28 = tpu.matmul %27, %3, %cst_21 {dimension_numbers = #tpu.dot_dimension_numbers<[1], [0], [0], [1], [0, 0, 1, 1], [], []>} : vector<1x576xbf16>, vector<576x64xbf16>, vector<1x64xf32> -> vector<1x64xf32>
    %29 = arith.addf %28, %4 : vector<1x64xf32>
    %cst_22 = arith.constant 0.000000e+00 : f32
    %30 = vector.broadcast %cst_22 : f32 to vector<1x64xf32>
    %31 = arith.maximumf %29, %30 : vector<1x64xf32>
    %32 = arith.truncf %31 : vector<1x64xf32> to vector<1x64xbf16>
    %c128 = arith.constant 128 : index
    %c0_23 = arith.constant 0 : index
    %33 = vector.load %arg5[%c128, %c0_23] : memref<512x512xbf16, #tpu.memory_space<vmem>>, vector<64x512xbf16>
    %cst_24 = arith.constant dense<0.000000e+00> : vector<1x512xf32>
    %34 = tpu.matmul %32, %33, %cst_24 {dimension_numbers = #tpu.dot_dimension_numbers<[1], [0], [0], [1], [0, 0, 1, 1], [], []>} : vector<1x64xbf16>, vector<64x512xbf16>, vector<1x512xf32> -> vector<1x512xf32>
    %35 = arith.addf %25, %34 : vector<1x512xf32>
    %c0_25 = arith.constant 0 : index
    %c3 = arith.constant 3 : index
    %c0_26 = arith.constant 0 : index
    %36 = vector.load %arg2[%c0_25, %c3, %c0_26] : memref<1x8x576xbf16, #tpu.memory_space<vmem>>, vector<1x1x576xbf16>
    %37 = vector.shape_cast %36 : vector<1x1x576xbf16> to vector<1x576xbf16>
    %cst_27 = arith.constant dense<0.000000e+00> : vector<1x64xf32>
    %38 = tpu.matmul %37, %3, %cst_27 {dimension_numbers = #tpu.dot_dimension_numbers<[1], [0], [0], [1], [0, 0, 1, 1], [], []>} : vector<1x576xbf16>, vector<576x64xbf16>, vector<1x64xf32> -> vector<1x64xf32>
    %39 = arith.addf %38, %4 : vector<1x64xf32>
    %cst_28 = arith.constant 0.000000e+00 : f32
    %40 = vector.broadcast %cst_28 : f32 to vector<1x64xf32>
    %41 = arith.maximumf %39, %40 : vector<1x64xf32>
    %42 = arith.truncf %41 : vector<1x64xf32> to vector<1x64xbf16>
    %c192 = arith.constant 192 : index
    %c0_29 = arith.constant 0 : index
    %43 = vector.load %arg5[%c192, %c0_29] : memref<512x512xbf16, #tpu.memory_space<vmem>>, vector<64x512xbf16>
    %cst_30 = arith.constant dense<0.000000e+00> : vector<1x512xf32>
    %44 = tpu.matmul %42, %43, %cst_30 {dimension_numbers = #tpu.dot_dimension_numbers<[1], [0], [0], [1], [0, 0, 1, 1], [], []>} : vector<1x64xbf16>, vector<64x512xbf16>, vector<1x512xf32> -> vector<1x512xf32>
    %45 = arith.addf %35, %44 : vector<1x512xf32>
    %c0_31 = arith.constant 0 : index
    %c4 = arith.constant 4 : index
    %c0_32 = arith.constant 0 : index
    %46 = vector.load %arg2[%c0_31, %c4, %c0_32] : memref<1x8x576xbf16, #tpu.memory_space<vmem>>, vector<1x1x576xbf16>
    %47 = vector.shape_cast %46 : vector<1x1x576xbf16> to vector<1x576xbf16>
    %cst_33 = arith.constant dense<0.000000e+00> : vector<1x64xf32>
    %48 = tpu.matmul %47, %3, %cst_33 {dimension_numbers = #tpu.dot_dimension_numbers<[1], [0], [0], [1], [0, 0, 1, 1], [], []>} : vector<1x576xbf16>, vector<576x64xbf16>, vector<1x64xf32> -> vector<1x64xf32>
    %49 = arith.addf %48, %4 : vector<1x64xf32>
    %cst_34 = arith.constant 0.000000e+00 : f32
    %50 = vector.broadcast %cst_34 : f32 to vector<1x64xf32>
    %51 = arith.maximumf %49, %50 : vector<1x64xf32>
    %52 = arith.truncf %51 : vector<1x64xf32> to vector<1x64xbf16>
    %c256 = arith.constant 256 : index
    %c0_35 = arith.constant 0 : index
    %53 = vector.load %arg5[%c256, %c0_35] : memref<512x512xbf16, #tpu.memory_space<vmem>>, vector<64x512xbf16>
    %cst_36 = arith.constant dense<0.000000e+00> : vector<1x512xf32>
    %54 = tpu.matmul %52, %53, %cst_36 {dimension_numbers = #tpu.dot_dimension_numbers<[1], [0], [0], [1], [0, 0, 1, 1], [], []>} : vector<1x64xbf16>, vector<64x512xbf16>, vector<1x512xf32> -> vector<1x512xf32>
    %55 = arith.addf %45, %54 : vector<1x512xf32>
    %c0_37 = arith.constant 0 : index
    %c5 = arith.constant 5 : index
    %c0_38 = arith.constant 0 : index
    %56 = vector.load %arg2[%c0_37, %c5, %c0_38] : memref<1x8x576xbf16, #tpu.memory_space<vmem>>, vector<1x1x576xbf16>
    %57 = vector.shape_cast %56 : vector<1x1x576xbf16> to vector<1x576xbf16>
    %cst_39 = arith.constant dense<0.000000e+00> : vector<1x64xf32>
    %58 = tpu.matmul %57, %3, %cst_39 {dimension_numbers = #tpu.dot_dimension_numbers<[1], [0], [0], [1], [0, 0, 1, 1], [], []>} : vector<1x576xbf16>, vector<576x64xbf16>, vector<1x64xf32> -> vector<1x64xf32>
    %59 = arith.addf %58, %4 : vector<1x64xf32>
    %cst_40 = arith.constant 0.000000e+00 : f32
    %60 = vector.broadcast %cst_40 : f32 to vector<1x64xf32>
    %61 = arith.maximumf %59, %60 : vector<1x64xf32>
    %62 = arith.truncf %61 : vector<1x64xf32> to vector<1x64xbf16>
    %c320 = arith.constant 320 : index
    %c0_41 = arith.constant 0 : index
    %63 = vector.load %arg5[%c320, %c0_41] : memref<512x512xbf16, #tpu.memory_space<vmem>>, vector<64x512xbf16>
    %cst_42 = arith.constant dense<0.000000e+00> : vector<1x512xf32>
    %64 = tpu.matmul %62, %63, %cst_42 {dimension_numbers = #tpu.dot_dimension_numbers<[1], [0], [0], [1], [0, 0, 1, 1], [], []>} : vector<1x64xbf16>, vector<64x512xbf16>, vector<1x512xf32> -> vector<1x512xf32>
    %65 = arith.addf %55, %64 : vector<1x512xf32>
    %c0_43 = arith.constant 0 : index
    %c6 = arith.constant 6 : index
    %c0_44 = arith.constant 0 : index
    %66 = vector.load %arg2[%c0_43, %c6, %c0_44] : memref<1x8x576xbf16, #tpu.memory_space<vmem>>, vector<1x1x576xbf16>
    %67 = vector.shape_cast %66 : vector<1x1x576xbf16> to vector<1x576xbf16>
    %cst_45 = arith.constant dense<0.000000e+00> : vector<1x64xf32>
    %68 = tpu.matmul %67, %3, %cst_45 {dimension_numbers = #tpu.dot_dimension_numbers<[1], [0], [0], [1], [0, 0, 1, 1], [], []>} : vector<1x576xbf16>, vector<576x64xbf16>, vector<1x64xf32> -> vector<1x64xf32>
    %69 = arith.addf %68, %4 : vector<1x64xf32>
    %cst_46 = arith.constant 0.000000e+00 : f32
    %70 = vector.broadcast %cst_46 : f32 to vector<1x64xf32>
    %71 = arith.maximumf %69, %70 : vector<1x64xf32>
    %72 = arith.truncf %71 : vector<1x64xf32> to vector<1x64xbf16>
    %c384 = arith.constant 384 : index
    %c0_47 = arith.constant 0 : index
    %73 = vector.load %arg5[%c384, %c0_47] : memref<512x512xbf16, #tpu.memory_space<vmem>>, vector<64x512xbf16>
    %cst_48 = arith.constant dense<0.000000e+00> : vector<1x512xf32>
    %74 = tpu.matmul %72, %73, %cst_48 {dimension_numbers = #tpu.dot_dimension_numbers<[1], [0], [0], [1], [0, 0, 1, 1], [], []>} : vector<1x64xbf16>, vector<64x512xbf16>, vector<1x512xf32> -> vector<1x512xf32>
    %75 = arith.addf %65, %74 : vector<1x512xf32>
    %c0_49 = arith.constant 0 : index
    %c7 = arith.constant 7 : index
    %c0_50 = arith.constant 0 : index
    %76 = vector.load %arg2[%c0_49, %c7, %c0_50] : memref<1x8x576xbf16, #tpu.memory_space<vmem>>, vector<1x1x576xbf16>
    %77 = vector.shape_cast %76 : vector<1x1x576xbf16> to vector<1x576xbf16>
    %cst_51 = arith.constant dense<0.000000e+00> : vector<1x64xf32>
    %78 = tpu.matmul %77, %3, %cst_51 {dimension_numbers = #tpu.dot_dimension_numbers<[1], [0], [0], [1], [0, 0, 1, 1], [], []>} : vector<1x576xbf16>, vector<576x64xbf16>, vector<1x64xf32> -> vector<1x64xf32>
    %79 = arith.addf %78, %4 : vector<1x64xf32>
    %cst_52 = arith.constant 0.000000e+00 : f32
    %80 = vector.broadcast %cst_52 : f32 to vector<1x64xf32>
    %81 = arith.maximumf %79, %80 : vector<1x64xf32>
    %82 = arith.truncf %81 : vector<1x64xf32> to vector<1x64xbf16>
    %c448 = arith.constant 448 : index
    %c0_53 = arith.constant 0 : index
    %83 = vector.load %arg5[%c448, %c0_53] : memref<512x512xbf16, #tpu.memory_space<vmem>>, vector<64x512xbf16>
    %cst_54 = arith.constant dense<0.000000e+00> : vector<1x512xf32>
    %84 = tpu.matmul %82, %83, %cst_54 {dimension_numbers = #tpu.dot_dimension_numbers<[1], [0], [0], [1], [0, 0, 1, 1], [], []>} : vector<1x64xbf16>, vector<64x512xbf16>, vector<1x512xf32> -> vector<1x512xf32>
    %85 = arith.addf %75, %84 : vector<1x512xf32>
    %c0_55 = arith.constant 0 : index
    %c0_56 = arith.constant 0 : index
    %86 = vector.load %arg10[%c0_55, %c0_56] : memref<1x512xf32, #tpu.memory_space<vmem>>, vector<1x512xf32>
    tpu.vector_store %arg10[%c0_55, %c0_56], %85 {strides = array<i32>} : memref<1x512xf32, #tpu.memory_space<vmem>>, vector<1x512xf32>,
    %c6_i32 = arith.constant 6 : i32
    %87 = arith.cmpi eq, %arg1, %c6_i32 : i32
    %88 = arith.extui %87 : i1 to i32
    %c0_i32_57 = arith.constant 0 : i32
    %89 = arith.cmpi ne, %88, %c0_i32_57 : i32
    scf.if %89 {
      %c0_58 = arith.constant 0 : index
      %c0_59 = arith.constant 0 : index
      %90 = vector.load %arg10[%c0_58, %c0_59] : memref<1x512xf32, #tpu.memory_space<vmem>>, vector<1x512xf32>
      %c0_60 = arith.constant 0 : index
      %c0_61 = arith.constant 0 : index
      %91 = vector.load %arg6[%c0_60, %c0_61] : memref<1x512xf32, #tpu.memory_space<vmem>>, vector<1x512xf32>
      %92 = arith.addf %90, %91 : vector<1x512xf32>
      %cst_62 = arith.constant 0.000000e+00 : f32
      %93 = vector.broadcast %cst_62 : f32 to vector<1x512xf32>
      %94 = arith.maximumf %92, %93 : vector<1x512xf32>
      %95 = arith.truncf %94 : vector<1x512xf32> to vector<1x512xbf16>
      %c0_63 = arith.constant 0 : index
      %c0_64 = arith.constant 0 : index
      %96 = vector.load %arg7[%c0_63, %c0_64] : memref<512x128xbf16, #tpu.memory_space<vmem>>, vector<512x128xbf16>
      %cst_65 = arith.constant dense<0.000000e+00> : vector<1x128xf32>
      %97 = tpu.matmul %95, %96, %cst_65 {dimension_numbers = #tpu.dot_dimension_numbers<[1], [0], [0], [1], [0, 0, 1, 1], [], []>} : vector<1x512xbf16>, vector<512x128xbf16>, vector<1x128xf32> -> vector<1x128xf32>
      %c0_66 = arith.constant 0 : index
      %c0_67 = arith.constant 0 : index
      %98 = vector.load %arg8[%c0_66, %c0_67] : memref<1x128xf32, #tpu.memory_space<vmem>>, vector<1x128xf32>
      %99 = arith.addf %97, %98 : vector<1x128xf32>
      %c0_68 = arith.constant 0 : index
      %c0_69 = arith.constant 0 : index
      %c0_70 = arith.constant 0 : index
      %100 = vector.load %arg9[%c0_68, %c0_69, %c0_70] : memref<1x1x128xf32, #tpu.memory_space<vmem>>, vector<1x1x128xf32>
      %101 = vector.shape_cast %100 : vector<1x1x128xf32> to vector<1x128xf32>
      %102 = vector.shape_cast %99 : vector<1x128xf32> to vector<1x1x128xf32>
      tpu.vector_store %arg9[%c0_68, %c0_69, %c0_70], %102 {strides = array<i32>} : memref<1x1x128xf32, #tpu.memory_space<vmem>>, vector<1x1x128xf32>,
    } else {
    }
    return
  }
  func.func @transform_0(%arg0: i32, %arg1: i32) -> (i32, i32, i32) {
    %c0_i32 = arith.constant 0 : i32
    %c0_i32_0 = arith.constant 0 : i32
    return %arg0, %arg1, %c0_i32 : i32, i32, i32
  }
  func.func @transform_1(%arg0: i32, %arg1: i32) -> (i32, i32) {
    %c0_i32 = arith.constant 0 : i32
    %c0_i32_0 = arith.constant 0 : i32
    %c0_i32_1 = arith.constant 0 : i32
    return %c0_i32, %c0_i32_0 : i32, i32
  }
  func.func @transform_2(%arg0: i32, %arg1: i32) -> (i32, i32) {
    %c0_i32 = arith.constant 0 : i32
    %c0_i32_0 = arith.constant 0 : i32
    %c0_i32_1 = arith.constant 0 : i32
    return %c0_i32, %c0_i32_0 : i32, i32
  }
  func.func @transform_3(%arg0: i32, %arg1: i32) -> (i32, i32) {
    %c0_i32 = arith.constant 0 : i32
    %c0_i32_0 = arith.constant 0 : i32
    return %arg1, %c0_i32 : i32, i32
  }
  func.func @transform_4(%arg0: i32, %arg1: i32) -> (i32, i32) {
    %c0_i32 = arith.constant 0 : i32
    %c0_i32_0 = arith.constant 0 : i32
    %c0_i32_1 = arith.constant 0 : i32
    return %c0_i32, %c0_i32_0 : i32, i32
  }
  func.func @transform_5(%arg0: i32, %arg1: i32) -> (i32, i32) {
    %c0_i32 = arith.constant 0 : i32
    %c0_i32_0 = arith.constant 0 : i32
    %c0_i32_1 = arith.constant 0 : i32
    return %c0_i32, %c0_i32_0 : i32, i32
  }
  func.func @transform_6(%arg0: i32, %arg1: i32) -> (i32, i32) {
    %c0_i32 = arith.constant 0 : i32
    %c0_i32_0 = arith.constant 0 : i32
    %c0_i32_1 = arith.constant 0 : i32
    return %c0_i32, %c0_i32_0 : i32, i32
  }
  func.func @transform_7(%arg0: i32, %arg1: i32) -> (i32, i32, i32) {
    %c0_i32 = arith.constant 0 : i32
    %c0_i32_0 = arith.constant 0 : i32
    %c0_i32_1 = arith.constant 0 : i32
    return %arg0, %c0_i32, %c0_i32_0 : i32, i32, i32
  }
}

</mosaic_0001>

<bundles_post_ra>
// kernel: conv_q_forward.3
= control target key start
LH: loop header
LB: loop body
LE: loop exit
PB: predicated region body
PF: predicated region fallthrough
CT: control target
= control target key end

     0   :  { %s1542_s12 = smov 0   ;;  %s1852_s0 = inlined_call_operand.vmem [shape: bf16[800,256], index: 0, kind: input, shape index: {}]   ;;  %s1853_s1 = inlined_call_operand.vmem [shape: bf16[256,32], index: 1, kind: input, shape index: {}]   ;;  %s1854_s2 = inlined_call_operand.vmem [shape: f32[1,32], index: 2, kind: input, shape index: {}]   ;;  %s1855_s3 = inlined_call_operand.vmem [shape: bf16[800,32], index: 3, kind: output, shape index: {}]  }
   0x1 LB: > { %s1203_s13 = sadd.s32 4294967295, %s1519_s12   ;;  %p1207_p0 = scmp.ge.s32.totalorder %s1519_s12, 1  ;;  %s1519_s12 = sphi %s1542_s12, %s13_s12  }
   0x2   : > { %p139_p1 = scmp.lt.s32.totalorder %s1519_s12, 3 }
   0x4   : > { %p140_p2 = pnand %p1207_p0, %p139_p1 }
   0x5   : > { %v1422_v0 = vld [vmem:[%s1853_s1] sm:$0xff] (!%p140_p2)   ;;  %v1521_v1 = vmov (!%p140_p2), 0   ;;  %s164_s16 = smul.u32 (!%p140_p2), 50, %s1203_s13  ;;  %v1423_v2 = vld [vmem:[%s1853_s1 + $0x8] sm:$0xff] (!%p140_p2)   ;;  %v1424_v3 = vld [vmem:[%s1853_s1 + $0x10] sm:$0xff] (!%p140_p2)   ;;  %vm1096_vm0 = vcmask (!%p140_p2), 257024  }
   0x6   : > { %143 = sbr.rel (%p140_p2) target bundleno = 387 (0x183), region = 32  ;;  %613 = vmatprep.subr.bf16.mxu0 (!%p140_p2), %v1521_v1  ;;  %1381 = vmatprep.subr.bf16.mxu1 (!%p140_p2), %v1521_v1  ;;  %v1425_v4 = vld [vmem:[%s1853_s1 + $0x18] sm:$0xff] (!%p140_p2)   ;;  %v1426_v5 = vld [vmem:[%s1853_s1 + $0x20] sm:$0xff] (!%p140_p2)   ;;  %v1427_v7 = vld [vmem:[%s1853_s1 + $0x28] sm:$0xff] (!%p140_p2)  }
   0x7   : > { %614 = vmatpush1.bf16.msra.mxu0 (!%p140_p2), %v1422_v0  ;;  %1397 = vmatpush1.bf16.msra.mxu1 (!%p140_p2), %v1422_v0  ;;  %p165_p3 = scmp.lt.s32.totalorder (!%p140_p2), %s164_s16, 99  ;;  %v1428_v9 = vld [vmem:[%s1853_s1 + $0x30] sm:$0xff] (!%p140_p2)   ;;  %v1429_v10 = vld [vmem:[%s1853_s1 + $0x38] sm:$0xff] (!%p140_p2)   ;;  %v1430_v11 = vld [vmem:[%s1853_s1 + $0x40] sm:$0xff] (!%p140_p2)  }
   0x8   : > { %615 = vmatprep.subr.bf16.mxu0 (!%p140_p2), %v1521_v1  ;;  %1382 = vmatprep.subr.bf16.mxu1 (!%p140_p2), %v1521_v1  ;;  %v1431_v12 = vld [vmem:[%s1853_s1 + $0x48] sm:$0xff] (!%p140_p2)   ;;  %v1432_v13 = vld [vmem:[%s1853_s1 + $0x50] sm:$0xff] (!%p140_p2)   ;;  %v1433_v14 = vld [vmem:[%s1853_s1 + $0x58] sm:$0xff] (!%p140_p2)  }
   0x9   : > { %v1434_v15 = vld [vmem:[%s1853_s1 + $0x60] sm:$0xff] (!%p140_p2)   ;;  %v1435_v16 = vld [vmem:[%s1853_s1 + $0x68] sm:$0xff] (!%p140_p2)   ;;  %v1436_v17 = vld [vmem:[%s1853_s1 + $0x70] sm:$0xff] (!%p140_p2)  }
   0xa   : > { %v1437_v18 = vld [vmem:[%s1853_s1 + $0x78] sm:$0xff] (!%p140_p2)  }
   0xb   : > { %616 = vmatpush1.bf16.msra.mxu0 (!%p140_p2), %v1423_v2  ;;  %1398 = vmatpush1.bf16.msra.mxu1 (!%p140_p2), %v1423_v2 }
   0xc   : > { %617 = vmatprep.subr.bf16.mxu0 (!%p140_p2), %v1521_v1  ;;  %1383 = vmatprep.subr.bf16.mxu1 (!%p140_p2), %v1521_v1 }
   0xd   : > { %s1857_s16 = smov (!%p165_p3, %s164_s16), 99 }
   0xe   : > { %s1330_s23 = sshll.u32 %s1857_s16, 3  ;;  %s1210_s29 = sshll.u32 %s1857_s16, 2 }
   0xf   : > { %618 = vmatpush1.bf16.msra.mxu0 %v1424_v3  ;;  %1399 = vmatpush1.bf16.msra.mxu1 %v1424_v3  ;;  %s1579_s28 = scalar_lea.vmem %s1852_s0, %s1330_s23  ;;  %v1691_v3 = vld [vmem:[%s1854_s2] ss:$0 sm:$0xff]  ;;  %s1701_s16 = scalar_lea.vmem %s1855_s3, %s1210_s29 }
  0x10   : > { %619 = vmatprep.subr.bf16.mxu0 %v1521_v1  ;;  %1384 = vmatprep.subr.bf16.mxu1 %v1521_v1  ;;  %v1440_v6 = vld [vmem:[%s1579_s28 + $0x4] ss:$8 sps:$4 sm:$0xff]   ;;  %v1443_v8 = vld [vmem:[%s1579_s28 + $0xd4] ss:$8 sps:$4 sm:$0xff]   ;;  %v1438_v19 = vld [vmem:[%s1579_s28] ss:$8 sps:$4 sm:$0xff]  }
  0x11   : > { %645 = vmatprep.mubr.bf16.mxu0 %v1440_v6  ;;  %749 = vmatprep.mubr.bf16.mxu1 %v1443_v8  ;;  %v1441_v20 = vld [vmem:[%s1579_s28 + $0xd0] ss:$8 sps:$4 sm:$0xff]   ;;  %v1444_v21 = vld [vmem:[%s1579_s28 + $0x14] ss:$8 sps:$4 sm:$0xff]   ;;  %v1447_v22 = vld [vmem:[%s1579_s28 + $0xe4] ss:$8 sps:$4 sm:$0xff]  }
  0x12   : > { %v1446_v23 = vld [vmem:[%s1579_s28 + $0x10] ss:$8 sps:$4 sm:$0xff]   ;;  %v1449_v24 = vld [vmem:[%s1579_s28 + $0xe0] ss:$8 sps:$4 sm:$0xff]   ;;  %v1450_v25 = vld [vmem:[%s1579_s28 + $0x24] ss:$8 sps:$4 sm:$0xff]  }
  0x13   : > { %620 = vmatpush1.bf16.msra.mxu0 %v1425_v4  ;;  %1400 = vmatpush1.bf16.msra.mxu1 %v1425_v4  ;;  %v1453_v26 = vld [vmem:[%s1579_s28 + $0xf4] ss:$8 sps:$4 sm:$0xff]   ;;  %v1452_v27 = vld [vmem:[%s1579_s28 + $0x20] ss:$8 sps:$4 sm:$0xff]   ;;  %v1455_v28 = vld [vmem:[%s1579_s28 + $0xf0] ss:$8 sps:$4 sm:$0xff]  }
  0x14   : > { %621 = vmatprep.subr.bf16.mxu0 %v1521_v1  ;;  %1385 = vmatprep.subr.bf16.mxu1 %v1521_v1  ;;  %v1456_v29 = vld [vmem:[%s1579_s28 + $0x34] ss:$8 sps:$4 sm:$0xff]   ;;  %v1459_v30 = vld [vmem:[%s1579_s28 + $0x104] ss:$8 sps:$4 sm:$0xff]   ;;  %v1458_v31 = vld [vmem:[%s1579_s28 + $0x30] ss:$8 sps:$4 sm:$0xff]  }
  0x15   : > { %v1461_v32 = vld [vmem:[%s1579_s28 + $0x100] ss:$8 sps:$4 sm:$0xff]   ;;  %v1462_v33 = vld [vmem:[%s1579_s28 + $0x44] ss:$8 sps:$4 sm:$0xff]   ;;  %v1465_v34 = vld [vmem:[%s1579_s28 + $0x114] ss:$8 sps:$4 sm:$0xff]  }
  0x16   : > { %v1464_v35 = vld [vmem:[%s1579_s28 + $0x40] ss:$8 sps:$4 sm:$0xff]   ;;  %v1467_v36 = vld [vmem:[%s1579_s28 + $0x110] ss:$8 sps:$4 sm:$0xff]   ;;  %v1468_v37 = vld [vmem:[%s1579_s28 + $0x54] ss:$8 sps:$4 sm:$0xff]  }
  0x17   : > { %622 = vmatpush1.bf16.msra.mxu0 %v1426_v5  ;;  %1401 = vmatpush1.bf16.msra.mxu1 %v1426_v5  ;;  %v1471_v38 = vld [vmem:[%s1579_s28 + $0x124] ss:$8 sps:$4 sm:$0xff]   ;;  %v1470_v39 = vld [vmem:[%s1579_s28 + $0x50] ss:$8 sps:$4 sm:$0xff]   ;;  %v1473_v40 = vld [vmem:[%s1579_s28 + $0x120] ss:$8 sps:$4 sm:$0xff]  }
  0x18   : > { %623 = vmatprep.subr.bf16.mxu0 %v1521_v1  ;;  %1386 = vmatprep.subr.bf16.mxu1 %v1521_v1  ;;  %v1474_v41 = vld [vmem:[%s1579_s28 + $0x64] ss:$8 sps:$4 sm:$0xff]   ;;  %v1477_v42 = vld [vmem:[%s1579_s28 + $0x134] ss:$8 sps:$4 sm:$0xff]   ;;  %v1476_v43 = vld [vmem:[%s1579_s28 + $0x60] ss:$8 sps:$4 sm:$0xff]  }
  0x19   : > { %v1479_v44 = vld [vmem:[%s1579_s28 + $0x130] ss:$8 sps:$4 sm:$0xff]   ;;  %v1480_v45 = vld [vmem:[%s1579_s28 + $0x74] ss:$8 sps:$4 sm:$0xff]   ;;  %v1483_v46 = vld [vmem:[%s1579_s28 + $0x144] ss:$8 sps:$4 sm:$0xff]  }
  0x1a   : > { %v1482_v47 = vld [vmem:[%s1579_s28 + $0x70] ss:$8 sps:$4 sm:$0xff]   ;;  %v1485_v48 = vld [vmem:[%s1579_s28 + $0x140] ss:$8 sps:$4 sm:$0xff]   ;;  %v1486_v49 = vld [vmem:[%s1579_s28 + $0x84] ss:$8 sps:$4 sm:$0xff]  }
  0x1b   : > { %624 = vmatpush1.bf16.msra.mxu0 %v1427_v7  ;;  %1402 = vmatpush1.bf16.msra.mxu1 %v1427_v7  ;;  %v1489_v50 = vld [vmem:[%s1579_s28 + $0x154] ss:$8 sps:$4 sm:$0xff]   ;;  %v1488_v51 = vld [vmem:[%s1579_s28 + $0x80] ss:$8 sps:$4 sm:$0xff]   ;;  %v1491_v52 = vld [vmem:[%s1579_s28 + $0x150] ss:$8 sps:$4 sm:$0xff]  }
  0x1c   : > { %625 = vmatprep.subr.bf16.mxu0 %v1521_v1  ;;  %1387 = vmatprep.subr.bf16.mxu1 %v1521_v1  ;;  %v1492_v53 = vld [vmem:[%s1579_s28 + $0x94] ss:$8 sps:$4 sm:$0xff]   ;;  %v1495_v54 = vld [vmem:[%s1579_s28 + $0x164] ss:$8 sps:$4 sm:$0xff]   ;;  %v1494_v55 = vld [vmem:[%s1579_s28 + $0x90] ss:$8 sps:$4 sm:$0xff]  }
  0x1d   : > { %v1497_v56 = vld [vmem:[%s1579_s28 + $0x160] ss:$8 sps:$4 sm:$0xff]   ;;  %v1498_v57 = vld [vmem:[%s1579_s28 + $0xa4] ss:$8 sps:$4 sm:$0xff]   ;;  %v1501_v58 = vld [vmem:[%s1579_s28 + $0x174] ss:$8 sps:$4 sm:$0xff]  }
  0x1e   : > { %v1500_v59 = vld [vmem:[%s1579_s28 + $0xa0] ss:$8 sps:$4 sm:$0xff]   ;;  %v1503_v60 = vld [vmem:[%s1579_s28 + $0x170] ss:$8 sps:$4 sm:$0xff]   ;;  %v1504_v61 = vld [vmem:[%s1579_s28 + $0xb4] ss:$8 sps:$4 sm:$0xff]  }
  0x1f   : > { %626 = vmatpush1.bf16.msra.mxu0 %v1428_v9  ;;  %1403 = vmatpush1.bf16.msra.mxu1 %v1428_v9  ;;  %v1507_v62 = vld [vmem:[%s1579_s28 + $0x184] ss:$8 sps:$4 sm:$0xff]   ;;  %v1506_v63 = vld [vmem:[%s1579_s28 + $0xb0] ss:$8 sps:$4 sm:$0xff]   ;;  %v1509_v0 = vld [vmem:[%s1579_s28 + $0x180] ss:$8 sps:$4 sm:$0xff]  }
  0x20   : > { %627 = vmatprep.subr.bf16.mxu0 %v1521_v1  ;;  %1388 = vmatprep.subr.bf16.mxu1 %v1521_v1  ;;  %v1512_v2 = vld [vmem:[%s1579_s28 + $0xc0] ss:$8 sps:$4 sm:$0xff]  }
  0x23   : > { %628 = vmatpush1.bf16.msra.mxu0 %v1429_v10  ;;  %1404 = vmatpush1.bf16.msra.mxu1 %v1429_v10 }
  0x24   : > { %629 = vmatprep.subr.bf16.mxu0 %v1521_v1  ;;  %1389 = vmatprep.subr.bf16.mxu1 %v1521_v1 }
  0x27   : > { %630 = vmatpush1.bf16.msra.mxu0 %v1430_v11  ;;  %1405 = vmatpush1.bf16.msra.mxu1 %v1430_v11 }
  0x28   : > { %631 = vmatprep.subr.bf16.mxu0 %v1521_v1  ;;  %1390 = vmatprep.subr.bf16.mxu1 %v1521_v1 }
  0x2b   : > { %632 = vmatpush1.bf16.msra.mxu0 %v1431_v12  ;;  %1406 = vmatpush1.bf16.msra.mxu1 %v1431_v12 }
  0x2c   : > { %633 = vmatprep.subr.bf16.mxu0 %v1521_v1  ;;  %1391 = vmatprep.subr.bf16.mxu1 %v1521_v1 }
  0x2f   : > { %634 = vmatpush1.bf16.msra.mxu0 %v1432_v13  ;;  %1407 = vmatpush1.bf16.msra.mxu1 %v1432_v13 }
  0x30   : > { %635 = vmatprep.subr.bf16.mxu0 %v1521_v1  ;;  %1392 = vmatprep.subr.bf16.mxu1 %v1521_v1 }
  0x33   : > { %636 = vmatpush1.bf16.msra.mxu0 %v1433_v14  ;;  %1408 = vmatpush1.bf16.msra.mxu1 %v1433_v14 }
  0x34   : > { %637 = vmatprep.subr.bf16.mxu0 %v1521_v1  ;;  %1393 = vmatprep.subr.bf16.mxu1 %v1521_v1 }
  0x37   : > { %638 = vmatpush1.bf16.msra.mxu0 %v1434_v15  ;;  %1409 = vmatpush1.bf16.msra.mxu1 %v1434_v15 }
  0x38   : > { %639 = vmatprep.subr.bf16.mxu0 %v1521_v1  ;;  %1394 = vmatprep.subr.bf16.mxu1 %v1521_v1 }
  0x3b   : > { %640 = vmatpush1.bf16.msra.mxu0 %v1435_v16  ;;  %1410 = vmatpush1.bf16.msra.mxu1 %v1435_v16 }
  0x3c   : > { %641 = vmatprep.subr.bf16.mxu0 %v1521_v1  ;;  %1395 = vmatprep.subr.bf16.mxu1 %v1521_v1 }
  0x3f   : > { %642 = vmatpush1.bf16.msra.mxu0 %v1436_v17  ;;  %1411 = vmatpush1.bf16.msra.mxu1 %v1436_v17 }
  0x40   : > { %643 = vmatprep.subr.bf16.mxu0 %v1521_v1  ;;  %1396 = vmatprep.subr.bf16.mxu1 %v1521_v1  ;;  %v1510_v1 = vld [vmem:[%s1579_s28 + $0xc4] ss:$8 sps:$4 sm:$0xff]  }
  0x43   : > { %644 = vmatpush1.bf16.msra.mxu0 %v1437_v18  ;;  %1412 = vmatpush1.bf16.msra.mxu1 %v1437_v18 }
  0x46   : > { %646 = vmatmul.mubr.bf16.vlgmr.msra.gmra.mrb[0].mxu0 %v1438_v19  ;;  %750 = vmatmul.mubr.bf16.vlgmr.msra.gmra.mrb[0].mxu1 %v1441_v20 }
  0x47   : > { %653 = vmatprep.mubr.bf16.mxu0 %v1444_v21  ;;  %757 = vmatprep.mubr.bf16.mxu1 %v1447_v22 }
  0x4e   : > { %654 = vmatmul.mubr.bf16.gmra.mrb[4].mxu0 %v1446_v23  ;;  %758 = vmatmul.mubr.bf16.gmra.mrb[4].mxu1 %v1449_v24 }
  0x4f   : > { %661 = vmatprep.mubr.bf16.mxu0 %v1450_v25  ;;  %765 = vmatprep.mubr.bf16.mxu1 %v1453_v26 }
  0x56   : > { %662 = vmatmul.mubr.bf16.gmra.mrb[8].mxu0 %v1452_v27  ;;  %766 = vmatmul.mubr.bf16.gmra.mrb[8].mxu1 %v1455_v28 }
  0x57   : > { %669 = vmatprep.mubr.bf16.mxu0 %v1456_v29  ;;  %773 = vmatprep.mubr.bf16.mxu1 %v1459_v30 }
  0x5e   : > { %670 = vmatmul.mubr.bf16.gmra.mrb[12].mxu0 %v1458_v31  ;;  %774 = vmatmul.mubr.bf16.gmra.mrb[12].mxu1 %v1461_v32 }
  0x5f   : > { %677 = vmatprep.mubr.bf16.mxu0 %v1462_v33  ;;  %781 = vmatprep.mubr.bf16.mxu1 %v1465_v34 }
  0x66   : > { %678 = vmatmul.mubr.bf16.gmra.mrb[16].mxu0 %v1464_v35  ;;  %782 = vmatmul.mubr.bf16.gmra.mrb[16].mxu1 %v1467_v36 }
  0x67   : > { %685 = vmatprep.mubr.bf16.mxu0 %v1468_v37  ;;  %789 = vmatprep.mubr.bf16.mxu1 %v1471_v38 }
  0x6e   : > { %686 = vmatmul.mubr.bf16.gmra.mrb[20].mxu0 %v1470_v39  ;;  %790 = vmatmul.mubr.bf16.gmra.mrb[20].mxu1 %v1473_v40 }
  0x6f   : > { %693 = vmatprep.mubr.bf16.mxu0 %v1474_v41  ;;  %797 = vmatprep.mubr.bf16.mxu1 %v1477_v42 }
  0x76   : > { %694 = vmatmul.mubr.bf16.gmra.mrb[24].mxu0 %v1476_v43  ;;  %798 = vmatmul.mubr.bf16.gmra.mrb[24].mxu1 %v1479_v44 }
  0x77   : > { %701 = vmatprep.mubr.bf16.mxu0 %v1480_v45  ;;  %805 = vmatprep.mubr.bf16.mxu1 %v1483_v46 }
  0x7e   : > { %702 = vmatmul.mubr.bf16.gmra.mrb[28].mxu0 %v1482_v47  ;;  %806 = vmatmul.mubr.bf16.gmra.mrb[28].mxu1 %v1485_v48 }
  0x7f   : > { %709 = vmatprep.mubr.bf16.mxu0 %v1486_v49  ;;  %813 = vmatprep.mubr.bf16.mxu1 %v1489_v50 }
  0x86   : > { %710 = vmatmul.mubr.bf16.gmra.mrb[32].mxu0 %v1488_v51  ;;  %814 = vmatmul.mubr.bf16.gmra.mrb[32].mxu1 %v1491_v52 }
  0x87   : > { %717 = vmatprep.mubr.bf16.mxu0 %v1492_v53  ;;  %821 = vmatprep.mubr.bf16.mxu1 %v1495_v54 }
  0x8e   : > { %718 = vmatmul.mubr.bf16.gmra.mrb[36].mxu0 %v1494_v55  ;;  %822 = vmatmul.mubr.bf16.gmra.mrb[36].mxu1 %v1497_v56 }
  0x8f   : > { %725 = vmatprep.mubr.bf16.mxu0 %v1498_v57  ;;  %829 = vmatprep.mubr.bf16.mxu1 %v1501_v58 }
  0x96   : > { %726 = vmatmul.mubr.bf16.gmra.mrb[40].mxu0 %v1500_v59  ;;  %830 = vmatmul.mubr.bf16.gmra.mrb[40].mxu1 %v1503_v60 }
  0x97   : > { %733 = vmatprep.mubr.bf16.mxu0 %v1504_v61  ;;  %837 = vmatprep.mubr.bf16.mxu1 %v1507_v62 }
  0x9e   : > { %734 = vmatmul.mubr.bf16.gmra.mrb[44].mxu0 %v1506_v63  ;;  %838 = vmatmul.mubr.bf16.gmra.mrb[44].mxu1 %v1509_v0 }
  0x9f   : > { %741 = vmatprep.mubr.bf16.mxu0 %v1510_v1 }
  0xa6   : > { %742 = vmatmul.mubr.bf16.gmra.mrb[48].mxu0 %v1512_v2 }
 0x119   : > { %v647_v4 = vpop.f32.mrb[0].mxu0  ;;  %v751_v5 = vpop.f32.mrb[0].mxu1 }
 0x11a   : > { %v648_v6 = vadd.f32 %v1691_v3, %v647_v4  ;;  %v649_v7 = vpop.f32.mrb[1].mxu0  ;;  %v752_v8 = vadd.f32 %v1691_v3, %v751_v5  ;;  %v753_v9 = vpop.f32.mrb[1].mxu1 }
 0x11b   : > { %v650_v10 = vpop.f32.mrb[2].mxu0  ;;  %v754_v11 = vpop.f32.mrb[2].mxu1 }
 0x11c   : > { %v846_v12 = vmax.f32 %v648_v6, 0.0  ;;  %v651_v13 = vadd.f32 %v1691_v3, %v650_v10  ;;  %v652_v14 = vpop.f32.mrb[3].mxu0  ;;  %v872_v15 = vmax.f32 %v752_v8, 0.0  ;;  %v755_v16 = vadd.f32 %v1691_v3, %v754_v11  ;;  %v756_v17 = vpop.f32.mrb[3].mxu1 }
 0x11e   : > { %v1331_v18 = vpack.c.bf16 %v846_v12, %v846_v12  ;;  %v847_v19 = vmax.f32 %v651_v13, 0.0  ;;  %v1357_v20 = vpack.c.bf16 %v872_v15, %v872_v15  ;;  %v873_v21 = vmax.f32 %v755_v16, 0.0 }
 0x120   : > { %1097 = vst.msk [vmem:[%s1701_s16] sm:$0xf] %vm1096_vm0, %v1331_v18  ;;  %v1332_v22 = vpack.c.bf16 %v847_v19, %v847_v19  ;;  %1123 = vst.msk [vmem:[%s1701_s16 + $0x68] sm:$0xf] %vm1096_vm0, %v1357_v20  ;;  %v1358_v23 = vpack.c.bf16 %v873_v21, %v873_v21 }
 0x121   : > { %v655_v24 = vpop.f32.mrb[4].mxu0  ;;  %v759_v25 = vpop.f32.mrb[4].mxu1 }
 0x122   : > { %1098 = vst.msk [vmem:[%s1701_s16 + $0x4] sm:$0xf] %vm1096_vm0, %v1332_v22  ;;  %1124 = vst.msk [vmem:[%s1701_s16 + $0x6c] sm:$0xf] %vm1096_vm0, %v1358_v23  ;;  %v656_v26 = vadd.f32 %v1691_v3, %v655_v24  ;;  %v657_v27 = vpop.f32.mrb[5].mxu0  ;;  %v760_v28 = vadd.f32 %v1691_v3, %v759_v25  ;;  %v761_v29 = vpop.f32.mrb[5].mxu1 }
 0x123   : > { %v658_v30 = vpop.f32.mrb[6].mxu0  ;;  %v762_v31 = vpop.f32.mrb[6].mxu1 }
 0x124   : > { %v848_v32 = vmax.f32 %v656_v26, 0.0  ;;  %v659_v33 = vadd.f32 %v1691_v3, %v658_v30  ;;  %v660_v34 = vpop.f32.mrb[7].mxu0  ;;  %v874_v35 = vmax.f32 %v760_v28, 0.0  ;;  %v763_v36 = vadd.f32 %v1691_v3, %v762_v31  ;;  %v764_v37 = vpop.f32.mrb[7].mxu1 }
 0x126   : > { %v1333_v38 = vpack.c.bf16 %v848_v32, %v848_v32  ;;  %v849_v39 = vmax.f32 %v659_v33, 0.0  ;;  %v1359_v40 = vpack.c.bf16 %v874_v35, %v874_v35  ;;  %v875_v41 = vmax.f32 %v763_v36, 0.0 }
 0x128   : > { %1099 = vst.msk [vmem:[%s1701_s16 + $0x8] sm:$0xf] %vm1096_vm0, %v1333_v38  ;;  %v1334_v42 = vpack.c.bf16 %v849_v39, %v849_v39  ;;  %1125 = vst.msk [vmem:[%s1701_s16 + $0x70] sm:$0xf] %vm1096_vm0, %v1359_v40  ;;  %v1360_v43 = vpack.c.bf16 %v875_v41, %v875_v41 }
 0x129   : > { %v663_v44 = vpop.f32.mrb[8].mxu0  ;;  %v767_v45 = vpop.f32.mrb[8].mxu1 }
 0x12a   : > { %1100 = vst.msk [vmem:[%s1701_s16 + $0xc] sm:$0xf] %vm1096_vm0, %v1334_v42  ;;  %1126 = vst.msk [vmem:[%s1701_s16 + $0x74] sm:$0xf] %vm1096_vm0, %v1360_v43  ;;  %v664_v46 = vadd.f32 %v1691_v3, %v663_v44  ;;  %v665_v47 = vpop.f32.mrb[9].mxu0  ;;  %v768_v48 = vadd.f32 %v1691_v3, %v767_v45  ;;  %v769_v49 = vpop.f32.mrb[9].mxu1 }
 0x12b   : > { %v666_v50 = vpop.f32.mrb[10].mxu0  ;;  %v770_v51 = vpop.f32.mrb[10].mxu1 }
 0x12c   : > { %v850_v52 = vmax.f32 %v664_v46, 0.0  ;;  %v667_v53 = vadd.f32 %v1691_v3, %v666_v50  ;;  %v668_v54 = vpop.f32.mrb[11].mxu0  ;;  %v876_v55 = vmax.f32 %v768_v48, 0.0  ;;  %v771_v56 = vadd.f32 %v1691_v3, %v770_v51  ;;  %v772_v57 = vpop.f32.mrb[11].mxu1 }
 0x12e   : > { %v1335_v58 = vpack.c.bf16 %v850_v52, %v850_v52  ;;  %v851_v59 = vmax.f32 %v667_v53, 0.0  ;;  %v1361_v60 = vpack.c.bf16 %v876_v55, %v876_v55  ;;  %v877_v61 = vmax.f32 %v771_v56, 0.0 }
 0x130   : > { %1101 = vst.msk [vmem:[%s1701_s16 + $0x10] sm:$0xf] %vm1096_vm0, %v1335_v58  ;;  %v1336_v62 = vpack.c.bf16 %v851_v59, %v851_v59  ;;  %1127 = vst.msk [vmem:[%s1701_s16 + $0x78] sm:$0xf] %vm1096_vm0, %v1361_v60  ;;  %v1362_v63 = vpack.c.bf16 %v877_v61, %v877_v61 }
 0x131   : > { %v671_v0 = vpop.f32.mrb[12].mxu0  ;;  %v775_v1 = vpop.f32.mrb[12].mxu1 }
 0x132   : > { %1102 = vst.msk [vmem:[%s1701_s16 + $0x14] sm:$0xf] %vm1096_vm0, %v1336_v62  ;;  %1128 = vst.msk [vmem:[%s1701_s16 + $0x7c] sm:$0xf] %vm1096_vm0, %v1362_v63  ;;  %v672_v2 = vadd.f32 %v1691_v3, %v671_v0  ;;  %v673_v4 = vpop.f32.mrb[13].mxu0  ;;  %v776_v5 = vadd.f32 %v1691_v3, %v775_v1  ;;  %v777_v6 = vpop.f32.mrb[13].mxu1 }
 0x133   : > { %v674_v7 = vpop.f32.mrb[14].mxu0  ;;  %v778_v8 = vpop.f32.mrb[14].mxu1 }
 0x134   : > { %v852_v9 = vmax.f32 %v672_v2, 0.0  ;;  %v675_v10 = vadd.f32 %v1691_v3, %v674_v7  ;;  %v676_v11 = vpop.f32.mrb[15].mxu0  ;;  %v878_v12 = vmax.f32 %v776_v5, 0.0  ;;  %v779_v13 = vadd.f32 %v1691_v3, %v778_v8  ;;  %v780_v14 = vpop.f32.mrb[15].mxu1 }
 0x136   : > { %v1337_v15 = vpack.c.bf16 %v852_v9, %v852_v9  ;;  %v853_v16 = vmax.f32 %v675_v10, 0.0  ;;  %v1363_v17 = vpack.c.bf16 %v878_v12, %v878_v12  ;;  %v879_v18 = vmax.f32 %v779_v13, 0.0 }
 0x138   : > { %1103 = vst.msk [vmem:[%s1701_s16 + $0x18] sm:$0xf] %vm1096_vm0, %v1337_v15  ;;  %v1338_v19 = vpack.c.bf16 %v853_v16, %v853_v16  ;;  %1129 = vst.msk [vmem:[%s1701_s16 + $0x80] sm:$0xf] %vm1096_vm0, %v1363_v17  ;;  %v1364_v20 = vpack.c.bf16 %v879_v18, %v879_v18 }
 0x139   : > { %v679_v21 = vpop.f32.mrb[16].mxu0  ;;  %v783_v22 = vpop.f32.mrb[16].mxu1 }
 0x13a   : > { %1104 = vst.msk [vmem:[%s1701_s16 + $0x1c] sm:$0xf] %vm1096_vm0, %v1338_v19  ;;  %1130 = vst.msk [vmem:[%s1701_s16 + $0x84] sm:$0xf] %vm1096_vm0, %v1364_v20  ;;  %v680_v23 = vadd.f32 %v1691_v3, %v679_v21  ;;  %v681_v24 = vpop.f32.mrb[17].mxu0  ;;  %v784_v25 = vadd.f32 %v1691_v3, %v783_v22  ;;  %v785_v26 = vpop.f32.mrb[17].mxu1 }
 0x13b   : > { %v682_v27 = vpop.f32.mrb[18].mxu0  ;;  %v786_v28 = vpop.f32.mrb[18].mxu1 }
 0x13c   : > { %v854_v29 = vmax.f32 %v680_v23, 0.0  ;;  %v683_v30 = vadd.f32 %v1691_v3, %v682_v27  ;;  %v684_v31 = vpop.f32.mrb[19].mxu0  ;;  %v880_v32 = vmax.f32 %v784_v25, 0.0  ;;  %v787_v33 = vadd.f32 %v1691_v3, %v786_v28  ;;  %v788_v34 = vpop.f32.mrb[19].mxu1 }
 0x13e   : > { %v1339_v35 = vpack.c.bf16 %v854_v29, %v854_v29  ;;  %v855_v36 = vmax.f32 %v683_v30, 0.0  ;;  %v1365_v37 = vpack.c.bf16 %v880_v32, %v880_v32  ;;  %v881_v38 = vmax.f32 %v787_v33, 0.0 }
 0x140   : > { %1105 = vst.msk [vmem:[%s1701_s16 + $0x20] sm:$0xf] %vm1096_vm0, %v1339_v35  ;;  %v1340_v39 = vpack.c.bf16 %v855_v36, %v855_v36  ;;  %1131 = vst.msk [vmem:[%s1701_s16 + $0x88] sm:$0xf] %vm1096_vm0, %v1365_v37  ;;  %v1366_v40 = vpack.c.bf16 %v881_v38, %v881_v38 }
 0x141   : > { %v687_v41 = vpop.f32.mrb[20].mxu0  ;;  %v791_v42 = vpop.f32.mrb[20].mxu1 }
 0x142   : > { %1106 = vst.msk [vmem:[%s1701_s16 + $0x24] sm:$0xf] %vm1096_vm0, %v1340_v39  ;;  %1132 = vst.msk [vmem:[%s1701_s16 + $0x8c] sm:$0xf] %vm1096_vm0, %v1366_v40  ;;  %v688_v43 = vadd.f32 %v1691_v3, %v687_v41  ;;  %v689_v44 = vpop.f32.mrb[21].mxu0  ;;  %v792_v45 = vadd.f32 %v1691_v3, %v791_v42  ;;  %v793_v46 = vpop.f32.mrb[21].mxu1 }
 0x143   : > { %v690_v47 = vpop.f32.mrb[22].mxu0  ;;  %v794_v48 = vpop.f32.mrb[22].mxu1 }
 0x144   : > { %v856_v49 = vmax.f32 %v688_v43, 0.0  ;;  %v691_v50 = vadd.f32 %v1691_v3, %v690_v47  ;;  %v692_v51 = vpop.f32.mrb[23].mxu0  ;;  %v882_v52 = vmax.f32 %v792_v45, 0.0  ;;  %v795_v53 = vadd.f32 %v1691_v3, %v794_v48  ;;  %v796_v54 = vpop.f32.mrb[23].mxu1 }
 0x146   : > { %v1341_v55 = vpack.c.bf16 %v856_v49, %v856_v49  ;;  %v857_v56 = vmax.f32 %v691_v50, 0.0  ;;  %v1367_v57 = vpack.c.bf16 %v882_v52, %v882_v52  ;;  %v883_v58 = vmax.f32 %v795_v53, 0.0 }
 0x148   : > { %1107 = vst.msk [vmem:[%s1701_s16 + $0x28] sm:$0xf] %vm1096_vm0, %v1341_v55  ;;  %v1342_v59 = vpack.c.bf16 %v857_v56, %v857_v56  ;;  %1133 = vst.msk [vmem:[%s1701_s16 + $0x90] sm:$0xf] %vm1096_vm0, %v1367_v57  ;;  %v1368_v60 = vpack.c.bf16 %v883_v58, %v883_v58 }
 0x149   : > { %v695_v61 = vpop.f32.mrb[24].mxu0  ;;  %v799_v62 = vpop.f32.mrb[24].mxu1 }
 0x14a   : > { %1108 = vst.msk [vmem:[%s1701_s16 + $0x2c] sm:$0xf] %vm1096_vm0, %v1342_v59  ;;  %1134 = vst.msk [vmem:[%s1701_s16 + $0x94] sm:$0xf] %vm1096_vm0, %v1368_v60  ;;  %v696_v63 = vadd.f32 %v1691_v3, %v695_v61  ;;  %v697_v0 = vpop.f32.mrb[25].mxu0  ;;  %v800_v1 = vadd.f32 %v1691_v3, %v799_v62  ;;  %v801_v2 = vpop.f32.mrb[25].mxu1 }
 0x14b   : > { %v698_v4 = vpop.f32.mrb[26].mxu0  ;;  %v802_v5 = vpop.f32.mrb[26].mxu1 }
 0x14c   : > { %v858_v6 = vmax.f32 %v696_v63, 0.0  ;;  %v699_v7 = vadd.f32 %v1691_v3, %v698_v4  ;;  %v700_v8 = vpop.f32.mrb[27].mxu0  ;;  %v884_v9 = vmax.f32 %v800_v1, 0.0  ;;  %v803_v10 = vadd.f32 %v1691_v3, %v802_v5  ;;  %v804_v11 = vpop.f32.mrb[27].mxu1 }
 0x14e   : > { %v1343_v12 = vpack.c.bf16 %v858_v6, %v858_v6  ;;  %v859_v13 = vmax.f32 %v699_v7, 0.0  ;;  %v1369_v14 = vpack.c.bf16 %v884_v9, %v884_v9  ;;  %v885_v15 = vmax.f32 %v803_v10, 0.0 }
 0x150   : > { %1109 = vst.msk [vmem:[%s1701_s16 + $0x30] sm:$0xf] %vm1096_vm0, %v1343_v12  ;;  %v1344_v16 = vpack.c.bf16 %v859_v13, %v859_v13  ;;  %1135 = vst.msk [vmem:[%s1701_s16 + $0x98] sm:$0xf] %vm1096_vm0, %v1369_v14  ;;  %v1370_v17 = vpack.c.bf16 %v885_v15, %v885_v15 }
 0x151   : > { %v703_v18 = vpop.f32.mrb[28].mxu0  ;;  %v807_v19 = vpop.f32.mrb[28].mxu1 }
 0x152   : > { %1110 = vst.msk [vmem:[%s1701_s16 + $0x34] sm:$0xf] %vm1096_vm0, %v1344_v16  ;;  %1136 = vst.msk [vmem:[%s1701_s16 + $0x9c] sm:$0xf] %vm1096_vm0, %v1370_v17  ;;  %v704_v20 = vadd.f32 %v1691_v3, %v703_v18  ;;  %v705_v21 = vpop.f32.mrb[29].mxu0  ;;  %v808_v22 = vadd.f32 %v1691_v3, %v807_v19  ;;  %v809_v23 = vpop.f32.mrb[29].mxu1 }
 0x153   : > { %v706_v24 = vpop.f32.mrb[30].mxu0  ;;  %v810_v25 = vpop.f32.mrb[30].mxu1 }
 0x154   : > { %v860_v26 = vmax.f32 %v704_v20, 0.0  ;;  %v707_v27 = vadd.f32 %v1691_v3, %v706_v24  ;;  %v708_v28 = vpop.f32.mrb[31].mxu0  ;;  %v886_v29 = vmax.f32 %v808_v22, 0.0  ;;  %v811_v30 = vadd.f32 %v1691_v3, %v810_v25  ;;  %v812_v31 = vpop.f32.mrb[31].mxu1 }
 0x156   : > { %v1345_v32 = vpack.c.bf16 %v860_v26, %v860_v26  ;;  %v861_v33 = vmax.f32 %v707_v27, 0.0  ;;  %v1371_v34 = vpack.c.bf16 %v886_v29, %v886_v29  ;;  %v887_v35 = vmax.f32 %v811_v30, 0.0 }
 0x158   : > { %1111 = vst.msk [vmem:[%s1701_s16 + $0x38] sm:$0xf] %vm1096_vm0, %v1345_v32  ;;  %v1346_v36 = vpack.c.bf16 %v861_v33, %v861_v33  ;;  %1137 = vst.msk [vmem:[%s1701_s16 + $0xa0] sm:$0xf] %vm1096_vm0, %v1371_v34  ;;  %v1372_v37 = vpack.c.bf16 %v887_v35, %v887_v35 }
 0x159   : > { %v711_v38 = vpop.f32.mrb[32].mxu0  ;;  %v815_v39 = vpop.f32.mrb[32].mxu1 }
 0x15a   : > { %1112 = vst.msk [vmem:[%s1701_s16 + $0x3c] sm:$0xf] %vm1096_vm0, %v1346_v36  ;;  %1138 = vst.msk [vmem:[%s1701_s16 + $0xa4] sm:$0xf] %vm1096_vm0, %v1372_v37  ;;  %v712_v40 = vadd.f32 %v1691_v3, %v711_v38  ;;  %v713_v41 = vpop.f32.mrb[33].mxu0  ;;  %v816_v42 = vadd.f32 %v1691_v3, %v815_v39  ;;  %v817_v43 = vpop.f32.mrb[33].mxu1 }
 0x15b   : > { %v714_v44 = vpop.f32.mrb[34].mxu0  ;;  %v818_v45 = vpop.f32.mrb[34].mxu1 }
 0x15c   : > { %v862_v46 = vmax.f32 %v712_v40, 0.0  ;;  %v715_v47 = vadd.f32 %v1691_v3, %v714_v44  ;;  %v716_v48 = vpop.f32.mrb[35].mxu0  ;;  %v888_v49 = vmax.f32 %v816_v42, 0.0  ;;  %v819_v50 = vadd.f32 %v1691_v3, %v818_v45  ;;  %v820_v51 = vpop.f32.mrb[35].mxu1 }
 0x15e   : > { %v1347_v52 = vpack.c.bf16 %v862_v46, %v862_v46  ;;  %v863_v53 = vmax.f32 %v715_v47, 0.0  ;;  %v1373_v54 = vpack.c.bf16 %v888_v49, %v888_v49  ;;  %v889_v55 = vmax.f32 %v819_v50, 0.0 }
 0x160   : > { %1113 = vst.msk [vmem:[%s1701_s16 + $0x40] sm:$0xf] %vm1096_vm0, %v1347_v52  ;;  %v1348_v56 = vpack.c.bf16 %v863_v53, %v863_v53  ;;  %1139 = vst.msk [vmem:[%s1701_s16 + $0xa8] sm:$0xf] %vm1096_vm0, %v1373_v54  ;;  %v1374_v57 = vpack.c.bf16 %v889_v55, %v889_v55 }
 0x161   : > { %v719_v58 = vpop.f32.mrb[36].mxu0  ;;  %v823_v59 = vpop.f32.mrb[36].mxu1 }
 0x162   : > { %1114 = vst.msk [vmem:[%s1701_s16 + $0x44] sm:$0xf] %vm1096_vm0, %v1348_v56  ;;  %1140 = vst.msk [vmem:[%s1701_s16 + $0xac] sm:$0xf] %vm1096_vm0, %v1374_v57  ;;  %v720_v60 = vadd.f32 %v1691_v3, %v719_v58  ;;  %v721_v61 = vpop.f32.mrb[37].mxu0  ;;  %v824_v62 = vadd.f32 %v1691_v3, %v823_v59  ;;  %v825_v63 = vpop.f32.mrb[37].mxu1 }
 0x163   : > { %v722_v0 = vpop.f32.mrb[38].mxu0  ;;  %v826_v1 = vpop.f32.mrb[38].mxu1 }
 0x164   : > { %v864_v2 = vmax.f32 %v720_v60, 0.0  ;;  %v723_v4 = vadd.f32 %v1691_v3, %v722_v0  ;;  %v724_v5 = vpop.f32.mrb[39].mxu0  ;;  %v890_v6 = vmax.f32 %v824_v62, 0.0  ;;  %v827_v7 = vadd.f32 %v1691_v3, %v826_v1  ;;  %v828_v8 = vpop.f32.mrb[39].mxu1 }
 0x166   : > { %v1349_v9 = vpack.c.bf16 %v864_v2, %v864_v2  ;;  %v865_v10 = vmax.f32 %v723_v4, 0.0  ;;  %v1375_v11 = vpack.c.bf16 %v890_v6, %v890_v6  ;;  %v891_v12 = vmax.f32 %v827_v7, 0.0 }
 0x168   : > { %1115 = vst.msk [vmem:[%s1701_s16 + $0x48] sm:$0xf] %vm1096_vm0, %v1349_v9  ;;  %v1350_v13 = vpack.c.bf16 %v865_v10, %v865_v10  ;;  %1141 = vst.msk [vmem:[%s1701_s16 + $0xb0] sm:$0xf] %vm1096_vm0, %v1375_v11  ;;  %v1376_v14 = vpack.c.bf16 %v891_v12, %v891_v12 }
 0x169   : > { %v727_v15 = vpop.f32.mrb[40].mxu0  ;;  %v831_v16 = vpop.f32.mrb[40].mxu1 }
 0x16a   : > { %1116 = vst.msk [vmem:[%s1701_s16 + $0x4c] sm:$0xf] %vm1096_vm0, %v1350_v13  ;;  %1142 = vst.msk [vmem:[%s1701_s16 + $0xb4] sm:$0xf] %vm1096_vm0, %v1376_v14  ;;  %v728_v17 = vadd.f32 %v1691_v3, %v727_v15  ;;  %v729_v18 = vpop.f32.mrb[41].mxu0  ;;  %v832_v19 = vadd.f32 %v1691_v3, %v831_v16  ;;  %v833_v20 = vpop.f32.mrb[41].mxu1 }
 0x16b   : > { %v730_v21 = vpop.f32.mrb[42].mxu0  ;;  %v834_v22 = vpop.f32.mrb[42].mxu1 }
 0x16c   : > { %v866_v23 = vmax.f32 %v728_v17, 0.0  ;;  %v731_v24 = vadd.f32 %v1691_v3, %v730_v21  ;;  %v732_v25 = vpop.f32.mrb[43].mxu0  ;;  %v892_v26 = vmax.f32 %v832_v19, 0.0  ;;  %v835_v27 = vadd.f32 %v1691_v3, %v834_v22  ;;  %v836_v28 = vpop.f32.mrb[43].mxu1 }
 0x16e   : > { %v1351_v29 = vpack.c.bf16 %v866_v23, %v866_v23  ;;  %v867_v30 = vmax.f32 %v731_v24, 0.0  ;;  %v1377_v31 = vpack.c.bf16 %v892_v26, %v892_v26  ;;  %v893_v32 = vmax.f32 %v835_v27, 0.0 }
 0x170   : > { %1117 = vst.msk [vmem:[%s1701_s16 + $0x50] sm:$0xf] %vm1096_vm0, %v1351_v29  ;;  %v1352_v33 = vpack.c.bf16 %v867_v30, %v867_v30  ;;  %1143 = vst.msk [vmem:[%s1701_s16 + $0xb8] sm:$0xf] %vm1096_vm0, %v1377_v31  ;;  %v1378_v34 = vpack.c.bf16 %v893_v32, %v893_v32 }
 0x171   : > { %v735_v35 = vpop.f32.mrb[44].mxu0  ;;  %v839_v36 = vpop.f32.mrb[44].mxu1 }
 0x172   : > { %1118 = vst.msk [vmem:[%s1701_s16 + $0x54] sm:$0xf] %vm1096_vm0, %v1352_v33  ;;  %1144 = vst.msk [vmem:[%s1701_s16 + $0xbc] sm:$0xf] %vm1096_vm0, %v1378_v34  ;;  %v736_v37 = vadd.f32 %v1691_v3, %v735_v35  ;;  %v737_v38 = vpop.f32.mrb[45].mxu0  ;;  %v840_v39 = vadd.f32 %v1691_v3, %v839_v36  ;;  %v841_v40 = vpop.f32.mrb[45].mxu1 }
 0x173   : > { %v738_v41 = vpop.f32.mrb[46].mxu0  ;;  %v842_v42 = vpop.f32.mrb[46].mxu1 }
 0x174   : > { %v868_v43 = vmax.f32 %v736_v37, 0.0  ;;  %v739_v44 = vadd.f32 %v1691_v3, %v738_v41  ;;  %v740_v45 = vpop.f32.mrb[47].mxu0  ;;  %v894_v46 = vmax.f32 %v840_v39, 0.0  ;;  %v843_v47 = vadd.f32 %v1691_v3, %v842_v42  ;;  %v844_v48 = vpop.f32.mrb[47].mxu1 }
 0x176   : > { %v1353_v49 = vpack.c.bf16 %v868_v43, %v868_v43  ;;  %v869_v50 = vmax.f32 %v739_v44, 0.0  ;;  %v1379_v51 = vpack.c.bf16 %v894_v46, %v894_v46  ;;  %v895_v52 = vmax.f32 %v843_v47, 0.0 }
 0x178   : > { %1119 = vst.msk [vmem:[%s1701_s16 + $0x58] sm:$0xf] %vm1096_vm0, %v1353_v49  ;;  %v1354_v53 = vpack.c.bf16 %v869_v50, %v869_v50  ;;  %1145 = vst.msk [vmem:[%s1701_s16 + $0xc0] sm:$0xf] %vm1096_vm0, %v1379_v51  ;;  %v1380_v54 = vpack.c.bf16 %v895_v52, %v895_v52 }
 0x179   : > { %v743_v55 = vpop.f32.mrb[48].mxu0 }
 0x17a   : > { %1120 = vst.msk [vmem:[%s1701_s16 + $0x5c] sm:$0xf] %vm1096_vm0, %v1354_v53  ;;  %1146 = vst.msk [vmem:[%s1701_s16 + $0xc4] sm:$0xf] %vm1096_vm0, %v1380_v54  ;;  %v744_v56 = vadd.f32 %v1691_v3, %v743_v55  ;;  %v745_v57 = vpop.f32.mrb[49].mxu0 }
 0x17b   : > { %v746_v58 = vpop.f32.mrb[50].mxu0 }
 0x17c   : > { %v870_v59 = vmax.f32 %v744_v56, 0.0  ;;  %v747_v60 = vadd.f32 %v1691_v3, %v746_v58  ;;  %v748_v61 = vpop.f32.mrb[51].mxu0 }
 0x17e   : > { %v1355_v62 = vpack.c.bf16 %v870_v59, %v870_v59  ;;  %v871_v63 = vmax.f32 %v747_v60, 0.0 }
 0x180   : > { %1121 = vst.msk [vmem:[%s1701_s16 + $0x60] sm:$0xf] %vm1096_vm0, %v1355_v62  ;;  %v1356_v0 = vpack.c.bf16 %v871_v63, %v871_v63 }
 0x182   : > { %1122 = vst.msk [vmem:[%s1701_s16 + $0x64] sm:$0xf] %vm1096_vm0, %v1356_v0 }
 0x183 PF: > { %s13_s12 = sadd.s32 1, %s1519_s12  }
 0x184   : > { %p10_p4 = scmp.ge.s32.totalorder %s13_s12, 4  }
 0x186   :  { %12 = sbr.rel (!%p10_p4) target bundleno = 1 (0x1), region = 62 }

// kernel: conv_q_forward.4
= control target key start
LH: loop header
LB: loop body
LE: loop exit
PB: predicated region body
PF: predicated region fallthrough
CT: control target
= control target key end

     0   :  { %s1157_s12 = smov 0   ;;  %s1340_s0 = inlined_call_operand.vmem [shape: bf16[176,512], index: 0, kind: input, shape index: {}]   ;;  %s1341_s1 = inlined_call_operand.vmem [shape: bf16[512,64], index: 1, kind: input, shape index: {}]   ;;  %s1342_s2 = inlined_call_operand.vmem [shape: f32[1,64], index: 2, kind: input, shape index: {}]   ;;  %s1343_s3 = inlined_call_operand.vmem [shape: bf16[176,64], index: 3, kind: output, shape index: {}]  }
   0x1 LB: > { %s861_s13 = sadd.s32 4294967295, %s1135_s12   ;;  %p865_p0 = scmp.ge.s32.totalorder %s1135_s12, 1  ;;  %s1135_s12 = sphi %s1157_s12, %s13_s12  }
   0x2   : > { %p139_p1 = scmp.lt.s32.totalorder %s1135_s12, 3 }
   0x4   : > { %p140_p2 = pnand %p865_p0, %p139_p1 }
   0x5   : > { %v1063_v0 = vld [vmem:[%s1341_s1 + $0x40] sm:$0xff] (!%p140_p2)   ;;  %v1067_v4 = vld [vmem:[%s1341_s1 + $0x48] sm:$0xff] (!%p140_p2)   ;;  %v1071_v8 = vld [vmem:[%s1341_s1 + $0x50] sm:$0xff] (!%p140_p2)   ;;  %s164_s19 = smul.u32 (!%p140_p2), 11, %s861_s13  ;;  %vm793_vm0 = vcmask (!%p140_p2), 519168  }
   0x6   : > { %143 = sbr.rel (%p140_p2) target bundleno = 303 (0x12f), region = 32  ;;  %v1064_v1 = vld [vmem:[%s1341_s1 + $0xc0] sm:$0xff] (!%p140_p2)   ;;  %951 = vmatprep.subr.bf16.mxu0 (!%p140_p2), %v1063_v0  ;;  %v1068_v5 = vld [vmem:[%s1341_s1 + $0xc8] sm:$0xff] (!%p140_p2)   ;;  %v1072_v9 = vld [vmem:[%s1341_s1 + $0xd0] sm:$0xff] (!%p140_p2)  }
   0x7   : > { %v1065_v2 = vld [vmem:[%s1341_s1] sm:$0xff] (!%p140_p2)   ;;  %1003 = vmatprep.subr.bf16.mxu1 (!%p140_p2), %v1064_v1  ;;  %v1069_v6 = vld [vmem:[%s1341_s1 + $0x8] sm:$0xff] (!%p140_p2)   ;;  %v1073_v10 = vld [vmem:[%s1341_s1 + $0x10] sm:$0xff] (!%p140_p2)   ;;  %p165_p3 = scmp.lt.s32.totalorder (!%p140_p2), %s164_s19, 21 }
   0x8   : > { %v1066_v3 = vld [vmem:[%s1341_s1 + $0x80] sm:$0xff] (!%p140_p2)   ;;  %952 = vmatpush3.bf16.msra.mxu0 (!%p140_p2), %v1065_v2  ;;  %v1070_v7 = vld [vmem:[%s1341_s1 + $0x88] sm:$0xff] (!%p140_p2)   ;;  %v1074_v11 = vld [vmem:[%s1341_s1 + $0x90] sm:$0xff] (!%p140_p2)  }
   0x9   : > { %1004 = vmatpush3.bf16.msra.mxu1 (!%p140_p2), %v1066_v3  ;;  %953 = vmatprep.subr.bf16.mxu0 (!%p140_p2), %v1067_v4  ;;  %v1075_v12 = vld [vmem:[%s1341_s1 + $0x58] sm:$0xff] (!%p140_p2)   ;;  %v1079_v16 = vld [vmem:[%s1341_s1 + $0x60] sm:$0xff] (!%p140_p2)   ;;  %v1083_v20 = vld [vmem:[%s1341_s1 + $0x68] sm:$0xff] (!%p140_p2)  }
   0xa   : > { %1005 = vmatprep.subr.bf16.mxu1 (!%p140_p2), %v1068_v5  ;;  %v1076_v13 = vld [vmem:[%s1341_s1 + $0xd8] sm:$0xff] (!%p140_p2)   ;;  %v1080_v17 = vld [vmem:[%s1341_s1 + $0xe0] sm:$0xff] (!%p140_p2)   ;;  %v1084_v21 = vld [vmem:[%s1341_s1 + $0xe8] sm:$0xff] (!%p140_p2)  }
   0xb   : > { %v1077_v14 = vld [vmem:[%s1341_s1 + $0x18] sm:$0xff] (!%p140_p2)   ;;  %v1081_v18 = vld [vmem:[%s1341_s1 + $0x20] sm:$0xff] (!%p140_p2)   ;;  %v1085_v22 = vld [vmem:[%s1341_s1 + $0x28] sm:$0xff] (!%p140_p2)  }
   0xc   : > { %954 = vmatpush3.bf16.msra.mxu0 (!%p140_p2), %v1069_v6  ;;  %v1078_v15 = vld [vmem:[%s1341_s1 + $0x98] sm:$0xff] (!%p140_p2)   ;;  %v1082_v19 = vld [vmem:[%s1341_s1 + $0xa0] sm:$0xff] (!%p140_p2)   ;;  %v1086_v23 = vld [vmem:[%s1341_s1 + $0xa8] sm:$0xff] (!%p140_p2)  }
   0xd   : > { %1006 = vmatpush3.bf16.msra.mxu1 %v1070_v7  ;;  %955 = vmatprep.subr.bf16.mxu0 %v1071_v8  ;;  %s1345_s19 = smov (!%p165_p3, %s164_s19), 21  ;;  %v1087_v24 = vld [vmem:[%s1341_s1 + $0x70] sm:$0xff]   ;;  %v1091_v28 = vld [vmem:[%s1341_s1 + $0x78] sm:$0xff]   ;;  %v1296_v60 = vld [vmem:[%s1342_s2] ss:$0 sm:$0xff] }
   0xe   : > { %1007 = vmatprep.subr.bf16.mxu1 %v1072_v9  ;;  %v1088_v25 = vld [vmem:[%s1341_s1 + $0xf0] sm:$0xff]   ;;  %s939_s18 = sshll.u32 %s1345_s19, 4  ;;  %v1092_v29 = vld [vmem:[%s1341_s1 + $0xf8] sm:$0xff]   ;;  %s868_s7 = sshll.u32 %s1345_s19, 2 }
   0xf   : > { %v1089_v26 = vld [vmem:[%s1341_s1 + $0x30] sm:$0xff]   ;;  %s1263_s13 = scalar_lea.vmem %s1340_s0, %s939_s18  ;;  %v1093_v30 = vld [vmem:[%s1341_s1 + $0x38] sm:$0xff]   ;;  %s1304_s10 = scalar_lea.vmem %s1343_s3, %s868_s7 }
  0x10   : > { %956 = vmatpush3.bf16.msra.mxu0 %v1073_v10  ;;  %v1090_v27 = vld [vmem:[%s1341_s1 + $0xb0] sm:$0xff]   ;;  %v1094_v31 = vld [vmem:[%s1341_s1 + $0xb8] sm:$0xff]   ;;  %v198_v50 = vld [vmem:[%s1263_s13 + $0xa0] sm:$0xff] }
  0x11   : > { %1008 = vmatpush3.bf16.msra.mxu1 %v1074_v11  ;;  %957 = vmatprep.subr.bf16.mxu0 %v1075_v12  ;;  %v1095_v32 = vld [vmem:[%s1263_s13] ss:$16 sps:$4 sm:$0xff]   ;;  %v1097_v33 = vld [vmem:[%s1263_s13 + $0x4] ss:$16 sps:$4 sm:$0xff]   ;;  %v1098_v34 = vld [vmem:[%s1263_s13 + $0x8] ss:$16 sps:$4 sm:$0xff]   ;;  %v891_v54 = vcombine.high %v198_v50, %v198_v50  ;;  %v890_v56 = vcombine.low %v198_v50, %v198_v50 }
  0x12   : > { %1009 = vmatprep.subr.bf16.mxu1 %v1076_v13  ;;  %v1100_v35 = vld [vmem:[%s1263_s13 + $0xc] ss:$16 sps:$4 sm:$0xff]   ;;  %609 = vmatprep.mubr.bf16.mxu0 %v1097_v33  ;;  %v1101_v36 = vld [vmem:[%s1263_s13 + $0x24] ss:$16 sps:$4 sm:$0xff]   ;;  %v1105_v38 = vld [vmem:[%s1263_s13 + $0x20] ss:$16 sps:$4 sm:$0xff]  }
  0x13   : > { %689 = vmatprep.mubr.bf16.mxu1 %v1100_v35  ;;  %v1103_v37 = vld [vmem:[%s1263_s13 + $0x2c] ss:$16 sps:$4 sm:$0xff]   ;;  %v1106_v39 = vld [vmem:[%s1263_s13 + $0x28] ss:$16 sps:$4 sm:$0xff]   ;;  %v1107_v40 = vld [vmem:[%s1263_s13 + $0x44] ss:$16 sps:$4 sm:$0xff]  }
  0x14   : > { %958 = vmatpush3.bf16.msra.mxu0 %v1077_v14  ;;  %v1109_v41 = vld [vmem:[%s1263_s13 + $0x4c] ss:$16 sps:$4 sm:$0xff]   ;;  %v1111_v42 = vld [vmem:[%s1263_s13 + $0x40] ss:$16 sps:$4 sm:$0xff]   ;;  %v1112_v43 = vld [vmem:[%s1263_s13 + $0x48] ss:$16 sps:$4 sm:$0xff]  }
  0x15   : > { %1010 = vmatpush3.bf16.msra.mxu1 %v1078_v15  ;;  %959 = vmatprep.subr.bf16.mxu0 %v1079_v16  ;;  %v1113_v44 = vld [vmem:[%s1263_s13 + $0x64] ss:$16 sps:$4 sm:$0xff]   ;;  %v1115_v45 = vld [vmem:[%s1263_s13 + $0x6c] ss:$16 sps:$4 sm:$0xff]   ;;  %v1117_v46 = vld [vmem:[%s1263_s13 + $0x60] ss:$16 sps:$4 sm:$0xff]  }
  0x16   : > { %1011 = vmatprep.subr.bf16.mxu1 %v1080_v17  ;;  %v1118_v47 = vld [vmem:[%s1263_s13 + $0x68] ss:$16 sps:$4 sm:$0xff]   ;;  %v1119_v48 = vld [vmem:[%s1263_s13 + $0x84] ss:$16 sps:$4 sm:$0xff]   ;;  %v1121_v49 = vld [vmem:[%s1263_s13 + $0x8c] ss:$16 sps:$4 sm:$0xff]  }
  0x17   : > { %v199_v51 = vld [vmem:[%s1263_s13 + $0xa8] sm:$0xff]  ;;  %v1123_v52 = vld [vmem:[%s1263_s13 + $0x80] ss:$16 sps:$4 sm:$0xff]  }
  0x18   : > { %960 = vmatpush3.bf16.msra.mxu0 %v1081_v18  ;;  %v1124_v53 = vld [vmem:[%s1263_s13 + $0x88] ss:$16 sps:$4 sm:$0xff]   ;;  %v893_v55 = vcombine.high %v199_v51, %v199_v51  ;;  %v892_v57 = vcombine.low %v199_v51, %v199_v51 }
  0x19   : > { %1012 = vmatpush3.bf16.msra.mxu1 %v1082_v19  ;;  %961 = vmatprep.subr.bf16.mxu0 %v1083_v20 }
  0x1a   : > { %1013 = vmatprep.subr.bf16.mxu1 %v1084_v21 }
  0x1c   : > { %962 = vmatpush3.bf16.msra.mxu0 %v1085_v22 }
  0x1d   : > { %1014 = vmatpush3.bf16.msra.mxu1 %v1086_v23  ;;  %963 = vmatprep.subr.bf16.mxu0 %v1087_v24 }
  0x1e   : > { %1015 = vmatprep.subr.bf16.mxu1 %v1088_v25 }
  0x20   : > { %964 = vmatpush3.bf16.msra.mxu0 %v1089_v26 }
  0x21   : > { %1016 = vmatpush3.bf16.msra.mxu1 %v1090_v27  ;;  %965 = vmatprep.subr.bf16.mxu0 %v1091_v28 }
  0x22   : > { %1017 = vmatprep.subr.bf16.mxu1 %v1092_v29 }
  0x24   : > { %966 = vmatpush3.bf16.msra.mxu0 %v1093_v30 }
  0x25   : > { %1018 = vmatpush3.bf16.msra.mxu1 %v1094_v31 }
  0x27   : > { %610 = vmatmul.mubr.bf16.vlgmr.msra.gmra.mrb[0].mxu0 %v1095_v32 }
  0x28   : > { %690 = vmatmul.mubr.bf16.vlgmr.msra.gmra.mrb[0].mxu1 %v1098_v34  ;;  %617 = vmatprep.mubr.bf16.mxu0 %v1101_v36 }
  0x29   : > { %697 = vmatprep.mubr.bf16.mxu1 %v1103_v37 }
  0x2f   : > { %618 = vmatmul.mubr.bf16.gmra.mrb[4].mxu0 %v1105_v38 }
  0x30   : > { %698 = vmatmul.mubr.bf16.gmra.mrb[4].mxu1 %v1106_v39  ;;  %625 = vmatprep.mubr.bf16.mxu0 %v1107_v40 }
  0x31   : > { %705 = vmatprep.mubr.bf16.mxu1 %v1109_v41 }
  0x37   : > { %626 = vmatmul.mubr.bf16.gmra.mrb[8].mxu0 %v1111_v42 }
  0x38   : > { %706 = vmatmul.mubr.bf16.gmra.mrb[8].mxu1 %v1112_v43  ;;  %633 = vmatprep.mubr.bf16.mxu0 %v1113_v44 }
  0x39   : > { %713 = vmatprep.mubr.bf16.mxu1 %v1115_v45 }
  0x3f   : > { %634 = vmatmul.mubr.bf16.gmra.mrb[12].mxu0 %v1117_v46 }
  0x40   : > { %714 = vmatmul.mubr.bf16.gmra.mrb[12].mxu1 %v1118_v47  ;;  %641 = vmatprep.mubr.bf16.mxu0 %v1119_v48 }
  0x41   : > { %721 = vmatprep.mubr.bf16.mxu1 %v1121_v49 }
  0x47   : > { %642 = vmatmul.mubr.bf16.gmra.mrb[16].mxu0 %v1123_v52 }
  0x48   : > { %722 = vmatmul.mubr.bf16.gmra.mrb[16].mxu1 %v1124_v53  ;;  %649 = vmatprep.mubr.bf16.mxu0 %v891_v54 }
  0x49   : > { %729 = vmatprep.mubr.bf16.mxu1 %v893_v55 }
  0x4f   : > { %650 = vmatmul.mubr.bf16.gmra.mrb[20].mxu0 %v890_v56 }
  0x50   : > { %730 = vmatmul.mubr.bf16.gmra.mrb[20].mxu1 %v892_v57 }
  0xfa   : > { %v967_v58 = vpop.f32.mrb[0].mxu0 }
  0xfb   : > { %v1019_v59 = vpop.f32.mrb[0].mxu1  ;;  %v968_v61 = vpop.f32.mrb[1].mxu0 }
  0xfc   : > { %v969_v62 = vadd.f32 %v968_v61, %v967_v58  ;;  %v1020_v63 = vpop.f32.mrb[1].mxu1  ;;  %v970_v0 = vpop.f32.mrb[2].mxu0 }
  0xfd   : > { %v1021_v1 = vadd.f32 %v1020_v63, %v1019_v59  ;;  %v1022_v2 = vpop.f32.mrb[2].mxu1  ;;  %v971_v3 = vpop.f32.mrb[3].mxu0 }
  0xfe   : > { %v612_v4 = vadd.f32 %v969_v62, %v1296_v60  ;;  %v972_v5 = vadd.f32 %v971_v3, %v970_v0  ;;  %v1023_v6 = vpop.f32.mrb[3].mxu1 }
  0xff   : > { %v1024_v7 = vadd.f32 %v1023_v6, %v1022_v2 }
 0x100   : > { %v692_v8 = vadd.f32 %v1021_v1, %v612_v4  ;;  %v615_v9 = vadd.f32 %v972_v5, %v1296_v60 }
 0x102   : > { %v737_v10 = vmax.f32 %v692_v8, 0.0  ;;  %v695_v11 = vadd.f32 %v1024_v7, %v615_v9  ;;  %v973_v12 = vpop.f32.mrb[4].mxu0 }
 0x103   : > { %v1025_v13 = vpop.f32.mrb[4].mxu1  ;;  %v974_v14 = vpop.f32.mrb[5].mxu0 }
 0x104   : > { %v940_v15 = vpack.c.bf16 %v737_v10, %v737_v10  ;;  %v738_v16 = vmax.f32 %v695_v11, 0.0  ;;  %v975_v17 = vadd.f32 %v974_v14, %v973_v12  ;;  %v1026_v18 = vpop.f32.mrb[5].mxu1  ;;  %v976_v19 = vpop.f32.mrb[6].mxu0 }
 0x105   : > { %v1027_v20 = vadd.f32 %v1026_v18, %v1025_v13  ;;  %v1028_v21 = vpop.f32.mrb[6].mxu1  ;;  %v977_v22 = vpop.f32.mrb[7].mxu0 }
 0x106   : > { %794 = vst.msk [vmem:[%s1304_s10] sm:$0xf] %vm793_vm0, %v940_v15  ;;  %v941_v23 = vpack.c.bf16 %v738_v16, %v738_v16  ;;  %v620_v24 = vadd.f32 %v975_v17, %v1296_v60  ;;  %v978_v25 = vadd.f32 %v977_v22, %v976_v19  ;;  %v1029_v26 = vpop.f32.mrb[7].mxu1 }
 0x107   : > { %v1030_v27 = vadd.f32 %v1029_v26, %v1028_v21 }
 0x108   : > { %795 = vst.msk [vmem:[%s1304_s10 + $0x4] sm:$0xf] %vm793_vm0, %v941_v23  ;;  %v700_v28 = vadd.f32 %v1027_v20, %v620_v24  ;;  %v623_v29 = vadd.f32 %v978_v25, %v1296_v60 }
 0x10a   : > { %v739_v30 = vmax.f32 %v700_v28, 0.0  ;;  %v703_v31 = vadd.f32 %v1030_v27, %v623_v29  ;;  %v979_v32 = vpop.f32.mrb[8].mxu0 }
 0x10b   : > { %v1031_v33 = vpop.f32.mrb[8].mxu1  ;;  %v980_v34 = vpop.f32.mrb[9].mxu0 }
 0x10c   : > { %v942_v35 = vpack.c.bf16 %v739_v30, %v739_v30  ;;  %v740_v36 = vmax.f32 %v703_v31, 0.0  ;;  %v981_v37 = vadd.f32 %v980_v34, %v979_v32  ;;  %v1032_v38 = vpop.f32.mrb[9].mxu1  ;;  %v982_v39 = vpop.f32.mrb[10].mxu0 }
 0x10d   : > { %v1033_v40 = vadd.f32 %v1032_v38, %v1031_v33  ;;  %v1034_v41 = vpop.f32.mrb[10].mxu1  ;;  %v983_v42 = vpop.f32.mrb[11].mxu0 }
 0x10e   : > { %796 = vst.msk [vmem:[%s1304_s10 + $0x8] sm:$0xf] %vm793_vm0, %v942_v35  ;;  %v943_v43 = vpack.c.bf16 %v740_v36, %v740_v36  ;;  %v628_v44 = vadd.f32 %v981_v37, %v1296_v60  ;;  %v984_v45 = vadd.f32 %v983_v42, %v982_v39  ;;  %v1035_v46 = vpop.f32.mrb[11].mxu1 }
 0x10f   : > { %v1036_v47 = vadd.f32 %v1035_v46, %v1034_v41 }
 0x110   : > { %797 = vst.msk [vmem:[%s1304_s10 + $0xc] sm:$0xf] %vm793_vm0, %v943_v43  ;;  %v708_v48 = vadd.f32 %v1033_v40, %v628_v44  ;;  %v631_v49 = vadd.f32 %v984_v45, %v1296_v60 }
 0x112   : > { %v741_v50 = vmax.f32 %v708_v48, 0.0  ;;  %v711_v51 = vadd.f32 %v1036_v47, %v631_v49  ;;  %v985_v52 = vpop.f32.mrb[12].mxu0 }
 0x113   : > { %v1037_v53 = vpop.f32.mrb[12].mxu1  ;;  %v986_v54 = vpop.f32.mrb[13].mxu0 }
 0x114   : > { %v944_v55 = vpack.c.bf16 %v741_v50, %v741_v50  ;;  %v742_v56 = vmax.f32 %v711_v51, 0.0  ;;  %v987_v57 = vadd.f32 %v986_v54, %v985_v52  ;;  %v1038_v58 = vpop.f32.mrb[13].mxu1  ;;  %v988_v59 = vpop.f32.mrb[14].mxu0 }
 0x115   : > { %v1039_v61 = vadd.f32 %v1038_v58, %v1037_v53  ;;  %v1040_v62 = vpop.f32.mrb[14].mxu1  ;;  %v989_v63 = vpop.f32.mrb[15].mxu0 }
 0x116   : > { %798 = vst.msk [vmem:[%s1304_s10 + $0x10] sm:$0xf] %vm793_vm0, %v944_v55  ;;  %v945_v0 = vpack.c.bf16 %v742_v56, %v742_v56  ;;  %v636_v1 = vadd.f32 %v987_v57, %v1296_v60  ;;  %v990_v2 = vadd.f32 %v989_v63, %v988_v59  ;;  %v1041_v3 = vpop.f32.mrb[15].mxu1 }
 0x117   : > { %v1042_v4 = vadd.f32 %v1041_v3, %v1040_v62 }
 0x118   : > { %799 = vst.msk [vmem:[%s1304_s10 + $0x14] sm:$0xf] %vm793_vm0, %v945_v0  ;;  %v716_v5 = vadd.f32 %v1039_v61, %v636_v1  ;;  %v639_v6 = vadd.f32 %v990_v2, %v1296_v60 }
 0x11a   : > { %v743_v7 = vmax.f32 %v716_v5, 0.0  ;;  %v719_v8 = vadd.f32 %v1042_v4, %v639_v6  ;;  %v991_v9 = vpop.f32.mrb[16].mxu0 }
 0x11b   : > { %v1043_v10 = vpop.f32.mrb[16].mxu1  ;;  %v992_v11 = vpop.f32.mrb[17].mxu0 }
 0x11c   : > { %v946_v12 = vpack.c.bf16 %v743_v7, %v743_v7  ;;  %v744_v13 = vmax.f32 %v719_v8, 0.0  ;;  %v993_v14 = vadd.f32 %v992_v11, %v991_v9  ;;  %v1044_v15 = vpop.f32.mrb[17].mxu1  ;;  %v994_v16 = vpop.f32.mrb[18].mxu0 }
 0x11d   : > { %v1045_v17 = vadd.f32 %v1044_v15, %v1043_v10  ;;  %v1046_v18 = vpop.f32.mrb[18].mxu1  ;;  %v995_v19 = vpop.f32.mrb[19].mxu0 }
 0x11e   : > { %800 = vst.msk [vmem:[%s1304_s10 + $0x18] sm:$0xf] %vm793_vm0, %v946_v12  ;;  %v947_v20 = vpack.c.bf16 %v744_v13, %v744_v13  ;;  %v644_v21 = vadd.f32 %v993_v14, %v1296_v60  ;;  %v996_v22 = vadd.f32 %v995_v19, %v994_v16  ;;  %v1047_v23 = vpop.f32.mrb[19].mxu1 }
 0x11f   : > { %v1048_v24 = vadd.f32 %v1047_v23, %v1046_v18 }
 0x120   : > { %801 = vst.msk [vmem:[%s1304_s10 + $0x1c] sm:$0xf] %vm793_vm0, %v947_v20  ;;  %v724_v25 = vadd.f32 %v1045_v17, %v644_v21  ;;  %v647_v26 = vadd.f32 %v996_v22, %v1296_v60 }
 0x122   : > { %v745_v27 = vmax.f32 %v724_v25, 0.0  ;;  %v727_v28 = vadd.f32 %v1048_v24, %v647_v26  ;;  %v997_v29 = vpop.f32.mrb[20].mxu0 }
 0x123   : > { %v1049_v30 = vpop.f32.mrb[20].mxu1  ;;  %v998_v31 = vpop.f32.mrb[21].mxu0 }
 0x124   : > { %v948_v32 = vpack.c.bf16 %v745_v27, %v745_v27  ;;  %v746_v33 = vmax.f32 %v727_v28, 0.0  ;;  %v999_v34 = vadd.f32 %v998_v31, %v997_v29  ;;  %v1050_v35 = vpop.f32.mrb[21].mxu1  ;;  %v1000_v36 = vpop.f32.mrb[22].mxu0 }
 0x125   : > { %v1051_v37 = vadd.f32 %v1050_v35, %v1049_v30  ;;  %v1052_v38 = vpop.f32.mrb[22].mxu1  ;;  %v1001_v39 = vpop.f32.mrb[23].mxu0 }
 0x126   : > { %802 = vst.msk [vmem:[%s1304_s10 + $0x20] sm:$0xf] %vm793_vm0, %v948_v32  ;;  %v949_v40 = vpack.c.bf16 %v746_v33, %v746_v33  ;;  %v652_v41 = vadd.f32 %v999_v34, %v1296_v60  ;;  %v1053_v42 = vpop.f32.mrb[23].mxu1 }
 0x128   : > { %803 = vst.msk [vmem:[%s1304_s10 + $0x24] sm:$0xf] %vm793_vm0, %v949_v40  ;;  %v732_v43 = vadd.f32 %v1051_v37, %v652_v41 }
 0x12a   : > { %v747_v44 = vmax.f32 %v732_v43, 0.0 }
 0x12c   : > { %v950_v45 = vpack.c.bf16 %v747_v44, %v747_v44 }
 0x12e   : > { %804 = vst.msk [vmem:[%s1304_s10 + $0x28] sm:$0xf] %vm793_vm0, %v950_v45 }
 0x12f PF: > { %s13_s12 = sadd.s32 1, %s1135_s12  }
 0x130   : > { %p10_p4 = scmp.ge.s32.totalorder %s13_s12, 4  }
 0x132   :  { %12 = sbr.rel (!%p10_p4) target bundleno = 1 (0x1), region = 62 }

// kernel: conv_q_forward.5
= control target key start
LH: loop header
LB: loop body
LE: loop exit
PB: predicated region body
PF: predicated region fallthrough
CT: control target
= control target key end

     0   :  { %12 = vsyncpa [#allocation4], 0  ;;  %s6748_s0 = inlined_call_operand.vmem [shape: bf16[2,56,576], index: 0, kind: input, shape index: {}]   ;;  %s6749_s1 = inlined_call_operand.vmem [shape: bf16[576,64], index: 1, kind: input, shape index: {}]   ;;  %s6750_s2 = inlined_call_operand.vmem [shape: f32[1,64], index: 2, kind: input, shape index: {}]   ;;  %s6751_s3 = inlined_call_operand.vmem [shape: bf16[3584,512], index: 3, kind: input, shape index: {}]   ;;  %s6752_s4 = inlined_call_operand.vmem [shape: f32[1,512], index: 4, kind: input, shape index: {}]   ;;  %s6753_s5 = inlined_call_operand.vmem [shape: bf16[512,128], index: 5, kind: input, shape index: {}]   ;;  %s6754_s6 = inlined_call_operand.vmem [shape: f32[1,128], index: 6, kind: input, shape index: {}]   ;;  %s6755_s7 = inlined_call_operand.hbm [shape: f32[2,1,128], index: 7, kind: output, shape index: {}]  }
   0x1   :  { %14 = vsyncpa [#allocation4 + $0x1], 0  ;;  %s5441_s24 = smov 0   ;;  %s5443_s25 = smov 0  }
   0x2   :  { %s5445_s26 = smov 0   ;;  %s5447_s27 = smov 0  }
   0x3   :  { %s5449_s28 = smov 0   ;;  %s5451_s29 = smov 0  }
   0x4   :  { %s5453_s30 = smov 0   ;;  %s5455_s8 = smov 0  }
   0x5 LB: > { %6761 = sst [smem:[#allocation6_spill]] %s5373_s26  ;;  %s4042_s9 = sadd.s32 4294967295, %s5393_s8   ;;  %s5393_s8 = sphi %s5455_s8, %s20_s8   ;;  %s5389_s30 = sphi %s5453_s30, %s6778_s30   ;;  %s5385_s29 = sphi %s5451_s29, %s6777_s29   ;;  %s5381_s28 = sphi %s5449_s28, %s6776_s28   ;;  %s5377_s27 = sphi %s5447_s27, %s6775_s27   ;;  %s5373_s26 = sphi %s5445_s26, %s6774_s26   ;;  %s5369_s25 = sphi %s5443_s25, %s6780_s25   ;;  %s5365_s24 = sphi %s5441_s24, %s6779_s24  }
   0x6   : > { %6762 = sst [smem:[#allocation7_spill]] %s5385_s29  ;;  %s4043_s10 = sadd.s32 4294967294, %s5393_s8  }
   0x7   : > { %6763 = sst [smem:[#allocation8_spill]] %s5389_s30  ;;  %s29_s11 = sadd.s32 1, %s5385_s29 }
   0x8   : > { %p30_p0 = scmp.ge.s32.totalorder %s29_s11, 7  ;;  %s32_s12 = sadd.s32 1, %s5389_s30 }
   0x9   : > { %p208_p1 = scmp.ne.s32.totalorder %s5373_s26, %s5369_s25  ;;  %p209_p2 = scmp.eq.s32.totalorder %s4042_s9, 13 }
   0xa   : > { %s6782_s11 = smov (%p30_p0, %s29_s11), 0  ;;  %s6784_s12 = smov (!%p30_p0, %s32_s12), %s5389_s30 }
   0xb   : > { %6764 = sst [smem:[#allocation9_spill]] %s6782_s11  ;;  %p5490_p3 = por %p209_p2, %p208_p1 }
   0xc   : > { %p214_p4 = scmp.ne.s32.totalorder %s5369_s25, %s5365_s24  ;;  %p34_p5 = scmp.ge.s32.totalorder %s6784_s12, 2 }
   0xd   : > { %p215_p6 = scmp.eq.s32.totalorder %s4043_s10, 13  ;;  %p4046_p7 = scmp.ge.s32.totalorder %s5393_s8, 1 }
   0xe   : > { %p270_p8 = scmp.lt.s32.totalorder %s5393_s8, 15  ;;  %s6786_s12 = smov (%p34_p5, %s6784_s12), 0 }
   0xf   : > { %6766 = sst [smem:[#allocation10_spill]] %s6786_s12  ;;  %p5500_p9 = por %p215_p6, %p214_p4 }
  0x10   : > { %p271_p10 = pnand %p4046_p7, %p270_p8  ;;  %s195_s15 = ssub.s32 %s5389_s30, %s6786_s12 }
  0x11   : > { %s198_s16 = sadd.s32 1, %s5373_s26  ;;  %p196_p11 = scmp.eq.s32.totalorder %s195_s15, 0 }
  0x12   : > { %274 = sbr.rel (%p271_p10) target bundleno = 2661 (0xa65), region = 48  ;;  %p311_p12 = scmp.lt.s32.totalorder (!%p271_p10), %s5381_s28, 1 }
  0x13   : > { %s5508_s17 = scalar_select %p196_p11, %s5373_s26, %s198_s16  }
  0x14   : > { %p313_p13 = scmp.lt.s32.totalorder (!%p271_p10), %s5377_s27, 6  ;;  %s4048_s22 = sshll.u32 (!%p271_p10), %s5377_s27, 6 }
  0x15   : > { %6768 = sst [smem:[#allocation11_spill]] %s5508_s17  ;;  %p321_p0 = scmp.lt.s32.totalorder (!%p271_p10), %s4048_s22, 447 }
  0x16   : > { %s6769_s17 = sand.u32 (!%p271_p10), 1, %s5369_s25   ;;  %p4051_p1 = scmp.ne.s32.totalorder (!%p271_p10), %s5377_s27, 0 }
  0x17   : > { %s5528_s26 = scalar_lea.vmem (!%p271_p10), [#allocation3], %s6769_s17 }
  0x19   : > { %s312_s19 = scalar_select %p311_p12, %s5381_s28, 1 }
  0x1a   : > { %s314_s20 = scalar_select %p313_p13, %s5377_s27, 6 }
  0x1b   : > { %s4850_s21 = smul.u32 35, %s312_s19  ;;  %s6788_s22 = smov (!%p321_p0, %s4048_s22), 447  ;;  %v332_v0 = vlaneseq (!%p4051_p1)  ;;  %v5395_v1 = vmov (!%p4051_p1), 0.0  }
  0x1c   : > { %s4849_s23 = smul.u32 5, %s314_s20  ;;  %s4316_s11 = sshll.u32 %s6788_s22, 4 }
  0x1d   : > { %s5524_s18 = scalar_lea.vmem %s6751_s3, %s4316_s11  ;;  %331 = sbr.rel (%p4051_p1) target bundleno = 36 (0x24), region = 52  ;;  %vm334_vm0 = vcmp.lt.s32.totalorder (!%p4051_p1), %v332_v0, 512 }
  0x1e   : > { %s317_s9 = sadd.s32 %s4850_s21, %s4849_s23  ;;  %336 = vst.msk [vmem:[#allocation2] sm:$0xf] (!%p4051_p1), %vm334_vm0, %v5395_v1 }
  0x1f   : > { %s4047_s10 = sshll.u32 %s317_s9, 2 }
  0x20   : > { %s5519_s12 = scalar_lea.vmem %s6748_s0, %s4047_s10 }
  0x24 PF: > { %v5534_v2 = vld [vmem:[%s6749_s1 + $0x40] sm:$0xff]   ;;  %v5557_v6 = vld [vmem:[%s6749_s1 + $0x48] sm:$0xff]   ;;  %v5581_v10 = vld [vmem:[%s6749_s1 + $0x50] sm:$0xff]   ;;  %v5396_v37 = vmov 0.0   ;;  %vm5397_vm1 = vmmov 0   ;;  %vm647_vm2 = vcmask 523264  }
  0x25   : > { %v5539_v3 = vld [vmem:[%s6749_s1] sm:$0xff]   ;;  %4317 = vmatprep.subr.bf16.mxu0 %v5534_v2  ;;  %v5563_v7 = vld [vmem:[%s6749_s1 + $0x8] sm:$0xff]   ;;  %v5587_v11 = vld [vmem:[%s6749_s1 + $0x10] sm:$0xff]   ;;  %v5398_v62 = vmov 0   ;;  %p4280_p2 = scmp.ne.s32.totalorder %s5377_s27, 6 }
  0x26   : > { %v5545_v4 = vld [vmem:[%s6749_s1 + $0xc0] sm:$0xff]   ;;  %4318 = vmatpush3.bf16.msra.mxu0 %v5539_v3  ;;  %v5569_v8 = vld [vmem:[%s6749_s1 + $0xc8] sm:$0xff]   ;;  %v5593_v12 = vld [vmem:[%s6749_s1 + $0xd0] sm:$0xff]  }
  0x27   : > { %v5551_v5 = vld [vmem:[%s6749_s1 + $0x80] sm:$0xff]   ;;  %4339 = vmatprep.subr.bf16.mxu1 %v5545_v4  ;;  %4319 = vmatprep.subr.bf16.mxu0 %v5557_v6  ;;  %v5575_v9 = vld [vmem:[%s6749_s1 + $0x88] sm:$0xff]   ;;  %v5599_v13 = vld [vmem:[%s6749_s1 + $0x90] sm:$0xff]  }
  0x28   : > { %4340 = vmatpush3.bf16.msra.mxu1 %v5551_v5  ;;  %v5605_v14 = vld [vmem:[%s6749_s1 + $0x58] sm:$0xff]   ;;  %v5629_v18 = vld [vmem:[%s6749_s1 + $0x60] sm:$0xff]   ;;  %v5653_v22 = vld [vmem:[%s6749_s1 + $0x68] sm:$0xff]  }
  0x29   : > { %4341 = vmatprep.subr.bf16.mxu1 %v5569_v8  ;;  %v5611_v15 = vld [vmem:[%s6749_s1 + $0x18] sm:$0xff]   ;;  %v5635_v19 = vld [vmem:[%s6749_s1 + $0x20] sm:$0xff]   ;;  %v5659_v23 = vld [vmem:[%s6749_s1 + $0x28] sm:$0xff]  }
  0x2a   : > { %4320 = vmatpush3.bf16.msra.mxu0 %v5563_v7  ;;  %v5617_v16 = vld [vmem:[%s6749_s1 + $0xd8] sm:$0xff]   ;;  %v5641_v20 = vld [vmem:[%s6749_s1 + $0xe0] sm:$0xff]   ;;  %v5665_v24 = vld [vmem:[%s6749_s1 + $0xe8] sm:$0xff]  }
  0x2b   : > { %4321 = vmatprep.subr.bf16.mxu0 %v5581_v10  ;;  %v5623_v17 = vld [vmem:[%s6749_s1 + $0x98] sm:$0xff]   ;;  %v5647_v21 = vld [vmem:[%s6749_s1 + $0xa0] sm:$0xff]   ;;  %v5671_v25 = vld [vmem:[%s6749_s1 + $0xa8] sm:$0xff]  }
  0x2c   : > { %4342 = vmatpush3.bf16.msra.mxu1 %v5575_v9  ;;  %v5677_v26 = vld [vmem:[%s6749_s1 + $0x70] sm:$0xff]   ;;  %v5701_v30 = vld [vmem:[%s6749_s1 + $0x78] sm:$0xff]   ;;  %v411_v33 = vld [vmem:[%s5519_s12] sm:$0x11] }
  0x2d   : > { %4343 = vmatprep.subr.bf16.mxu1 %v5593_v12  ;;  %v5683_v27 = vld [vmem:[%s6749_s1 + $0x30] sm:$0xff]   ;;  %v5707_v31 = vld [vmem:[%s6749_s1 + $0x38] sm:$0xff]   ;;  %v4052_v34 = vcombine.low %v411_v33, %v411_v33  ;;  %v4053_v35 = vcombine.high %v411_v33, %v411_v33  ;;  %v412_v38 = vld [vmem:[%s5519_s12 + $0x8] sm:$0x11] }
  0x2e   : > { %4322 = vmatpush3.bf16.msra.mxu0 %v5587_v11  ;;  %v5689_v28 = vld [vmem:[%s6749_s1 + $0xf0] sm:$0xff]   ;;  %v5713_v32 = vld [vmem:[%s6749_s1 + $0xf8] sm:$0xff]   ;;  %v4054_v39 = vcombine.low %v412_v38, %v412_v38  ;;  %v4055_v40 = vcombine.high %v412_v38, %v412_v38  ;;  %v5728_v41 = vld [vmem:[%s6749_s1 + $0x100] sm:$0xff]  }
  0x2f   : > { %4323 = vmatprep.subr.bf16.mxu0 %v5605_v14  ;;  %v5695_v29 = vld [vmem:[%s6749_s1 + $0xb0] sm:$0xff]   ;;  %v5721_v36 = vld [vmem:[%s6749_s1 + $0xb8] sm:$0xff]   ;;  %683 = vmatprep.mubr.bf16.mxu0 %v4053_v35  ;;  %v5735_v42 = vld [vmem:[%s6749_s1 + $0x108] sm:$0xff]  }
  0x30   : > { %4344 = vmatpush3.bf16.msra.mxu1 %v5599_v13  ;;  %723 = vmatprep.mubr.bf16.mxu1 %v4055_v40  ;;  %v5743_v43 = vld [vmem:[%s6749_s1 + $0x110] sm:$0xff]   ;;  %v5750_v44 = vld [vmem:[%s6749_s1 + $0x118] sm:$0xff]   ;;  %v5780_v0 = vld [vmem:[%s6750_s2] sm:$0x1] }
  0x31   : > { %4345 = vmatprep.subr.bf16.mxu1 %v5617_v16  ;;  %v4967_v45 = vld [vmem:[%s5519_s12 + $0x10] ss:$0 sps:$4 sm:$0x11]   ;;  %v4970_v47 = vld [vmem:[%s5524_s18 + $0x4] ss:$16 sps:$4 sm:$0xff]  }
  0x32   : > { %4324 = vmatpush3.bf16.msra.mxu0 %v5611_v15  ;;  %v4968_v46 = vld [vmem:[%s5524_s18] ss:$16 sps:$4 sm:$0xff]   ;;  %v4971_v48 = vld [vmem:[%s5524_s18 + $0x8] ss:$16 sps:$4 sm:$0xff]   ;;  %v4973_v49 = vld [vmem:[%s5524_s18 + $0xc] ss:$16 sps:$4 sm:$0xff]  }
  0x33   : > { %4325 = vmatprep.subr.bf16.mxu0 %v5629_v18  ;;  %v4976_v50 = vld [vmem:[%s5524_s18 + $0x24] ss:$16 sps:$4 sm:$0xff]   ;;  %v4979_v51 = vld [vmem:[%s5524_s18 + $0x2c] ss:$16 sps:$4 sm:$0xff]   ;;  %v4974_v52 = vld [vmem:[%s5524_s18 + $0x20] ss:$16 sps:$4 sm:$0xff]  }
  0x34   : > { %4346 = vmatpush3.bf16.msra.mxu1 %v5623_v17  ;;  %v4977_v53 = vld [vmem:[%s5524_s18 + $0x28] ss:$16 sps:$4 sm:$0xff]   ;;  %v4982_v54 = vld [vmem:[%s5524_s18 + $0x44] ss:$16 sps:$4 sm:$0xff]   ;;  %v4985_v55 = vld [vmem:[%s5524_s18 + $0x4c] ss:$16 sps:$4 sm:$0xff]  }
  0x35   : > { %4347 = vmatprep.subr.bf16.mxu1 %v5641_v20  ;;  %v4980_v56 = vld [vmem:[%s5524_s18 + $0x40] ss:$16 sps:$4 sm:$0xff]   ;;  %v4983_v57 = vld [vmem:[%s5524_s18 + $0x48] ss:$16 sps:$4 sm:$0xff]   ;;  %v4988_v58 = vld [vmem:[%s5524_s18 + $0x64] ss:$16 sps:$4 sm:$0xff]  }
  0x36   : > { %4326 = vmatpush3.bf16.msra.mxu0 %v5635_v19  ;;  %v4986_v59 = vld [vmem:[%s5524_s18 + $0x60] ss:$16 sps:$4 sm:$0xff]   ;;  %v4991_v60 = vld [vmem:[%s5524_s18 + $0x6c] ss:$16 sps:$4 sm:$0xff]   ;;  %v4989_v61 = vld [vmem:[%s5524_s18 + $0x68] ss:$16 sps:$4 sm:$0xff]  }
  0x37   : > { %4327 = vmatprep.subr.bf16.mxu0 %v5653_v22 }
  0x38   : > { %4348 = vmatpush3.bf16.msra.mxu1 %v5647_v21 }
  0x39   : > { %4349 = vmatprep.subr.bf16.mxu1 %v5665_v24 }
  0x3a   : > { %4328 = vmatpush3.bf16.msra.mxu0 %v5659_v23 }
  0x3b   : > { %4329 = vmatprep.subr.bf16.mxu0 %v5677_v26 }
  0x3c   : > { %4350 = vmatpush3.bf16.msra.mxu1 %v5671_v25 }
  0x3d   : > { %4351 = vmatprep.subr.bf16.mxu1 %v5689_v28 }
  0x3e   : > { %4330 = vmatpush3.bf16.msra.mxu0 %v5683_v27 }
  0x3f   : > { %4331 = vmatprep.subr.bf16.mxu0 %v5701_v30 }
  0x40   : > { %4352 = vmatpush3.bf16.msra.mxu1 %v5695_v29 }
  0x41   : > { %4353 = vmatprep.subr.bf16.mxu1 %v5713_v32 }
  0x42   : > { %4332 = vmatpush3.bf16.msra.mxu0 %v5707_v31 }
  0x43   : > { %4753 = vmatprep.subr.bf16.mxu0 %v5396_v37 }
  0x44   : > { %4354 = vmatpush3.bf16.msra.mxu1 %v5721_v36 }
  0x45   : > { %684 = vmatmul.mubr.bf16.vlgmr.msra.gmra.mrb[0].mxu0 %v4052_v34  ;;  %872 = vmatprep.subr.bf16.mxu1 %v4970_v47 }
  0x46   : > { %4754 = vmatpush3.bf16.msra.mxu0 %v5728_v41  ;;  %4761 = vmatprep.mubr.msk.bf16.mxu0 %vm5397_vm1, %v5396_v37 }
  0x47   : > { %724 = vmatmul.mubr.bf16.vlgmr.msra.gmra.mrb[0].mxu1 %v4054_v39  ;;  %4755 = vmatprep.subr.bf16.mxu0 %v5396_v37 }
  0x48   : > { %873 = vmatpush1.bf16.msra.mxu1 %v4968_v46  ;;  %904 = vmatprep.mubr.bf16.mxu1 %v5398_v62 }
  0x49   : > { %874 = vmatprep.subr.bf16.mxu1 %v4976_v50  ;;  %v985_v50 = vld [vmem:[%s5519_s12 + $0x8] sm:$0x11] }
  0x4a   : > { %4756 = vmatpush3.bf16.msra.mxu0 %v5735_v42 }
  0x4b   : > { %4757 = vmatprep.subr.bf16.mxu0 %v5396_v37 }
  0x4c   : > { %875 = vmatpush1.bf16.msra.mxu1 %v4974_v52 }
  0x4d   : > { %876 = vmatprep.subr.bf16.mxu1 %v4982_v54 }
  0x4e   : > { %4758 = vmatpush3.bf16.msra.mxu0 %v5743_v43 }
  0x4f   : > { %4759 = vmatprep.subr.bf16.mxu0 %v5396_v37 }
  0x50   : > { %877 = vmatpush1.bf16.msra.mxu1 %v4980_v56  ;;  %v4115_v56 = vcombine.high %v985_v50, %v985_v50 }
  0x51   : > { %878 = vmatprep.subr.bf16.mxu1 %v4988_v58 }
  0x52   : > { %4760 = vmatpush3.bf16.msra.mxu0 %v5750_v44 }
  0x53   : > { %913 = vmatprep.subr.bf16.mxu0 %v4973_v49  ;;  %v984_v49 = vld [vmem:[%s5519_s12] sm:$0x11] }
  0x54   : > { %879 = vmatpush1.bf16.msra.mxu1 %v4986_v59 }
  0x55   : > { %4762 = vmatmul.mubr.msk.bf16.vlgmr.msra.gmra.mrb[4].mxu0 %vm647_vm2, %v4967_v45  ;;  %4366 = vmatprep.subr.bf16.mxu1 %v5534_v2 }
  0x56   : > { %914 = vmatpush1.bf16.msra.mxu0 %v4971_v48  ;;  %945 = vmatprep.mubr.bf16.mxu0 %v5398_v62 }
  0x57   : > { %915 = vmatprep.subr.bf16.mxu0 %v4979_v51 }
  0x5a   : > { %916 = vmatpush1.bf16.msra.mxu0 %v4977_v53 }
  0x5b   : > { %917 = vmatprep.subr.bf16.mxu0 %v4985_v55  ;;  %v4113_v55 = vcombine.high %v984_v49, %v984_v49 }
  0x5e   : > { %918 = vmatpush1.bf16.msra.mxu0 %v4983_v57 }
  0x5f   : > { %919 = vmatprep.subr.bf16.mxu0 %v4991_v60  ;;  %v1004_v60 = vshrl.u32 %v4113_v55, 16  ;;  %v5017_v55 = vld [vmem:[%s5524_s18 + $0xe4] ss:$16 sps:$4 sm:$0xff]  }
  0x62   : > { %920 = vmatpush1.bf16.msra.mxu0 %v4989_v61  ;;  %v1010_v61 = vshrl.u32 %v4115_v56, 16  ;;  %v5015_v56 = vld [vmem:[%s5524_s18 + $0xe0] ss:$16 sps:$4 sm:$0xff]  }
  0x63   : > { %4388 = vmatprep.subr.bf16.mxu0 %v5545_v4 }
 0x118   : > { %v4333_v63 = vpop.f32.mrb[0].mxu0 }
 0x119   : > { %v4334_v1 = vpop.f32.mrb[1].mxu0 }
 0x11a   : > { %v4335_v33 = vadd.f32 %v4334_v1, %v4333_v63  ;;  %v4336_v34 = vpop.f32.mrb[2].mxu0  ;;  %v4355_v35 = vpop.f32.mrb[0].mxu1  ;;  %v4112_v63 = vcombine.low %v984_v49, %v984_v49  ;;  %v4114_v1 = vcombine.low %v985_v50, %v985_v50  ;;  %v5003_v49 = vld [vmem:[%s5524_s18 + $0xa0] ss:$16 sps:$4 sm:$0xff]   ;;  %v5006_v50 = vld [vmem:[%s5524_s18 + $0xa8] ss:$16 sps:$4 sm:$0xff]  }
 0x11b   : > { %v4337_v38 = vpop.f32.mrb[3].mxu0  ;;  %v4356_v39 = vpop.f32.mrb[1].mxu1 }
 0x11c   : > { %v686_v40 = vadd.f32 %v4335_v33, %v5780_v0  ;;  %v4357_v45 = vadd.f32 %v4356_v39, %v4355_v35  ;;  %v4358_v46 = vpop.f32.mrb[2].mxu1  ;;  %v1001_v33 = vshrl.u32 %v4112_v63, 16  ;;  %v1007_v34 = vshrl.u32 %v4114_v1, 16  ;;  %v4996_v35 = vld [vmem:[%s5519_s12 + $0x10] ss:$0 sps:$4 sm:$0x11]  }
 0x11d   : > { %v4359_v47 = vpop.f32.mrb[3].mxu1  ;;  %v1013_v38 = vshrl.u32 %v4996_v35, 16  ;;  %v4997_v39 = vld [vmem:[%s5524_s18 + $0x80] ss:$16 sps:$4 sm:$0xff]   ;;  %v5002_v46 = vld [vmem:[%s5524_s18 + $0x8c] ss:$16 sps:$4 sm:$0xff]  }
 0x11e   : > { %v726_v48 = vadd.f32 %v4357_v45, %v686_v40  ;;  %v4999_v40 = vld [vmem:[%s5524_s18 + $0x84] ss:$16 sps:$4 sm:$0xff]   ;;  %v5000_v45 = vld [vmem:[%s5524_s18 + $0x88] ss:$16 sps:$4 sm:$0xff]  }
 0x11f   : > { %v5005_v47 = vld [vmem:[%s5524_s18 + $0xa4] ss:$16 sps:$4 sm:$0xff]  }
 0x128   : > { %v765_v51 = vpop.f32.mrb[4].mxu0 }
 0x129   : > { %v766_v52 = vadd.f32 %v765_v51, %v726_v48  ;;  %v4763_v53 = vpop.f32.mrb[5].mxu0  ;;  %v5008_v48 = vld [vmem:[%s5524_s18 + $0xac] ss:$16 sps:$4 sm:$0xff]   ;;  %v5011_v51 = vld [vmem:[%s5524_s18 + $0xc4] ss:$16 sps:$4 sm:$0xff]  }
 0x12a   : > { %v768_v54 = vpop.f32.mrb[6].mxu0  ;;  %v5009_v53 = vld [vmem:[%s5524_s18 + $0xc0] ss:$16 sps:$4 sm:$0xff]  }
 0x12b   : > { %v771_v57 = vmax.f32 %v766_v52, 0.0  ;;  %v4764_v58 = vpop.f32.mrb[7].mxu0  ;;  %v5014_v52 = vld [vmem:[%s5524_s18 + $0xcc] ss:$16 sps:$4 sm:$0xff]   ;;  %v5012_v54 = vld [vmem:[%s5524_s18 + $0xc8] ss:$16 sps:$4 sm:$0xff]  }
 0x12c   : > { %v5018_v58 = vld [vmem:[%s5524_s18 + $0xe8] ss:$16 sps:$4 sm:$0xff]  }
 0x12d   : > { %v772_v59 = vpack.c.bf16 %v771_v57, %v771_v57  ;;  %v5020_v57 = vld [vmem:[%s5524_s18 + $0xec] ss:$16 sps:$4 sm:$0xff]  }
 0x12f   : > { %4110 = vmatmul.mubr.msk.bf16.vlgmr.msra.gmra.mrb[4].mxu1 %vm647_vm2, %v772_v59  ;;  %4111 = vmatmul.mubr.msk.bf16.vlgmr.msra.gmra.mrb[8].mxu0 %vm647_vm2, %v772_v59  ;;  %v5399_v59 = vmov 1966171168  }
 0x130   : > { %4367 = vmatpush3.bf16.msra.mxu1 %v5539_v3  ;;  %4389 = vmatpush3.bf16.msra.mxu0 %v5551_v5 }
 0x131   : > { %4368 = vmatprep.subr.bf16.mxu1 %v5557_v6  ;;  %4390 = vmatprep.subr.bf16.mxu0 %v5569_v8 }
 0x132   : > { %1054 = vmatprep.mubr.bf16.mxu1 %v1004_v60  ;;  %1094 = vmatprep.mubr.bf16.mxu0 %v1010_v61  ;;  %v961_v60 = vunpack.c.l.s4 %v5399_v59  ;;  %v6760_v61 = vlaneseq }
 0x134   : > { %4369 = vmatpush3.bf16.msra.mxu1 %v5563_v7  ;;  %4391 = vmatpush3.bf16.msra.mxu0 %v5575_v9  ;;  %v962_v63 = vunpack.c.0.s8 %v961_v60  ;;  %v5850_v1 = vshrl.u32 %v6760_v61, 7 }
 0x135   : > { %4370 = vmatprep.subr.bf16.mxu1 %v5581_v10  ;;  %4392 = vmatprep.subr.bf16.mxu0 %v5593_v12 }
 0x136   : > { %v5853_v35 = vsub.s32 %v962_v63, %v5850_v1 }
 0x138   : > { %4371 = vmatpush3.bf16.msra.mxu1 %v5587_v11  ;;  %4393 = vmatpush3.bf16.msra.mxu0 %v5599_v13 }
 0x139   : > { %4372 = vmatprep.subr.bf16.mxu1 %v5605_v14  ;;  %4394 = vmatprep.subr.bf16.mxu0 %v5617_v16 }
 0x13c   : > { %4373 = vmatpush3.bf16.msra.mxu1 %v5611_v15  ;;  %4395 = vmatpush3.bf16.msra.mxu0 %v5623_v17 }
 0x13d   : > { %4374 = vmatprep.subr.bf16.mxu1 %v5629_v18  ;;  %4396 = vmatprep.subr.bf16.mxu0 %v5641_v20 }
 0x140   : > { %4375 = vmatpush3.bf16.msra.mxu1 %v5635_v19  ;;  %4397 = vmatpush3.bf16.msra.mxu0 %v5647_v21 }
 0x141   : > { %4376 = vmatprep.subr.bf16.mxu1 %v5653_v22  ;;  %4398 = vmatprep.subr.bf16.mxu0 %v5665_v24 }
 0x144   : > { %4377 = vmatpush3.bf16.msra.mxu1 %v5659_v23  ;;  %4399 = vmatpush3.bf16.msra.mxu0 %v5671_v25 }
 0x145   : > { %4378 = vmatprep.subr.bf16.mxu1 %v5677_v26  ;;  %4400 = vmatprep.subr.bf16.mxu0 %v5689_v28 }
 0x148   : > { %4379 = vmatpush3.bf16.msra.mxu1 %v5683_v27  ;;  %4401 = vmatpush3.bf16.msra.mxu0 %v5695_v29 }
 0x149   : > { %4380 = vmatprep.subr.bf16.mxu1 %v5701_v30  ;;  %4402 = vmatprep.subr.bf16.mxu0 %v5713_v32 }
 0x14c   : > { %4381 = vmatpush3.bf16.msra.mxu1 %v5707_v31  ;;  %4403 = vmatpush3.bf16.msra.mxu0 %v5721_v36 }
 0x14d   : > { %4765 = vmatprep.subr.bf16.mxu1 %v5396_v37  ;;  %1243 = vmatprep.subr.bf16.mxu0 %v4999_v40 }
 0x14f   : > { %1055 = vmatmul.mubr.bf16.vlgmr.msra.gmra.mrb[8].mxu1 %v1001_v33  ;;  %1095 = vmatmul.mubr.bf16.vlgmr.msra.gmra.mrb[12].mxu0 %v1007_v34 }
 0x150   : > { %4766 = vmatpush3.bf16.msra.mxu1 %v5728_v41  ;;  %4773 = vmatprep.mubr.msk.bf16.mxu1 %vm5397_vm1, %v5396_v37 }
 0x151   : > { %4767 = vmatprep.subr.bf16.mxu1 %v5396_v37  ;;  %1275 = vmatprep.mubr.bf16.mxu0 %v5398_v62 }
 0x152   : > { %1244 = vmatpush1.bf16.msra.mxu0 %v4997_v39 }
 0x153   : > { %1245 = vmatprep.subr.bf16.mxu0 %v5005_v47 }
 0x154   : > { %4768 = vmatpush3.bf16.msra.mxu1 %v5735_v42 }
 0x155   : > { %4769 = vmatprep.subr.bf16.mxu1 %v5396_v37 }
 0x156   : > { %1246 = vmatpush1.bf16.msra.mxu0 %v5003_v49 }
 0x157   : > { %1247 = vmatprep.subr.bf16.mxu0 %v5011_v51 }
 0x158   : > { %4770 = vmatpush3.bf16.msra.mxu1 %v5743_v43 }
 0x159   : > { %4771 = vmatprep.subr.bf16.mxu1 %v5396_v37 }
 0x15a   : > { %1248 = vmatpush1.bf16.msra.mxu0 %v5009_v53 }
 0x15b   : > { %1249 = vmatprep.subr.bf16.mxu0 %v5017_v55 }
 0x15c   : > { %4772 = vmatpush3.bf16.msra.mxu1 %v5750_v44 }
 0x15d   : > { %1284 = vmatprep.subr.bf16.mxu1 %v5002_v46 }
 0x15e   : > { %1250 = vmatpush1.bf16.msra.mxu0 %v5015_v56 }
 0x15f   : > { %4774 = vmatmul.mubr.msk.bf16.vlgmr.msra.gmra.mrb[12].mxu1 %vm647_vm2, %v1013_v38  ;;  %4415 = vmatprep.subr.bf16.mxu0 %v5534_v2 }
 0x160   : > { %1316 = vmatprep.mubr.bf16.mxu1 %v5398_v62  ;;  %1285 = vmatpush1.bf16.msra.mxu1 %v5000_v45 }
 0x161   : > { %1286 = vmatprep.subr.bf16.mxu1 %v5008_v48 }
 0x164   : > { %1287 = vmatpush1.bf16.msra.mxu1 %v5006_v50 }
 0x165   : > { %1288 = vmatprep.subr.bf16.mxu1 %v5014_v52 }
 0x168   : > { %1289 = vmatpush1.bf16.msra.mxu1 %v5012_v54 }
 0x169   : > { %1290 = vmatprep.subr.bf16.mxu1 %v5020_v57 }
 0x16c   : > { %1291 = vmatpush1.bf16.msra.mxu1 %v5018_v58 }
 0x16d   : > { %4437 = vmatprep.subr.bf16.mxu1 %v5545_v4 }
 0x202   : > { %v906_v33 = vpop.f32.mrb[4].mxu1  ;;  %v947_v34 = vpop.f32.mrb[8].mxu0 }
 0x203   : > { %v908_v38 = vpop.f32.mrb[5].mxu1  ;;  %v949_v39 = vpop.f32.mrb[9].mxu0 }
 0x204   : > { %v958_v40 = vcombine.low %v906_v33, %v908_v38  ;;  %v959_v45 = vcombine.low %v947_v34, %v949_v39  ;;  %v910_v46 = vpop.f32.mrb[6].mxu1  ;;  %v951_v2 = vpop.f32.mrb[10].mxu0  ;;  %v1355_v34 = vld [vmem:[%s5519_s12] sm:$0x22]  ;;  %v1356_v38 = vld [vmem:[%s5519_s12 + $0x8] sm:$0x22] }
 0x205   : > { %v911_v47 = vpop.f32.mrb[7].mxu1  ;;  %v952_v4 = vpop.f32.mrb[11].mxu0  ;;  %v4137_v2 = vcombine.high %v1355_v34, %v1355_v34 }
 0x206   : > { %v5856_v48 = vrot.slane %v958_v40, %v5853_v35  ;;  %v5859_v49 = vrot.slane %v959_v45, %v5853_v35  ;;  %v4139_v47 = vcombine.high %v1356_v38, %v1356_v38 }
 0x222   : > { %v4382_v51 = vpop.f32.mrb[8].mxu1  ;;  %v4404_v52 = vpop.f32.mrb[12].mxu0 }
 0x223   : > { %v4383_v53 = vpop.f32.mrb[9].mxu1  ;;  %v4405_v54 = vpop.f32.mrb[13].mxu0 }
 0x224   : > { %v4384_v55 = vadd.f32 %v4383_v53, %v4382_v51  ;;  %v4385_v56 = vpop.f32.mrb[10].mxu1  ;;  %v4406_v57 = vadd.f32 %v4405_v54, %v4404_v52  ;;  %v4407_v58 = vpop.f32.mrb[14].mxu0  ;;  %v1372_v51 = vrot.slane %v4137_v2, 1  ;;  %v1374_v53 = vrot.slane %v4139_v47, 1 }
 0x225   : > { %v4386_v59 = vpop.f32.mrb[11].mxu1  ;;  %v4408_v60 = vpop.f32.mrb[15].mxu0  ;;  %v410_v56 = vld [vmem:[#allocation2] sm:$0xf] }
 0x226   : > { %v1057_v63 = vadd.f32 %v4384_v55, %v5780_v0 }
 0x228   : > { %v1097_v33 = vadd.f32 %v4406_v57, %v1057_v63 }
 0x232   : > { %v1136_v39 = vpop.f32.mrb[12].mxu1 }
 0x233   : > { %v1137_v40 = vadd.f32 %v1136_v39, %v1097_v33  ;;  %v4775_v45 = vpop.f32.mrb[13].mxu1 }
 0x234   : > { %v1139_v46 = vpop.f32.mrb[14].mxu1 }
 0x235   : > { %v1142_v4 = vmax.f32 %v1137_v40, 0.0  ;;  %v4776_v61 = vpop.f32.mrb[15].mxu1 }
 0x237   : > { %v1143_v50 = vpack.c.bf16 %v1142_v4, %v1142_v4  ;;  %v5951_v4 = vld [vmem:[%s5519_s12] sm:$0x22] }
 0x239   : > { %4134 = vmatmul.mubr.msk.bf16.vlgmr.msra.gmra.mrb[16].mxu0 %vm647_vm2, %v1143_v50  ;;  %4135 = vmatmul.mubr.msk.bf16.vlgmr.msra.gmra.mrb[16].mxu1 %vm647_vm2, %v1143_v50  ;;  %v6770_v50 = vcombine.low %v5856_v48, %v5859_v49 }
 0x23a   : > { %4416 = vmatpush3.bf16.msra.mxu0 %v5539_v3  ;;  %4438 = vmatpush3.bf16.msra.mxu1 %v5551_v5  ;;  %v4136_v3 = vcombine.low %v1355_v34, %v1355_v34  ;;  %v4138_v5 = vcombine.low %v1356_v38, %v1356_v38 }
 0x23b   : > { %4417 = vmatprep.subr.bf16.mxu0 %v5557_v6  ;;  %4439 = vmatprep.subr.bf16.mxu1 %v5569_v8  ;;  %v5025_v8 = vld [vmem:[%s5519_s12 + $0x10] ss:$0 sps:$4 sm:$0x22]   ;;  %v981_v52 = vrot.slane %v6770_v50, %v5853_v35  ;;  %v4160_v50 = vcombine.low %v5951_v4, %v5951_v4 }
 0x23c   : > { %1415 = vmatprep.mubr.bf16.mxu0 %v1372_v51  ;;  %1455 = vmatprep.mubr.bf16.mxu1 %v1374_v53  ;;  %v1371_v6 = vrot.slane %v4136_v3, 1  ;;  %v5954_v51 = vld [vmem:[%s5519_s12 + $0x8] sm:$0x22]  ;;  %v4161_v53 = vcombine.high %v5951_v4, %v5951_v4  ;;  %v6168_v4 = vld [vmem:[%s6749_s1 + $0x110] sm:$0xff]  }
 0x23d   : > { %v983_v58 = vadd.f32 %v981_v52, %v410_v56  ;;  %v4163_v3 = vcombine.high %v5954_v51, %v5954_v51  ;;  %v4162_v52 = vcombine.low %v5954_v51, %v5954_v51  ;;  %v6101_v56 = vld [vmem:[%s6749_s1 + $0x70] sm:$0xff]  }
 0x23e   : > { %4418 = vmatpush3.bf16.msra.mxu0 %v5563_v7  ;;  %4440 = vmatpush3.bf16.msra.mxu1 %v5575_v9  ;;  %v1373_v7 = vrot.slane %v4138_v5, 1  ;;  %v1375_v9 = vrot.slane %v5025_v8, 1 }
 0x23f   : > { %4419 = vmatprep.subr.bf16.mxu0 %v5581_v10  ;;  %4441 = vmatprep.subr.bf16.mxu1 %v5593_v12  ;;  %v5026_v10 = vld [vmem:[%s5524_s18 + $0x100] ss:$16 sps:$4 sm:$0xff]   ;;  %v5029_v12 = vld [vmem:[%s5524_s18 + $0x108] ss:$16 sps:$4 sm:$0xff]  }
 0x242   : > { %4420 = vmatpush3.bf16.msra.mxu0 %v5587_v11  ;;  %4442 = vmatpush3.bf16.msra.mxu1 %v5599_v13  ;;  %v5028_v11 = vld [vmem:[%s5524_s18 + $0x104] ss:$16 sps:$4 sm:$0xff]   ;;  %v5031_v13 = vld [vmem:[%s5524_s18 + $0x10c] ss:$16 sps:$4 sm:$0xff]  }
 0x243   : > { %4421 = vmatprep.subr.bf16.mxu0 %v5605_v14  ;;  %4443 = vmatprep.subr.bf16.mxu1 %v5617_v16  ;;  %v5034_v14 = vld [vmem:[%s5524_s18 + $0x124] ss:$16 sps:$4 sm:$0xff]   ;;  %v5032_v16 = vld [vmem:[%s5524_s18 + $0x120] ss:$16 sps:$4 sm:$0xff]  }
 0x246   : > { %4422 = vmatpush3.bf16.msra.mxu0 %v5611_v15  ;;  %4444 = vmatpush3.bf16.msra.mxu1 %v5623_v17  ;;  %v5037_v15 = vld [vmem:[%s5524_s18 + $0x12c] ss:$16 sps:$4 sm:$0xff]   ;;  %v5035_v17 = vld [vmem:[%s5524_s18 + $0x128] ss:$16 sps:$4 sm:$0xff]  }
 0x247   : > { %4423 = vmatprep.subr.bf16.mxu0 %v5629_v18  ;;  %4445 = vmatprep.subr.bf16.mxu1 %v5641_v20  ;;  %v5040_v18 = vld [vmem:[%s5524_s18 + $0x144] ss:$16 sps:$4 sm:$0xff]   ;;  %v5038_v20 = vld [vmem:[%s5524_s18 + $0x140] ss:$16 sps:$4 sm:$0xff]  }
 0x24a   : > { %4424 = vmatpush3.bf16.msra.mxu0 %v5635_v19  ;;  %4446 = vmatpush3.bf16.msra.mxu1 %v5647_v21  ;;  %v5043_v19 = vld [vmem:[%s5524_s18 + $0x14c] ss:$16 sps:$4 sm:$0xff]   ;;  %v5041_v21 = vld [vmem:[%s5524_s18 + $0x148] ss:$16 sps:$4 sm:$0xff]  }
 0x24b   : > { %4425 = vmatprep.subr.bf16.mxu0 %v5653_v22  ;;  %4447 = vmatprep.subr.bf16.mxu1 %v5665_v24  ;;  %v5046_v22 = vld [vmem:[%s5524_s18 + $0x164] ss:$16 sps:$4 sm:$0xff]   ;;  %v5049_v24 = vld [vmem:[%s5524_s18 + $0x16c] ss:$16 sps:$4 sm:$0xff]  }
 0x24e   : > { %4426 = vmatpush3.bf16.msra.mxu0 %v5659_v23  ;;  %4448 = vmatpush3.bf16.msra.mxu1 %v5671_v25  ;;  %v5044_v23 = vld [vmem:[%s5524_s18 + $0x160] ss:$16 sps:$4 sm:$0xff]   ;;  %v5047_v25 = vld [vmem:[%s5524_s18 + $0x168] ss:$16 sps:$4 sm:$0xff]  }
 0x24f   : > { %4427 = vmatprep.subr.bf16.mxu0 %v5677_v26  ;;  %4449 = vmatprep.subr.bf16.mxu1 %v5689_v28  ;;  %v5931_v26 = vld [vmem:[%s6749_s1 + $0x40] sm:$0xff]  }
 0x252   : > { %4428 = vmatpush3.bf16.msra.mxu0 %v5683_v27  ;;  %4450 = vmatpush3.bf16.msra.mxu1 %v5695_v29  ;;  %v5937_v27 = vld [vmem:[%s6749_s1 + $0xc0] sm:$0xff]  }
 0x253   : > { %4429 = vmatprep.subr.bf16.mxu0 %v5701_v30  ;;  %4451 = vmatprep.subr.bf16.mxu1 %v5713_v32 }
 0x256   : > { %4430 = vmatpush3.bf16.msra.mxu0 %v5707_v31  ;;  %4452 = vmatpush3.bf16.msra.mxu1 %v5721_v36 }
 0x257   : > { %4777 = vmatprep.subr.bf16.mxu0 %v5396_v37  ;;  %1604 = vmatprep.subr.bf16.mxu1 %v5028_v11 }
 0x259   : > { %1416 = vmatmul.mubr.bf16.vlgmr.msra.gmra.mrb[20].mxu0 %v1371_v6  ;;  %1456 = vmatmul.mubr.bf16.vlgmr.msra.gmra.mrb[20].mxu1 %v1373_v7 }
 0x25a   : > { %4778 = vmatpush3.bf16.msra.mxu0 %v5728_v41  ;;  %4785 = vmatprep.mubr.msk.bf16.mxu0 %vm5397_vm1, %v5396_v37 }
 0x25b   : > { %4779 = vmatprep.subr.bf16.mxu0 %v5396_v37  ;;  %1636 = vmatprep.mubr.bf16.mxu1 %v5398_v62 }
 0x25c   : > { %1605 = vmatpush1.bf16.msra.mxu1 %v5026_v10  ;;  %v1745_v10 = vshrl.u32 %v4163_v3, 16  ;;  %v5057_v3 = vld [vmem:[%s5524_s18 + $0x184] ss:$16 sps:$4 sm:$0xff]  }
 0x25d   : > { %1606 = vmatprep.subr.bf16.mxu1 %v5034_v14 }
 0x25e   : > { %4780 = vmatpush3.bf16.msra.mxu0 %v5735_v42 }
 0x25f   : > { %4781 = vmatprep.subr.bf16.mxu0 %v5396_v37 }
 0x260   : > { %1607 = vmatpush1.bf16.msra.mxu1 %v5032_v16  ;;  %v5965_v16 = vld [vmem:[%s6749_s1] sm:$0xff]  }
 0x261   : > { %1608 = vmatprep.subr.bf16.mxu1 %v5040_v18  ;;  %v5977_v18 = vld [vmem:[%s6749_s1 + $0x48] sm:$0xff]  }
 0x262   : > { %4782 = vmatpush3.bf16.msra.mxu0 %v5743_v43 }
 0x263   : > { %4783 = vmatprep.subr.bf16.mxu0 %v5396_v37 }
 0x264   : > { %1609 = vmatpush1.bf16.msra.mxu1 %v5038_v20  ;;  %v5989_v20 = vld [vmem:[%s6749_s1 + $0x8] sm:$0xff]  }
 0x265   : > { %1610 = vmatprep.subr.bf16.mxu1 %v5046_v22  ;;  %v6001_v22 = vld [vmem:[%s6749_s1 + $0x50] sm:$0xff]  }
 0x266   : > { %4784 = vmatpush3.bf16.msra.mxu0 %v5750_v44 }
 0x267   : > { %1645 = vmatprep.subr.bf16.mxu0 %v5031_v13 }
 0x268   : > { %1611 = vmatpush1.bf16.msra.mxu1 %v5044_v23  ;;  %v6007_v23 = vld [vmem:[%s6749_s1 + $0xd0] sm:$0xff]  }
 0x269   : > { %4786 = vmatmul.mubr.msk.bf16.vlgmr.msra.gmra.mrb[24].mxu0 %vm647_vm2, %v1375_v9  ;;  %4464 = vmatprep.subr.bf16.mxu1 %v5931_v26  ;;  %v1737_v9 = vshrl.u32 %v4161_v53, 16  ;;  %v5055_v53 = vld [vmem:[%s5524_s18 + $0x180] ss:$16 sps:$4 sm:$0xff]  }
 0x26a   : > { %1677 = vmatprep.mubr.bf16.mxu0 %v5398_v62  ;;  %1646 = vmatpush1.bf16.msra.mxu0 %v5029_v12 }
 0x26b   : > { %1647 = vmatprep.subr.bf16.mxu0 %v5037_v15  ;;  %v1739_v14 = vrot.slane %v1737_v9, 1  ;;  %v1747_v15 = vrot.slane %v1745_v10, 1  ;;  %v5061_v9 = vld [vmem:[%s5524_s18 + $0x1a0] ss:$16 sps:$4 sm:$0xff]   ;;  %v5069_v10 = vld [vmem:[%s5524_s18 + $0x1c4] ss:$16 sps:$4 sm:$0xff]  }
 0x26e   : > { %1648 = vmatpush1.bf16.msra.mxu0 %v5035_v17  ;;  %v5971_v17 = vld [vmem:[%s6749_s1 + $0x80] sm:$0xff]  }
 0x26f   : > { %1649 = vmatprep.subr.bf16.mxu0 %v5043_v19  ;;  %v5983_v19 = vld [vmem:[%s6749_s1 + $0xc8] sm:$0xff]  }
 0x272   : > { %1650 = vmatpush1.bf16.msra.mxu0 %v5041_v21  ;;  %v5995_v21 = vld [vmem:[%s6749_s1 + $0x88] sm:$0xff]  }
 0x273   : > { %1651 = vmatprep.subr.bf16.mxu0 %v5049_v24  ;;  %v6013_v24 = vld [vmem:[%s6749_s1 + $0x10] sm:$0xff]  }
 0x276   : > { %1652 = vmatpush1.bf16.msra.mxu0 %v5047_v25  ;;  %v6019_v25 = vld [vmem:[%s6749_s1 + $0x90] sm:$0xff]  }
 0x277   : > { %4486 = vmatprep.subr.bf16.mxu0 %v5937_v27 }
 0x30c   : > { %v1277_v28 = vpop.f32.mrb[16].mxu0  ;;  %v1318_v29 = vpop.f32.mrb[16].mxu1 }
 0x30d   : > { %v1279_v30 = vpop.f32.mrb[17].mxu0  ;;  %v1320_v31 = vpop.f32.mrb[17].mxu1 }
 0x30e   : > { %v1329_v32 = vcombine.low %v1277_v28, %v1279_v30  ;;  %v1330_v36 = vcombine.low %v1318_v29, %v1320_v31  ;;  %v1281_v41 = vpop.f32.mrb[18].mxu0  ;;  %v1322_v42 = vpop.f32.mrb[18].mxu1  ;;  %v6025_v28 = vld [vmem:[%s6749_s1 + $0x58] sm:$0xff]  }
 0x30f   : > { %v1282_v43 = vpop.f32.mrb[19].mxu0  ;;  %v1323_v61 = vpop.f32.mrb[19].mxu1  ;;  %v6031_v29 = vld [vmem:[%s6749_s1 + $0xd8] sm:$0xff]   ;;  %v6061_v41 = vld [vmem:[%s6749_s1 + $0x20] sm:$0xff]  }
 0x310   : > { %v1337_v54 = vrot.slane %v1329_v32, %v5853_v35  ;;  %v1344_v55 = vrot.slane %v1330_v36, %v5853_v35  ;;  %v6037_v30 = vld [vmem:[%s6749_s1 + $0x18] sm:$0xff]   ;;  %v6049_v32 = vld [vmem:[%s6749_s1 + $0x60] sm:$0xff]   ;;  %v6073_v43 = vld [vmem:[%s6749_s1 + $0x68] sm:$0xff]  }
 0x311   : > { %v6043_v31 = vld [vmem:[%s6749_s1 + $0x98] sm:$0xff]   ;;  %v6055_v36 = vld [vmem:[%s6749_s1 + $0xe0] sm:$0xff]   ;;  %v6079_v61 = vld [vmem:[%s6749_s1 + $0xe8] sm:$0xff]  }
 0x312   : > { %v1345_v57 = vcombine.low %v1337_v54, %v1344_v55  ;;  %v6067_v42 = vld [vmem:[%s6749_s1 + $0xa0] sm:$0xff]   ;;  %v6089_v54 = vld [vmem:[%s6749_s1 + $0x28] sm:$0xff]  }
 0x313   : > { %v6095_v55 = vld [vmem:[%s6749_s1 + $0xa8] sm:$0xff]  }
 0x314   : > { %v1352_v59 = vrot.slane %v1345_v57, %v5853_v35  ;;  %v6107_v57 = vld [vmem:[%s6749_s1 + $0xf0] sm:$0xff]  }
 0x316   : > { %v5947_v60 = vadd.f32 %v1352_v59, %v983_v58  ;;  %v1733_v58 = vshrl.u32 %v4160_v50, 16  ;;  %v1741_v59 = vshrl.u32 %v4162_v52, 16  ;;  %v5078_v50 = vld [vmem:[%s5524_s18 + $0x1ec] ss:$16 sps:$4 sm:$0xff]   ;;  %v5076_v52 = vld [vmem:[%s5524_s18 + $0x1e8] ss:$16 sps:$4 sm:$0xff]  }
 0x32c   : > { %v4431_v63 = vpop.f32.mrb[20].mxu0  ;;  %v4453_v33 = vpop.f32.mrb[20].mxu1 }
 0x32d   : > { %v4432_v34 = vpop.f32.mrb[21].mxu0  ;;  %v4454_v38 = vpop.f32.mrb[21].mxu1 }
 0x32e   : > { %v4433_v39 = vadd.f32 %v4432_v34, %v4431_v63  ;;  %v4434_v48 = vpop.f32.mrb[22].mxu0  ;;  %v4455_v49 = vadd.f32 %v4454_v38, %v4453_v33  ;;  %v4456_v40 = vpop.f32.mrb[22].mxu1  ;;  %v6113_v63 = vld [vmem:[%s6749_s1 + $0x30] sm:$0xff]   ;;  %v6125_v34 = vld [vmem:[%s6749_s1 + $0x78] sm:$0xff]  }
 0x32f   : > { %v4435_v45 = vpop.f32.mrb[23].mxu0  ;;  %v4457_v46 = vpop.f32.mrb[23].mxu1  ;;  %v6119_v33 = vld [vmem:[%s6749_s1 + $0xb0] sm:$0xff]   ;;  %v6131_v38 = vld [vmem:[%s6749_s1 + $0xf8] sm:$0xff]   ;;  %v1743_v48 = vrot.slane %v1741_v59, 1 }
 0x330   : > { %v1418_v2 = vadd.f32 %v4433_v39, %v5780_v0  ;;  %v1735_v39 = vrot.slane %v1733_v58, 1  ;;  %v6143_v40 = vld [vmem:[%s6749_s1 + $0xb8] sm:$0xff]   ;;  %v6150_v45 = vld [vmem:[%s6749_s1 + $0x100] sm:$0xff]   ;;  %v5054_v46 = vld [vmem:[%s5519_s12 + $0x10] ss:$0 sps:$4 sm:$0x22]  }
 0x332   : > { %v1458_v47 = vadd.f32 %v4455_v49, %v1418_v2  ;;  %v6137_v49 = vld [vmem:[%s6749_s1 + $0x38] sm:$0xff]   ;;  %v6161_v2 = vld [vmem:[%s6749_s1 + $0x108] sm:$0xff]  }
 0x33c   : > { %v1497_v5 = vpop.f32.mrb[24].mxu0 }
 0x33d   : > { %v1498_v6 = vadd.f32 %v1497_v5, %v1458_v47  ;;  %v4787_v7 = vpop.f32.mrb[25].mxu0  ;;  %v1749_v47 = vshrl.u32 %v5054_v46, 16  ;;  %v5058_v5 = vld [vmem:[%s5524_s18 + $0x188] ss:$16 sps:$4 sm:$0xff]  }
 0x33e   : > { %v1500_v8 = vpop.f32.mrb[26].mxu0  ;;  %v5063_v7 = vld [vmem:[%s5524_s18 + $0x1a4] ss:$16 sps:$4 sm:$0xff]  }
 0x33f   : > { %v1503_v11 = vmax.f32 %v1498_v6, 0.0  ;;  %v4788_v12 = vpop.f32.mrb[27].mxu0  ;;  %v1751_v51 = vrot.slane %v1749_v47, 1  ;;  %v5060_v6 = vld [vmem:[%s5524_s18 + $0x18c] ss:$16 sps:$4 sm:$0xff]  }
 0x340   : > { %v5066_v8 = vld [vmem:[%s5524_s18 + $0x1ac] ss:$16 sps:$4 sm:$0xff]   ;;  %v5067_v12 = vld [vmem:[%s5524_s18 + $0x1c0] ss:$16 sps:$4 sm:$0xff]  }
 0x341   : > { %v1504_v13 = vpack.c.bf16 %v1503_v11, %v1503_v11  ;;  %v5072_v11 = vld [vmem:[%s5524_s18 + $0x1cc] ss:$16 sps:$4 sm:$0xff]  }
 0x343   : > { %4158 = vmatmul.mubr.msk.bf16.vlgmr.msra.gmra.mrb[24].mxu1 %vm647_vm2, %v1504_v13  ;;  %4159 = vmatmul.mubr.msk.bf16.vlgmr.msra.gmra.mrb[28].mxu0 %vm647_vm2, %v1504_v13  ;;  %v5070_v13 = vld [vmem:[%s5524_s18 + $0x1c8] ss:$16 sps:$4 sm:$0xff]  }
 0x344   : > { %4465 = vmatpush3.bf16.msra.mxu1 %v5965_v16  ;;  %4487 = vmatpush3.bf16.msra.mxu0 %v5971_v17 }
 0x345   : > { %4466 = vmatprep.subr.bf16.mxu1 %v5977_v18  ;;  %4488 = vmatprep.subr.bf16.mxu0 %v5983_v19 }
 0x346   : > { %1791 = vmatprep.mubr.bf16.mxu1 %v1739_v14  ;;  %1831 = vmatprep.mubr.bf16.mxu0 %v1747_v15  ;;  %v5075_v14 = vld [vmem:[%s5524_s18 + $0x1e4] ss:$16 sps:$4 sm:$0xff]   ;;  %v5073_v15 = vld [vmem:[%s5524_s18 + $0x1e0] ss:$16 sps:$4 sm:$0xff]  }
 0x348   : > { %4467 = vmatpush3.bf16.msra.mxu1 %v5989_v20  ;;  %4489 = vmatpush3.bf16.msra.mxu0 %v5995_v21 }
 0x349   : > { %4468 = vmatprep.subr.bf16.mxu1 %v6001_v22  ;;  %4490 = vmatprep.subr.bf16.mxu0 %v6007_v23 }
 0x34c   : > { %4469 = vmatpush3.bf16.msra.mxu1 %v6013_v24  ;;  %4491 = vmatpush3.bf16.msra.mxu0 %v6019_v25 }
 0x34d   : > { %4470 = vmatprep.subr.bf16.mxu1 %v6025_v28  ;;  %4492 = vmatprep.subr.bf16.mxu0 %v6031_v29 }
 0x350   : > { %4471 = vmatpush3.bf16.msra.mxu1 %v6037_v30  ;;  %4493 = vmatpush3.bf16.msra.mxu0 %v6043_v31 }
 0x351   : > { %4472 = vmatprep.subr.bf16.mxu1 %v6049_v32  ;;  %4494 = vmatprep.subr.bf16.mxu0 %v6055_v36 }
 0x354   : > { %4473 = vmatpush3.bf16.msra.mxu1 %v6061_v41  ;;  %4495 = vmatpush3.bf16.msra.mxu0 %v6067_v42 }
 0x355   : > { %4474 = vmatprep.subr.bf16.mxu1 %v6073_v43  ;;  %4496 = vmatprep.subr.bf16.mxu0 %v6079_v61 }
 0x358   : > { %4475 = vmatpush3.bf16.msra.mxu1 %v6089_v54  ;;  %4497 = vmatpush3.bf16.msra.mxu0 %v6095_v55 }
 0x359   : > { %4476 = vmatprep.subr.bf16.mxu1 %v6101_v56  ;;  %4498 = vmatprep.subr.bf16.mxu0 %v6107_v57 }
 0x35c   : > { %4477 = vmatpush3.bf16.msra.mxu1 %v6113_v63  ;;  %4499 = vmatpush3.bf16.msra.mxu0 %v6119_v33 }
 0x35d   : > { %4478 = vmatprep.subr.bf16.mxu1 %v6125_v34  ;;  %4500 = vmatprep.subr.bf16.mxu0 %v6131_v38 }
 0x360   : > { %4479 = vmatpush3.bf16.msra.mxu1 %v6137_v49  ;;  %4501 = vmatpush3.bf16.msra.mxu0 %v6143_v40 }
 0x361   : > { %4789 = vmatprep.subr.bf16.mxu1 %v5396_v37  ;;  %1980 = vmatprep.subr.bf16.mxu0 %v5057_v3 }
 0x363   : > { %1792 = vmatmul.mubr.bf16.vlgmr.msra.gmra.mrb[28].mxu1 %v1735_v39  ;;  %1832 = vmatmul.mubr.bf16.vlgmr.msra.gmra.mrb[32].mxu0 %v1743_v48 }
 0x364   : > { %4790 = vmatpush3.bf16.msra.mxu1 %v6150_v45  ;;  %4797 = vmatprep.mubr.msk.bf16.mxu1 %vm5397_vm1, %v5396_v37 }
 0x365   : > { %4791 = vmatprep.subr.bf16.mxu1 %v5396_v37  ;;  %2012 = vmatprep.mubr.bf16.mxu0 %v5398_v62 }
 0x366   : > { %1981 = vmatpush1.bf16.msra.mxu0 %v5055_v53 }
 0x367   : > { %1982 = vmatprep.subr.bf16.mxu0 %v5063_v7 }
 0x368   : > { %4792 = vmatpush3.bf16.msra.mxu1 %v6161_v2 }
 0x369   : > { %4793 = vmatprep.subr.bf16.mxu1 %v5396_v37 }
 0x36a   : > { %1983 = vmatpush1.bf16.msra.mxu0 %v5061_v9 }
 0x36b   : > { %1984 = vmatprep.subr.bf16.mxu0 %v5069_v10 }
 0x36c   : > { %4794 = vmatpush3.bf16.msra.mxu1 %v6168_v4 }
 0x36d   : > { %4795 = vmatprep.subr.bf16.mxu1 %v5396_v37 }
 0x36e   : > { %1985 = vmatpush1.bf16.msra.mxu0 %v5067_v12 }
 0x36f   : > { %1986 = vmatprep.subr.bf16.mxu0 %v5075_v14 }
 0x370   : > { %4796 = vmatpush3.bf16.msra.mxu1 %v5750_v44  ;;  %v5064_v44 = vld [vmem:[%s5524_s18 + $0x1a8] ss:$16 sps:$4 sm:$0xff]  }
 0x371   : > { %2021 = vmatprep.subr.bf16.mxu1 %v5060_v6 }
 0x372   : > { %1987 = vmatpush1.bf16.msra.mxu0 %v5073_v15 }
 0x373   : > { %4798 = vmatmul.mubr.msk.bf16.vlgmr.msra.gmra.mrb[32].mxu1 %vm647_vm2, %v1751_v51  ;;  %4513 = vmatprep.subr.bf16.mxu0 %v5931_v26 }
 0x374   : > { %2053 = vmatprep.mubr.bf16.mxu1 %v5398_v62  ;;  %2022 = vmatpush1.bf16.msra.mxu1 %v5058_v5 }
 0x375   : > { %2023 = vmatprep.subr.bf16.mxu1 %v5066_v8 }
 0x378   : > { %2024 = vmatpush1.bf16.msra.mxu1 %v5064_v44 }
 0x379   : > { %2025 = vmatprep.subr.bf16.mxu1 %v5072_v11 }
 0x37c   : > { %2026 = vmatpush1.bf16.msra.mxu1 %v5070_v13 }
 0x37d   : > { %2027 = vmatprep.subr.bf16.mxu1 %v5078_v50 }
 0x380   : > { %2028 = vmatpush1.bf16.msra.mxu1 %v5076_v52 }
 0x381   : > { %4535 = vmatprep.subr.bf16.mxu1 %v5937_v27 }
 0x416   : > { %v1638_v58 = vpop.f32.mrb[24].mxu1  ;;  %v1679_v59 = vpop.f32.mrb[28].mxu0 }
 0x417   : > { %v1640_v39 = vpop.f32.mrb[25].mxu1  ;;  %v1681_v48 = vpop.f32.mrb[29].mxu0 }
 0x418   : > { %v1690_v46 = vcombine.low %v1638_v58, %v1640_v39  ;;  %v1691_v47 = vcombine.low %v1679_v59, %v1681_v48  ;;  %v1642_v51 = vpop.f32.mrb[26].mxu1  ;;  %v1683_v53 = vpop.f32.mrb[30].mxu0 }
 0x419   : > { %v1643_v3 = vpop.f32.mrb[27].mxu1  ;;  %v1684_v5 = vpop.f32.mrb[31].mxu0 }
 0x41a   : > { %v1698_v6 = vrot.slane %v1690_v46, %v5853_v35  ;;  %v1705_v7 = vrot.slane %v1691_v47, %v5853_v35  ;;  %v2092_v46 = vld [vmem:[%s5519_s12] sm:$0x44]  ;;  %v2093_v47 = vld [vmem:[%s5519_s12 + $0x8] sm:$0x44] }
 0x41b   : > { %v4185_v5 = vcombine.high %v2092_v46, %v2092_v46 }
 0x41c   : > { %v1706_v8 = vcombine.low %v1698_v6, %v1705_v7  ;;  %v4187_v6 = vcombine.high %v2093_v47, %v2093_v47 }
 0x41e   : > { %v1713_v9 = vrot.slane %v1706_v8, %v5853_v35 }
 0x420   : > { %v6197_v44 = vadd.f32 %v1713_v9, %v5947_v60 }
 0x436   : > { %v4480_v10 = vpop.f32.mrb[28].mxu1  ;;  %v4502_v11 = vpop.f32.mrb[32].mxu0 }
 0x437   : > { %v4481_v12 = vpop.f32.mrb[29].mxu1  ;;  %v4503_v13 = vpop.f32.mrb[33].mxu0 }
 0x438   : > { %v4482_v14 = vadd.f32 %v4481_v12, %v4480_v10  ;;  %v4483_v15 = vpop.f32.mrb[30].mxu1  ;;  %v4504_v50 = vadd.f32 %v4503_v13, %v4502_v11  ;;  %v4505_v52 = vpop.f32.mrb[34].mxu0  ;;  %v2109_v10 = vrot.slane %v4185_v5, 2  ;;  %v2111_v12 = vrot.slane %v4187_v6, 2  ;;  %v5096_v5 = vld [vmem:[%s5524_s18 + $0x240] ss:$16 sps:$4 sm:$0xff]  }
 0x439   : > { %v4484_v58 = vpop.f32.mrb[31].mxu1  ;;  %v4506_v59 = vpop.f32.mrb[35].mxu0  ;;  %v4186_v11 = vcombine.low %v2093_v47, %v2093_v47  ;;  %v5083_v15 = vld [vmem:[%s5519_s12 + $0x10] ss:$0 sps:$4 sm:$0x44]   ;;  %v6248_v52 = vld [vmem:[%s6749_s1 + $0x118] sm:$0xff]  }
 0x43a   : > { %v1794_v39 = vadd.f32 %v4482_v14, %v5780_v0  ;;  %v4184_v0 = vcombine.low %v2092_v46, %v2092_v46  ;;  %v5084_v58 = vld [vmem:[%s5524_s18 + $0x200] ss:$16 sps:$4 sm:$0xff]   ;;  %v5086_v59 = vld [vmem:[%s5524_s18 + $0x204] ss:$16 sps:$4 sm:$0xff]   ;;  %v5095_v47 = vld [vmem:[%s5524_s18 + $0x22c] ss:$16 sps:$4 sm:$0xff]  }
 0x43b   : > { %v2110_v14 = vrot.slane %v4186_v11, 2  ;;  %v5092_v46 = vld [vmem:[%s5524_s18 + $0x224] ss:$16 sps:$4 sm:$0xff]   ;;  %v5099_v6 = vld [vmem:[%s5524_s18 + $0x248] ss:$16 sps:$4 sm:$0xff]  }
 0x43c   : > { %v1834_v48 = vadd.f32 %v4504_v50, %v1794_v39  ;;  %v2108_v13 = vrot.slane %v4184_v0, 2  ;;  %v2112_v50 = vrot.slane %v5083_v15, 2  ;;  %v5087_v39 = vld [vmem:[%s5524_s18 + $0x208] ss:$16 sps:$4 sm:$0xff]  }
 0x446   : > { %v1873_v51 = vpop.f32.mrb[32].mxu1 }
 0x447   : > { %v1874_v53 = vadd.f32 %v1873_v51, %v1834_v48  ;;  %v4799_v3 = vpop.f32.mrb[33].mxu1  ;;  %v5089_v48 = vld [vmem:[%s5524_s18 + $0x20c] ss:$16 sps:$4 sm:$0xff]   ;;  %v5090_v51 = vld [vmem:[%s5524_s18 + $0x220] ss:$16 sps:$4 sm:$0xff]  }
 0x448   : > { %v1876_v60 = vpop.f32.mrb[34].mxu1  ;;  %v5098_v3 = vld [vmem:[%s5524_s18 + $0x244] ss:$16 sps:$4 sm:$0xff]  }
 0x449   : > { %v1879_v7 = vmax.f32 %v1874_v53, 0.0  ;;  %v4800_v8 = vpop.f32.mrb[35].mxu1  ;;  %v5093_v53 = vld [vmem:[%s5524_s18 + $0x228] ss:$16 sps:$4 sm:$0xff]   ;;  %v5101_v60 = vld [vmem:[%s5524_s18 + $0x24c] ss:$16 sps:$4 sm:$0xff]  }
 0x44a   : > { %v5102_v8 = vld [vmem:[%s5524_s18 + $0x260] ss:$16 sps:$4 sm:$0xff]  }
 0x44b   : > { %v1880_v9 = vpack.c.bf16 %v1879_v7, %v1879_v7  ;;  %v5104_v7 = vld [vmem:[%s5524_s18 + $0x264] ss:$16 sps:$4 sm:$0xff]  }
 0x44d   : > { %4182 = vmatmul.mubr.msk.bf16.vlgmr.msra.gmra.mrb[36].mxu0 %vm647_vm2, %v1880_v9  ;;  %4183 = vmatmul.mubr.msk.bf16.vlgmr.msra.gmra.mrb[36].mxu1 %vm647_vm2, %v1880_v9  ;;  %v5107_v9 = vld [vmem:[%s5524_s18 + $0x26c] ss:$16 sps:$4 sm:$0xff]  }
 0x44e   : > { %4514 = vmatpush3.bf16.msra.mxu0 %v5965_v16  ;;  %4536 = vmatpush3.bf16.msra.mxu1 %v5971_v17 }
 0x44f   : > { %4515 = vmatprep.subr.bf16.mxu0 %v5977_v18  ;;  %4537 = vmatprep.subr.bf16.mxu1 %v5983_v19 }
 0x450   : > { %2152 = vmatprep.mubr.bf16.mxu0 %v2109_v10  ;;  %2192 = vmatprep.mubr.bf16.mxu1 %v2111_v12  ;;  %v5105_v10 = vld [vmem:[%s5524_s18 + $0x268] ss:$16 sps:$4 sm:$0xff]  }
 0x452   : > { %4516 = vmatpush3.bf16.msra.mxu0 %v5989_v20  ;;  %4538 = vmatpush3.bf16.msra.mxu1 %v5995_v21 }
 0x453   : > { %4517 = vmatprep.subr.bf16.mxu0 %v6001_v22  ;;  %4539 = vmatprep.subr.bf16.mxu1 %v6007_v23 }
 0x456   : > { %4518 = vmatpush3.bf16.msra.mxu0 %v6013_v24  ;;  %4540 = vmatpush3.bf16.msra.mxu1 %v6019_v25 }
 0x457   : > { %4519 = vmatprep.subr.bf16.mxu0 %v6025_v28  ;;  %4541 = vmatprep.subr.bf16.mxu1 %v6031_v29 }
 0x45a   : > { %4520 = vmatpush3.bf16.msra.mxu0 %v6037_v30  ;;  %4542 = vmatpush3.bf16.msra.mxu1 %v6043_v31 }
 0x45b   : > { %4521 = vmatprep.subr.bf16.mxu0 %v6049_v32  ;;  %4543 = vmatprep.subr.bf16.mxu1 %v6055_v36 }
 0x45e   : > { %4522 = vmatpush3.bf16.msra.mxu0 %v6061_v41  ;;  %4544 = vmatpush3.bf16.msra.mxu1 %v6067_v42 }
 0x45f   : > { %4523 = vmatprep.subr.bf16.mxu0 %v6073_v43  ;;  %4545 = vmatprep.subr.bf16.mxu1 %v6079_v61 }
 0x462   : > { %4524 = vmatpush3.bf16.msra.mxu0 %v6089_v54  ;;  %4546 = vmatpush3.bf16.msra.mxu1 %v6095_v55 }
 0x463   : > { %4525 = vmatprep.subr.bf16.mxu0 %v6101_v56  ;;  %4547 = vmatprep.subr.bf16.mxu1 %v6107_v57 }
 0x466   : > { %4526 = vmatpush3.bf16.msra.mxu0 %v6113_v63  ;;  %4548 = vmatpush3.bf16.msra.mxu1 %v6119_v33 }
 0x467   : > { %4527 = vmatprep.subr.bf16.mxu0 %v6125_v34  ;;  %4549 = vmatprep.subr.bf16.mxu1 %v6131_v38 }
 0x46a   : > { %4528 = vmatpush3.bf16.msra.mxu0 %v6137_v49  ;;  %4550 = vmatpush3.bf16.msra.mxu1 %v6143_v40 }
 0x46b   : > { %4801 = vmatprep.subr.bf16.mxu0 %v5396_v37  ;;  %2341 = vmatprep.subr.bf16.mxu1 %v5086_v59 }
 0x46d   : > { %2153 = vmatmul.mubr.bf16.vlgmr.msra.gmra.mrb[40].mxu0 %v2108_v13  ;;  %2193 = vmatmul.mubr.bf16.vlgmr.msra.gmra.mrb[40].mxu1 %v2110_v14 }
 0x46e   : > { %4802 = vmatpush3.bf16.msra.mxu0 %v6150_v45  ;;  %4809 = vmatprep.mubr.msk.bf16.mxu0 %vm5397_vm1, %v5396_v37 }
 0x46f   : > { %4803 = vmatprep.subr.bf16.mxu0 %v5396_v37  ;;  %2373 = vmatprep.mubr.bf16.mxu1 %v5398_v62 }
 0x470   : > { %2342 = vmatpush1.bf16.msra.mxu1 %v5084_v58 }
 0x471   : > { %2343 = vmatprep.subr.bf16.mxu1 %v5092_v46 }
 0x472   : > { %4804 = vmatpush3.bf16.msra.mxu0 %v6161_v2 }
 0x473   : > { %4805 = vmatprep.subr.bf16.mxu0 %v5396_v37 }
 0x474   : > { %2344 = vmatpush1.bf16.msra.mxu1 %v5090_v51 }
 0x475   : > { %2345 = vmatprep.subr.bf16.mxu1 %v5098_v3 }
 0x476   : > { %4806 = vmatpush3.bf16.msra.mxu0 %v6168_v4 }
 0x477   : > { %4807 = vmatprep.subr.bf16.mxu0 %v5396_v37 }
 0x478   : > { %2346 = vmatpush1.bf16.msra.mxu1 %v5096_v5 }
 0x479   : > { %2347 = vmatprep.subr.bf16.mxu1 %v5104_v7 }
 0x47a   : > { %4808 = vmatpush3.bf16.msra.mxu0 %v6248_v52 }
 0x47b   : > { %2382 = vmatprep.subr.bf16.mxu0 %v5089_v48 }
 0x47c   : > { %2348 = vmatpush1.bf16.msra.mxu1 %v5102_v8 }
 0x47d   : > { %4810 = vmatmul.mubr.msk.bf16.vlgmr.msra.gmra.mrb[44].mxu0 %vm647_vm2, %v2112_v50  ;;  %4562 = vmatprep.subr.bf16.mxu1 %v5931_v26 }
 0x47e   : > { %2414 = vmatprep.mubr.bf16.mxu0 %v5398_v62  ;;  %2383 = vmatpush1.bf16.msra.mxu0 %v5087_v39 }
 0x47f   : > { %2384 = vmatprep.subr.bf16.mxu0 %v5095_v47 }
 0x482   : > { %2385 = vmatpush1.bf16.msra.mxu0 %v5093_v53 }
 0x483   : > { %2386 = vmatprep.subr.bf16.mxu0 %v5101_v60 }
 0x486   : > { %2387 = vmatpush1.bf16.msra.mxu0 %v5099_v6 }
 0x487   : > { %2388 = vmatprep.subr.bf16.mxu0 %v5107_v9 }
 0x48a   : > { %2389 = vmatpush1.bf16.msra.mxu0 %v5105_v10 }
 0x48b   : > { %4584 = vmatprep.subr.bf16.mxu0 %v5937_v27 }
 0x520   : > { %v2014_v12 = vpop.f32.mrb[36].mxu0  ;;  %v2055_v0 = vpop.f32.mrb[36].mxu1 }
 0x521   : > { %v2016_v11 = vpop.f32.mrb[37].mxu0  ;;  %v2057_v13 = vpop.f32.mrb[37].mxu1 }
 0x522   : > { %v2066_v14 = vcombine.low %v2014_v12, %v2016_v11  ;;  %v2067_v15 = vcombine.low %v2055_v0, %v2057_v13  ;;  %v2018_v50 = vpop.f32.mrb[38].mxu0  ;;  %v2059_v58 = vpop.f32.mrb[38].mxu1  ;;  %v6280_v11 = vld [vmem:[%s6750_s2] sm:$0x1] }
 0x523   : > { %v2019_v59 = vpop.f32.mrb[39].mxu0  ;;  %v2060_v39 = vpop.f32.mrb[39].mxu1 }
 0x524   : > { %v2074_v48 = vrot.slane %v2066_v14, %v5853_v35  ;;  %v2081_v46 = vrot.slane %v2067_v15, %v5853_v35  ;;  %v2454_v15 = vld [vmem:[%s5519_s12 + $0x8] sm:$0x44] }
 0x525   : > { %v4211_v58 = vcombine.high %v2454_v15, %v2454_v15 }
 0x526   : > { %v2082_v47 = vcombine.low %v2074_v48, %v2081_v46 }
 0x528   : > { %v2089_v51 = vrot.slane %v2082_v47, %v5853_v35 }
 0x52a   : > { %v6275_v53 = vadd.f32 %v2089_v51, %v6197_v44  ;;  %v2453_v44 = vld [vmem:[%s5519_s12] sm:$0x44]  ;;  %v2482_v51 = vshrl.u32 %v4211_v58, 16 }
 0x52b   : > { %v4209_v50 = vcombine.high %v2453_v44, %v2453_v44  ;;  %v5115_v58 = vld [vmem:[%s5524_s18 + $0x284] ss:$16 sps:$4 sm:$0xff]  }
 0x52d   : > { %v2474_v47 = vshrl.u32 %v4209_v50, 16  ;;  %v5113_v50 = vld [vmem:[%s5524_s18 + $0x280] ss:$16 sps:$4 sm:$0xff]  }
 0x540   : > { %v4529_v3 = vpop.f32.mrb[40].mxu0  ;;  %v4551_v60 = vpop.f32.mrb[40].mxu1 }
 0x541   : > { %v4530_v5 = vpop.f32.mrb[41].mxu0  ;;  %v4552_v6 = vpop.f32.mrb[41].mxu1 }
 0x542   : > { %v4531_v7 = vadd.f32 %v4530_v5, %v4529_v3  ;;  %v4532_v8 = vpop.f32.mrb[42].mxu0  ;;  %v4553_v9 = vadd.f32 %v4552_v6, %v4551_v60  ;;  %v4554_v10 = vpop.f32.mrb[42].mxu1  ;;  %v2476_v6 = vrot.slane %v2474_v47, 2  ;;  %v5119_v47 = vld [vmem:[%s5524_s18 + $0x2a0] ss:$16 sps:$4 sm:$0xff]  }
 0x543   : > { %v4533_v12 = vpop.f32.mrb[43].mxu0  ;;  %v4555_v0 = vpop.f32.mrb[43].mxu1  ;;  %v2484_v8 = vrot.slane %v2482_v51, 2  ;;  %v5122_v51 = vld [vmem:[%s5524_s18 + $0x2a8] ss:$16 sps:$4 sm:$0xff]  }
 0x544   : > { %v2155_v13 = vadd.f32 %v6280_v11, %v4531_v7  ;;  %v4208_v7 = vcombine.low %v2453_v44, %v2453_v44 }
 0x546   : > { %v2195_v14 = vadd.f32 %v4553_v9, %v2155_v13  ;;  %v4210_v9 = vcombine.low %v2454_v15, %v2454_v15  ;;  %v2470_v10 = vshrl.u32 %v4208_v7, 16  ;;  %v5131_v7 = vld [vmem:[%s5524_s18 + $0x2e0] ss:$16 sps:$4 sm:$0xff]  }
 0x548   : > { %v2478_v12 = vshrl.u32 %v4210_v9, 16  ;;  %v2472_v0 = vrot.slane %v2470_v10, 2  ;;  %v5136_v9 = vld [vmem:[%s5524_s18 + $0x2ec] ss:$16 sps:$4 sm:$0xff]   ;;  %v5134_v10 = vld [vmem:[%s5524_s18 + $0x2e8] ss:$16 sps:$4 sm:$0xff]  }
 0x54a   : > { %v2480_v13 = vrot.slane %v2478_v12, 2 }
 0x550   : > { %v2234_v59 = vpop.f32.mrb[44].mxu0 }
 0x551   : > { %v2235_v39 = vadd.f32 %v2234_v59, %v2195_v14  ;;  %v4811_v48 = vpop.f32.mrb[45].mxu0  ;;  %v5112_v14 = vld [vmem:[%s5519_s12 + $0x10] ss:$0 sps:$4 sm:$0x44]   ;;  %v5116_v59 = vld [vmem:[%s5524_s18 + $0x288] ss:$16 sps:$4 sm:$0xff]  }
 0x552   : > { %v2237_v46 = vpop.f32.mrb[46].mxu0  ;;  %v2486_v44 = vshrl.u32 %v5112_v14, 16  ;;  %v5121_v48 = vld [vmem:[%s5524_s18 + $0x2a4] ss:$16 sps:$4 sm:$0xff]  }
 0x553   : > { %v2240_v3 = vmax.f32 %v2235_v39, 0.0  ;;  %v4812_v60 = vpop.f32.mrb[47].mxu0  ;;  %v5118_v39 = vld [vmem:[%s5524_s18 + $0x28c] ss:$16 sps:$4 sm:$0xff]  }
 0x554   : > { %v2488_v15 = vrot.slane %v2486_v44, 2  ;;  %v5124_v46 = vld [vmem:[%s5524_s18 + $0x2ac] ss:$16 sps:$4 sm:$0xff]  }
 0x555   : > { %v2241_v5 = vpack.c.bf16 %v2240_v3, %v2240_v3  ;;  %v5127_v3 = vld [vmem:[%s5524_s18 + $0x2c4] ss:$16 sps:$4 sm:$0xff]   ;;  %v5130_v60 = vld [vmem:[%s5524_s18 + $0x2cc] ss:$16 sps:$4 sm:$0xff]  }
 0x557   : > { %4206 = vmatmul.mubr.msk.bf16.vlgmr.msra.gmra.mrb[44].mxu1 %vm647_vm2, %v2241_v5  ;;  %4207 = vmatmul.mubr.msk.bf16.vlgmr.msra.gmra.mrb[48].mxu0 %vm647_vm2, %v2241_v5  ;;  %v5125_v5 = vld [vmem:[%s5524_s18 + $0x2c0] ss:$16 sps:$4 sm:$0xff]  }
 0x558   : > { %4563 = vmatpush3.bf16.msra.mxu1 %v5965_v16  ;;  %4585 = vmatpush3.bf16.msra.mxu0 %v5971_v17 }
 0x559   : > { %4564 = vmatprep.subr.bf16.mxu1 %v5977_v18  ;;  %4586 = vmatprep.subr.bf16.mxu0 %v5983_v19 }
 0x55a   : > { %2528 = vmatprep.mubr.bf16.mxu1 %v2476_v6  ;;  %2568 = vmatprep.mubr.bf16.mxu0 %v2484_v8  ;;  %v5128_v6 = vld [vmem:[%s5524_s18 + $0x2c8] ss:$16 sps:$4 sm:$0xff]   ;;  %v5133_v8 = vld [vmem:[%s5524_s18 + $0x2e4] ss:$16 sps:$4 sm:$0xff]  }
 0x55c   : > { %4565 = vmatpush3.bf16.msra.mxu1 %v5989_v20  ;;  %4587 = vmatpush3.bf16.msra.mxu0 %v5995_v21 }
 0x55d   : > { %4566 = vmatprep.subr.bf16.mxu1 %v6001_v22  ;;  %4588 = vmatprep.subr.bf16.mxu0 %v6007_v23 }
 0x560   : > { %4567 = vmatpush3.bf16.msra.mxu1 %v6013_v24  ;;  %4589 = vmatpush3.bf16.msra.mxu0 %v6019_v25 }
 0x561   : > { %4568 = vmatprep.subr.bf16.mxu1 %v6025_v28  ;;  %4590 = vmatprep.subr.bf16.mxu0 %v6031_v29 }
 0x564   : > { %4569 = vmatpush3.bf16.msra.mxu1 %v6037_v30  ;;  %4591 = vmatpush3.bf16.msra.mxu0 %v6043_v31 }
 0x565   : > { %4570 = vmatprep.subr.bf16.mxu1 %v6049_v32  ;;  %4592 = vmatprep.subr.bf16.mxu0 %v6055_v36 }
 0x568   : > { %4571 = vmatpush3.bf16.msra.mxu1 %v6061_v41  ;;  %4593 = vmatpush3.bf16.msra.mxu0 %v6067_v42 }
 0x569   : > { %4572 = vmatprep.subr.bf16.mxu1 %v6073_v43  ;;  %4594 = vmatprep.subr.bf16.mxu0 %v6079_v61 }
 0x56c   : > { %4573 = vmatpush3.bf16.msra.mxu1 %v6089_v54  ;;  %4595 = vmatpush3.bf16.msra.mxu0 %v6095_v55 }
 0x56d   : > { %4574 = vmatprep.subr.bf16.mxu1 %v6101_v56  ;;  %4596 = vmatprep.subr.bf16.mxu0 %v6107_v57 }
 0x570   : > { %4575 = vmatpush3.bf16.msra.mxu1 %v6113_v63  ;;  %4597 = vmatpush3.bf16.msra.mxu0 %v6119_v33 }
 0x571   : > { %4576 = vmatprep.subr.bf16.mxu1 %v6125_v34  ;;  %4598 = vmatprep.subr.bf16.mxu0 %v6131_v38 }
 0x574   : > { %4577 = vmatpush3.bf16.msra.mxu1 %v6137_v49  ;;  %4599 = vmatpush3.bf16.msra.mxu0 %v6143_v40 }
 0x575   : > { %4813 = vmatprep.subr.bf16.mxu1 %v5396_v37  ;;  %2717 = vmatprep.subr.bf16.mxu0 %v5115_v58 }
 0x577   : > { %2529 = vmatmul.mubr.bf16.vlgmr.msra.gmra.mrb[48].mxu1 %v2472_v0  ;;  %2569 = vmatmul.mubr.bf16.vlgmr.msra.gmra.mrb[52].mxu0 %v2480_v13 }
 0x578   : > { %4814 = vmatpush3.bf16.msra.mxu1 %v6150_v45  ;;  %4821 = vmatprep.mubr.msk.bf16.mxu1 %vm5397_vm1, %v5396_v37 }
 0x579   : > { %4815 = vmatprep.subr.bf16.mxu1 %v5396_v37  ;;  %2749 = vmatprep.mubr.bf16.mxu0 %v5398_v62 }
 0x57a   : > { %2718 = vmatpush1.bf16.msra.mxu0 %v5113_v50 }
 0x57b   : > { %2719 = vmatprep.subr.bf16.mxu0 %v5121_v48 }
 0x57c   : > { %4816 = vmatpush3.bf16.msra.mxu1 %v6161_v2 }
 0x57d   : > { %4817 = vmatprep.subr.bf16.mxu1 %v5396_v37 }
 0x57e   : > { %2720 = vmatpush1.bf16.msra.mxu0 %v5119_v47 }
 0x57f   : > { %2721 = vmatprep.subr.bf16.mxu0 %v5127_v3 }
 0x580   : > { %4818 = vmatpush3.bf16.msra.mxu1 %v6168_v4 }
 0x581   : > { %4819 = vmatprep.subr.bf16.mxu1 %v5396_v37 }
 0x582   : > { %2722 = vmatpush1.bf16.msra.mxu0 %v5125_v5 }
 0x583   : > { %2723 = vmatprep.subr.bf16.mxu0 %v5133_v8 }
 0x584   : > { %4820 = vmatpush3.bf16.msra.mxu1 %v6248_v52 }
 0x585   : > { %2758 = vmatprep.subr.bf16.mxu1 %v5118_v39 }
 0x586   : > { %2724 = vmatpush1.bf16.msra.mxu0 %v5131_v7 }
 0x587   : > { %4822 = vmatmul.mubr.msk.bf16.vlgmr.msra.gmra.mrb[52].mxu1 %vm647_vm2, %v2488_v15  ;;  %4611 = vmatprep.subr.bf16.mxu0 %v5931_v26 }
 0x588   : > { %2790 = vmatprep.mubr.bf16.mxu1 %v5398_v62  ;;  %2759 = vmatpush1.bf16.msra.mxu1 %v5116_v59 }
 0x589   : > { %2760 = vmatprep.subr.bf16.mxu1 %v5124_v46 }
 0x58c   : > { %2761 = vmatpush1.bf16.msra.mxu1 %v5122_v51 }
 0x58d   : > { %2762 = vmatprep.subr.bf16.mxu1 %v5130_v60 }
 0x590   : > { %2763 = vmatpush1.bf16.msra.mxu1 %v5128_v6 }
 0x591   : > { %2764 = vmatprep.subr.bf16.mxu1 %v5136_v9 }
 0x594   : > { %2765 = vmatpush1.bf16.msra.mxu1 %v5134_v10 }
 0x595   : > { %4633 = vmatprep.subr.bf16.mxu1 %v5937_v27 }
 0x62a   : > { %v2375_v12 = vpop.f32.mrb[44].mxu1  ;;  %v2416_v0 = vpop.f32.mrb[48].mxu0 }
 0x62b   : > { %v2377_v13 = vpop.f32.mrb[45].mxu1  ;;  %v2418_v14 = vpop.f32.mrb[49].mxu0 }
 0x62c   : > { %v2427_v44 = vcombine.low %v2375_v12, %v2377_v13  ;;  %v2428_v15 = vcombine.low %v2416_v0, %v2418_v14  ;;  %v2379_v50 = vpop.f32.mrb[46].mxu1  ;;  %v2420_v58 = vpop.f32.mrb[50].mxu0  ;;  %v2829_v14 = vld [vmem:[%s5519_s12] sm:$0x88] }
 0x62d   : > { %v2380_v59 = vpop.f32.mrb[47].mxu1  ;;  %v2421_v39 = vpop.f32.mrb[51].mxu0 }
 0x62e   : > { %v2435_v48 = vrot.slane %v2427_v44, %v5853_v35  ;;  %v2442_v46 = vrot.slane %v2428_v15, %v5853_v35  ;;  %v2830_v44 = vld [vmem:[%s5519_s12 + $0x8] sm:$0x88]  ;;  %v4233_v59 = vcombine.high %v2829_v14, %v2829_v14 }
 0x62f   : > { %v4235_v39 = vcombine.high %v2830_v44, %v2830_v44 }
 0x630   : > { %v2443_v47 = vcombine.low %v2435_v48, %v2442_v46 }
 0x632   : > { %v2450_v26 = vrot.slane %v2443_v47, %v5853_v35 }
 0x634   : > { %v6353_v27 = vadd.f32 %v2450_v26, %v6275_v53  ;;  %v2846_v26 = vrot.slane %v4233_v59, 3 }
 0x64a   : > { %v4578_v51 = vpop.f32.mrb[48].mxu1  ;;  %v4600_v3 = vpop.f32.mrb[52].mxu0 }
 0x64b   : > { %v4579_v60 = vpop.f32.mrb[49].mxu1  ;;  %v4601_v5 = vpop.f32.mrb[53].mxu0 }
 0x64c   : > { %v4580_v6 = vadd.f32 %v4579_v60, %v4578_v51  ;;  %v4581_v8 = vpop.f32.mrb[50].mxu1  ;;  %v4602_v7 = vadd.f32 %v4601_v5, %v4600_v3  ;;  %v4603_v9 = vpop.f32.mrb[54].mxu0  ;;  %v2848_v51 = vrot.slane %v4235_v39, 3  ;;  %v6434_v39 = vld [vmem:[%s5519_s12] sm:$0x88] }
 0x64d   : > { %v4582_v10 = vpop.f32.mrb[51].mxu1  ;;  %v4604_v12 = vpop.f32.mrb[55].mxu0 }
 0x64e   : > { %v2531_v0 = vadd.f32 %v6280_v11, %v4580_v6 }
 0x650   : > { %v2571_v13 = vadd.f32 %v4602_v7, %v2531_v0 }
 0x65a   : > { %v2610_v15 = vpop.f32.mrb[52].mxu1 }
 0x65b   : > { %v2611_v50 = vadd.f32 %v2610_v15, %v2571_v13  ;;  %v4823_v58 = vpop.f32.mrb[53].mxu1 }
 0x65c   : > { %v2613_v53 = vpop.f32.mrb[54].mxu1 }
 0x65d   : > { %v2616_v48 = vmax.f32 %v2611_v50, 0.0  ;;  %v4824_v46 = vpop.f32.mrb[55].mxu1 }
 0x65f   : > { %v2617_v47 = vpack.c.bf16 %v2616_v48, %v2616_v48  ;;  %v6437_v48 = vld [vmem:[%s5519_s12 + $0x8] sm:$0x88] }
 0x660   : > { %v4259_v46 = vcombine.high %v6437_v48, %v6437_v48 }
 0x661   : > { %4230 = vmatmul.mubr.msk.bf16.vlgmr.msra.gmra.mrb[56].mxu0 %vm647_vm2, %v2617_v47  ;;  %4231 = vmatmul.mubr.msk.bf16.vlgmr.msra.gmra.mrb[56].mxu1 %vm647_vm2, %v2617_v47 }
 0x662   : > { %4612 = vmatpush3.bf16.msra.mxu0 %v5965_v16  ;;  %4634 = vmatpush3.bf16.msra.mxu1 %v5971_v17  ;;  %v4232_v16 = vcombine.low %v2829_v14, %v2829_v14  ;;  %v4234_v17 = vcombine.low %v2830_v44, %v2830_v44 }
 0x663   : > { %4613 = vmatprep.subr.bf16.mxu0 %v5977_v18  ;;  %4635 = vmatprep.subr.bf16.mxu1 %v5983_v19 }
 0x664   : > { %2889 = vmatprep.mubr.bf16.mxu0 %v2846_v26  ;;  %2929 = vmatprep.mubr.bf16.mxu1 %v2848_v51  ;;  %v2845_v18 = vrot.slane %v4232_v16, 3  ;;  %v2847_v19 = vrot.slane %v4234_v17, 3 }
 0x666   : > { %4614 = vmatpush3.bf16.msra.mxu0 %v5989_v20  ;;  %4636 = vmatpush3.bf16.msra.mxu1 %v5995_v21  ;;  %v5141_v20 = vld [vmem:[%s5519_s12 + $0x10] ss:$0 sps:$4 sm:$0x88]  }
 0x667   : > { %4615 = vmatprep.subr.bf16.mxu0 %v6001_v22  ;;  %4637 = vmatprep.subr.bf16.mxu1 %v6007_v23  ;;  %v2849_v21 = vrot.slane %v5141_v20, 3  ;;  %v5142_v22 = vld [vmem:[%s5524_s18 + $0x300] ss:$16 sps:$4 sm:$0xff]   ;;  %v5144_v23 = vld [vmem:[%s5524_s18 + $0x304] ss:$16 sps:$4 sm:$0xff]  }
 0x66a   : > { %4616 = vmatpush3.bf16.msra.mxu0 %v6013_v24  ;;  %4638 = vmatpush3.bf16.msra.mxu1 %v6019_v25  ;;  %v5145_v24 = vld [vmem:[%s5524_s18 + $0x308] ss:$16 sps:$4 sm:$0xff]   ;;  %v5147_v25 = vld [vmem:[%s5524_s18 + $0x30c] ss:$16 sps:$4 sm:$0xff]  }
 0x66b   : > { %4617 = vmatprep.subr.bf16.mxu0 %v6025_v28  ;;  %4639 = vmatprep.subr.bf16.mxu1 %v6031_v29  ;;  %v5150_v28 = vld [vmem:[%s5524_s18 + $0x324] ss:$16 sps:$4 sm:$0xff]   ;;  %v5153_v29 = vld [vmem:[%s5524_s18 + $0x32c] ss:$16 sps:$4 sm:$0xff]  }
 0x66e   : > { %4618 = vmatpush3.bf16.msra.mxu0 %v6037_v30  ;;  %4640 = vmatpush3.bf16.msra.mxu1 %v6043_v31  ;;  %v5148_v30 = vld [vmem:[%s5524_s18 + $0x320] ss:$16 sps:$4 sm:$0xff]   ;;  %v5151_v31 = vld [vmem:[%s5524_s18 + $0x328] ss:$16 sps:$4 sm:$0xff]  }
 0x66f   : > { %4619 = vmatprep.subr.bf16.mxu0 %v6049_v32  ;;  %4641 = vmatprep.subr.bf16.mxu1 %v6055_v36  ;;  %v5156_v32 = vld [vmem:[%s5524_s18 + $0x344] ss:$16 sps:$4 sm:$0xff]   ;;  %v5159_v36 = vld [vmem:[%s5524_s18 + $0x34c] ss:$16 sps:$4 sm:$0xff]  }
 0x672   : > { %4620 = vmatpush3.bf16.msra.mxu0 %v6061_v41  ;;  %4642 = vmatpush3.bf16.msra.mxu1 %v6067_v42  ;;  %v5154_v41 = vld [vmem:[%s5524_s18 + $0x340] ss:$16 sps:$4 sm:$0xff]   ;;  %v5157_v42 = vld [vmem:[%s5524_s18 + $0x348] ss:$16 sps:$4 sm:$0xff]  }
 0x673   : > { %4621 = vmatprep.subr.bf16.mxu0 %v6073_v43  ;;  %4643 = vmatprep.subr.bf16.mxu1 %v6079_v61  ;;  %v5162_v43 = vld [vmem:[%s5524_s18 + $0x364] ss:$16 sps:$4 sm:$0xff]   ;;  %v5160_v61 = vld [vmem:[%s5524_s18 + $0x360] ss:$16 sps:$4 sm:$0xff]  }
 0x676   : > { %4622 = vmatpush3.bf16.msra.mxu0 %v6089_v54  ;;  %4644 = vmatpush3.bf16.msra.mxu1 %v6095_v55  ;;  %v5165_v54 = vld [vmem:[%s5524_s18 + $0x36c] ss:$16 sps:$4 sm:$0xff]   ;;  %v5163_v55 = vld [vmem:[%s5524_s18 + $0x368] ss:$16 sps:$4 sm:$0xff]  }
 0x677   : > { %4623 = vmatprep.subr.bf16.mxu0 %v6101_v56  ;;  %4645 = vmatprep.subr.bf16.mxu1 %v6107_v57  ;;  %v5232_v56 = vld [vmem:[%s6749_s1 + $0x40] sm:$0xff]  }
 0x678   : > { %v5233_v57 = vld [vmem:[%s6749_s1 + $0xc0] sm:$0xff]  }
 0x67a   : > { %4624 = vmatpush3.bf16.msra.mxu0 %v6113_v63  ;;  %4646 = vmatpush3.bf16.msra.mxu1 %v6119_v33 }
 0x67b   : > { %4625 = vmatprep.subr.bf16.mxu0 %v6125_v34  ;;  %4647 = vmatprep.subr.bf16.mxu1 %v6131_v38 }
 0x67e   : > { %4626 = vmatpush3.bf16.msra.mxu0 %v6137_v49  ;;  %4648 = vmatpush3.bf16.msra.mxu1 %v6143_v40 }
 0x67f   : > { %4825 = vmatprep.subr.bf16.mxu0 %v5396_v37  ;;  %3078 = vmatprep.subr.bf16.mxu1 %v5144_v23 }
 0x681   : > { %2890 = vmatmul.mubr.bf16.vlgmr.msra.gmra.mrb[60].mxu0 %v2845_v18  ;;  %2930 = vmatmul.mubr.bf16.vlgmr.msra.gmra.mrb[60].mxu1 %v2847_v19  ;;  %v3219_v18 = vshrl.u32 %v4259_v46, 16  ;;  %v5176_v46 = vld [vmem:[%s5524_s18 + $0x38c] ss:$16 sps:$4 sm:$0xff]  }
 0x682   : > { %4826 = vmatpush3.bf16.msra.mxu0 %v6150_v45  ;;  %4833 = vmatprep.mubr.msk.bf16.mxu0 %vm5397_vm1, %v5396_v37 }
 0x683   : > { %4827 = vmatprep.subr.bf16.mxu0 %v5396_v37  ;;  %3110 = vmatprep.mubr.bf16.mxu1 %v5398_v62  ;;  %v3221_v23 = vrot.slane %v3219_v18, 3  ;;  %v5191_v18 = vld [vmem:[%s5524_s18 + $0x3e4] ss:$16 sps:$4 sm:$0xff]  }
 0x684   : > { %3079 = vmatpush1.bf16.msra.mxu1 %v5142_v22 }
 0x685   : > { %3080 = vmatprep.subr.bf16.mxu1 %v5150_v28  ;;  %v5236_v28 = vld [vmem:[%s6749_s1 + $0x48] sm:$0xff]  }
 0x686   : > { %4828 = vmatpush3.bf16.msra.mxu0 %v6161_v2 }
 0x687   : > { %4829 = vmatprep.subr.bf16.mxu0 %v5396_v37 }
 0x688   : > { %3081 = vmatpush1.bf16.msra.mxu1 %v5148_v30  ;;  %v5238_v30 = vld [vmem:[%s6749_s1 + $0x8] sm:$0xff]  }
 0x689   : > { %3082 = vmatprep.subr.bf16.mxu1 %v5156_v32  ;;  %v5240_v32 = vld [vmem:[%s6749_s1 + $0x50] sm:$0xff]  }
 0x68a   : > { %4830 = vmatpush3.bf16.msra.mxu0 %v6168_v4 }
 0x68b   : > { %4831 = vmatprep.subr.bf16.mxu0 %v5396_v37 }
 0x68c   : > { %3083 = vmatpush1.bf16.msra.mxu1 %v5154_v41  ;;  %v5242_v41 = vld [vmem:[%s6749_s1 + $0x10] sm:$0xff]  }
 0x68d   : > { %3084 = vmatprep.subr.bf16.mxu1 %v5162_v43  ;;  %v5244_v43 = vld [vmem:[%s6749_s1 + $0x58] sm:$0xff]  }
 0x68e   : > { %4832 = vmatpush3.bf16.msra.mxu0 %v6248_v52 }
 0x68f   : > { %3119 = vmatprep.subr.bf16.mxu0 %v5147_v25  ;;  %v5235_v25 = vld [vmem:[%s6749_s1 + $0x80] sm:$0xff]  }
 0x690   : > { %3085 = vmatpush1.bf16.msra.mxu1 %v5160_v61  ;;  %v5245_v61 = vld [vmem:[%s6749_s1 + $0xd8] sm:$0xff]  }
 0x691   : > { %4834 = vmatmul.mubr.msk.bf16.vlgmr.msra.gmra.mrb[64].mxu0 %vm647_vm2, %v2849_v21  ;;  %4660 = vmatprep.subr.bf16.mxu1 %v5232_v56  ;;  %v5248_v56 = vld [vmem:[%s6749_s1 + $0x60] sm:$0xff]  }
 0x692   : > { %3151 = vmatprep.mubr.bf16.mxu0 %v5398_v62  ;;  %3120 = vmatpush1.bf16.msra.mxu0 %v5145_v24  ;;  %v5234_v24 = vld [vmem:[%s6749_s1] sm:$0xff]  }
 0x693   : > { %3121 = vmatprep.subr.bf16.mxu0 %v5153_v29  ;;  %v5237_v29 = vld [vmem:[%s6749_s1 + $0xc8] sm:$0xff]  }
 0x696   : > { %3122 = vmatpush1.bf16.msra.mxu0 %v5151_v31  ;;  %v5239_v31 = vld [vmem:[%s6749_s1 + $0x88] sm:$0xff]  }
 0x697   : > { %3123 = vmatprep.subr.bf16.mxu0 %v5159_v36  ;;  %v5241_v36 = vld [vmem:[%s6749_s1 + $0xd0] sm:$0xff]  }
 0x69a   : > { %3124 = vmatpush1.bf16.msra.mxu0 %v5157_v42  ;;  %v5243_v42 = vld [vmem:[%s6749_s1 + $0x90] sm:$0xff]  }
 0x69b   : > { %3125 = vmatprep.subr.bf16.mxu0 %v5165_v54  ;;  %v5246_v54 = vld [vmem:[%s6749_s1 + $0x18] sm:$0xff]  }
 0x69e   : > { %3126 = vmatpush1.bf16.msra.mxu0 %v5163_v55  ;;  %v5247_v55 = vld [vmem:[%s6749_s1 + $0x98] sm:$0xff]  }
 0x69f   : > { %4682 = vmatprep.subr.bf16.mxu0 %v5233_v57  ;;  %v5249_v57 = vld [vmem:[%s6749_s1 + $0xe0] sm:$0xff]  }
 0x734   : > { %v2751_v63 = vpop.f32.mrb[56].mxu0  ;;  %v2792_v33 = vpop.f32.mrb[56].mxu1 }
 0x735   : > { %v2753_v34 = vpop.f32.mrb[57].mxu0  ;;  %v2794_v38 = vpop.f32.mrb[57].mxu1 }
 0x736   : > { %v2803_v49 = vcombine.low %v2751_v63, %v2753_v34  ;;  %v2804_v40 = vcombine.low %v2792_v33, %v2794_v38  ;;  %v2755_v45 = vpop.f32.mrb[58].mxu0  ;;  %v2796_v2 = vpop.f32.mrb[58].mxu1  ;;  %v5250_v63 = vld [vmem:[%s6749_s1 + $0x20] sm:$0xff]   ;;  %v5252_v34 = vld [vmem:[%s6749_s1 + $0x68] sm:$0xff]  }
 0x737   : > { %v2756_v4 = vpop.f32.mrb[59].mxu0  ;;  %v2797_v3 = vpop.f32.mrb[59].mxu1  ;;  %v5251_v33 = vld [vmem:[%s6749_s1 + $0xa0] sm:$0xff]   ;;  %v5253_v38 = vld [vmem:[%s6749_s1 + $0xe8] sm:$0xff]  }
 0x738   : > { %v2811_v60 = vrot.slane %v2803_v49, %v5853_v35  ;;  %v2818_v5 = vrot.slane %v2804_v40, %v5853_v35  ;;  %v4256_v49 = vcombine.low %v6434_v39, %v6434_v39  ;;  %v4258_v40 = vcombine.low %v6437_v48, %v6437_v48  ;;  %v5254_v45 = vld [vmem:[%s6749_s1 + $0x28] sm:$0xff]   ;;  %v5256_v4 = vld [vmem:[%s6749_s1 + $0x70] sm:$0xff]  }
 0x739   : > { %v5255_v2 = vld [vmem:[%s6749_s1 + $0xa8] sm:$0xff]   ;;  %v5257_v3 = vld [vmem:[%s6749_s1 + $0xf0] sm:$0xff]  }
 0x73a   : > { %v2819_v6 = vcombine.low %v2811_v60, %v2818_v5  ;;  %v3207_v60 = vshrl.u32 %v4256_v49, 16  ;;  %v3215_v5 = vshrl.u32 %v4258_v40, 16  ;;  %v5173_v48 = vld [vmem:[%s5524_s18 + $0x384] ss:$16 sps:$4 sm:$0xff]  }
 0x73c   : > { %v2826_v8 = vrot.slane %v2819_v6, %v5853_v35  ;;  %v5258_v6 = vld [vmem:[%s6749_s1 + $0x30] sm:$0xff]  }
 0x73e   : > { %v6430_v7 = vadd.f32 %v2826_v8, %v6353_v27  ;;  %v4257_v27 = vcombine.high %v6434_v39, %v6434_v39  ;;  %v5259_v8 = vld [vmem:[%s6749_s1 + $0xb0] sm:$0xff]  }
 0x73f   : > { %v5171_v39 = vld [vmem:[%s5524_s18 + $0x380] ss:$16 sps:$4 sm:$0xff]  }
 0x740   : > { %v3211_v17 = vshrl.u32 %v4257_v27, 16  ;;  %v5174_v27 = vld [vmem:[%s5524_s18 + $0x388] ss:$16 sps:$4 sm:$0xff]  }
 0x742   : > { %v3213_v22 = vrot.slane %v3211_v17, 3  ;;  %v5186_v17 = vld [vmem:[%s5524_s18 + $0x3c8] ss:$16 sps:$4 sm:$0xff]  }
 0x754   : > { %v4627_v9 = vpop.f32.mrb[60].mxu0  ;;  %v4649_v10 = vpop.f32.mrb[60].mxu1 }
 0x755   : > { %v4628_v12 = vpop.f32.mrb[61].mxu0  ;;  %v4650_v0 = vpop.f32.mrb[61].mxu1 }
 0x756   : > { %v4629_v13 = vadd.f32 %v4628_v12, %v4627_v9  ;;  %v4630_v14 = vpop.f32.mrb[62].mxu0  ;;  %v4651_v44 = vadd.f32 %v4650_v0, %v4649_v10  ;;  %v4652_v15 = vpop.f32.mrb[62].mxu1  ;;  %v5260_v9 = vld [vmem:[%s6749_s1 + $0x78] sm:$0xff]   ;;  %v3209_v12 = vrot.slane %v3207_v60, 3  ;;  %v3217_v0 = vrot.slane %v3215_v5, 3 }
 0x757   : > { %v4631_v50 = vpop.f32.mrb[63].mxu0  ;;  %v4653_v58 = vpop.f32.mrb[63].mxu1  ;;  %v5261_v10 = vld [vmem:[%s6749_s1 + $0xf8] sm:$0xff]   ;;  %v5170_v15 = vld [vmem:[%s5519_s12 + $0x10] ss:$0 sps:$4 sm:$0x88]  }
 0x758   : > { %v2892_v53 = vadd.f32 %v6280_v11, %v4629_v13  ;;  %v5262_v13 = vld [vmem:[%s6749_s1 + $0x38] sm:$0xff]   ;;  %v5265_v50 = vld [vmem:[%s6749_s1 + $0x108] sm:$0xff]   ;;  %v3223_v58 = vshrl.u32 %v5170_v15, 16 }
 0x759   : > { %v5263_v14 = vld [vmem:[%s6749_s1 + $0xb8] sm:$0xff]  }
 0x75a   : > { %v2932_v59 = vadd.f32 %v4651_v44, %v2892_v53  ;;  %v5264_v44 = vld [vmem:[%s6749_s1 + $0x100] sm:$0xff]   ;;  %v5266_v53 = vld [vmem:[%s6749_s1 + $0x110] sm:$0xff]  }
 0x764   : > { %v2971_v47 = vpop.f32.mrb[64].mxu0 }
 0x765   : > { %v2972_v26 = vadd.f32 %v2971_v47, %v2932_v59  ;;  %v4835_v51 = vpop.f32.mrb[65].mxu0  ;;  %v3225_v59 = vrot.slane %v3223_v58, 3  ;;  %v5179_v47 = vld [vmem:[%s5524_s18 + $0x3a4] ss:$16 sps:$4 sm:$0xff]  }
 0x766   : > { %v2974_v16 = vpop.f32.mrb[66].mxu0  ;;  %v5188_v51 = vld [vmem:[%s5524_s18 + $0x3cc] ss:$16 sps:$4 sm:$0xff]  }
 0x767   : > { %v2977_v19 = vmax.f32 %v2972_v26, 0.0  ;;  %v4836_v20 = vpop.f32.mrb[67].mxu0  ;;  %v5182_v26 = vld [vmem:[%s5524_s18 + $0x3ac] ss:$16 sps:$4 sm:$0xff]   ;;  %v5183_v16 = vld [vmem:[%s5524_s18 + $0x3c0] ss:$16 sps:$4 sm:$0xff]  }
 0x768   : > { %v5189_v20 = vld [vmem:[%s5524_s18 + $0x3e0] ss:$16 sps:$4 sm:$0xff]  }
 0x769   : > { %v2978_v21 = vpack.c.bf16 %v2977_v19, %v2977_v19  ;;  %v5194_v19 = vld [vmem:[%s5524_s18 + $0x3ec] ss:$16 sps:$4 sm:$0xff]  }
 0x76b   : > { %4254 = vmatmul.mubr.msk.bf16.vlgmr.msra.gmra.mrb[64].mxu1 %vm647_vm2, %v2978_v21  ;;  %4255 = vmatmul.mubr.msk.bf16.vlgmr.msra.gmra.mrb[68].mxu0 %vm647_vm2, %v2978_v21  ;;  %v5192_v21 = vld [vmem:[%s5524_s18 + $0x3e8] ss:$16 sps:$4 sm:$0xff]  }
 0x76c   : > { %4661 = vmatpush3.bf16.msra.mxu1 %v5234_v24  ;;  %4683 = vmatpush3.bf16.msra.mxu0 %v5235_v25 }
 0x76d   : > { %4662 = vmatprep.subr.bf16.mxu1 %v5236_v28  ;;  %4684 = vmatprep.subr.bf16.mxu0 %v5237_v29 }
 0x76e   : > { %3265 = vmatprep.mubr.bf16.mxu1 %v3213_v22  ;;  %3305 = vmatprep.mubr.bf16.mxu0 %v3221_v23 }
 0x770   : > { %4663 = vmatpush3.bf16.msra.mxu1 %v5238_v30  ;;  %4685 = vmatpush3.bf16.msra.mxu0 %v5239_v31 }
 0x771   : > { %4664 = vmatprep.subr.bf16.mxu1 %v5240_v32  ;;  %4686 = vmatprep.subr.bf16.mxu0 %v5241_v36 }
 0x774   : > { %4665 = vmatpush3.bf16.msra.mxu1 %v5242_v41  ;;  %4687 = vmatpush3.bf16.msra.mxu0 %v5243_v42 }
 0x775   : > { %4666 = vmatprep.subr.bf16.mxu1 %v5244_v43  ;;  %4688 = vmatprep.subr.bf16.mxu0 %v5245_v61 }
 0x778   : > { %4667 = vmatpush3.bf16.msra.mxu1 %v5246_v54  ;;  %4689 = vmatpush3.bf16.msra.mxu0 %v5247_v55 }
 0x779   : > { %4668 = vmatprep.subr.bf16.mxu1 %v5248_v56  ;;  %4690 = vmatprep.subr.bf16.mxu0 %v5249_v57 }
 0x77c   : > { %4669 = vmatpush3.bf16.msra.mxu1 %v5250_v63  ;;  %4691 = vmatpush3.bf16.msra.mxu0 %v5251_v33 }
 0x77d   : > { %4670 = vmatprep.subr.bf16.mxu1 %v5252_v34  ;;  %4692 = vmatprep.subr.bf16.mxu0 %v5253_v38 }
 0x780   : > { %4671 = vmatpush3.bf16.msra.mxu1 %v5254_v45  ;;  %4693 = vmatpush3.bf16.msra.mxu0 %v5255_v2 }
 0x781   : > { %4672 = vmatprep.subr.bf16.mxu1 %v5256_v4  ;;  %4694 = vmatprep.subr.bf16.mxu0 %v5257_v3 }
 0x784   : > { %4673 = vmatpush3.bf16.msra.mxu1 %v5258_v6  ;;  %4695 = vmatpush3.bf16.msra.mxu0 %v5259_v8 }
 0x785   : > { %4674 = vmatprep.subr.bf16.mxu1 %v5260_v9  ;;  %4696 = vmatprep.subr.bf16.mxu0 %v5261_v10 }
 0x788   : > { %4675 = vmatpush3.bf16.msra.mxu1 %v5262_v13  ;;  %4697 = vmatpush3.bf16.msra.mxu0 %v5263_v14 }
 0x789   : > { %4837 = vmatprep.subr.bf16.mxu1 %v5396_v37  ;;  %3454 = vmatprep.subr.bf16.mxu0 %v5173_v48 }
 0x78b   : > { %3266 = vmatmul.mubr.bf16.vlgmr.msra.gmra.mrb[68].mxu1 %v3209_v12  ;;  %3306 = vmatmul.mubr.bf16.vlgmr.msra.gmra.mrb[72].mxu0 %v3217_v0 }
 0x78c   : > { %4838 = vmatpush3.bf16.msra.mxu1 %v5264_v44  ;;  %4845 = vmatprep.mubr.msk.bf16.mxu1 %vm5397_vm1, %v5396_v37 }
 0x78d   : > { %4839 = vmatprep.subr.bf16.mxu1 %v5396_v37  ;;  %3486 = vmatprep.mubr.bf16.mxu0 %v5398_v62 }
 0x78e   : > { %3455 = vmatpush1.bf16.msra.mxu0 %v5171_v39 }
 0x78f   : > { %3456 = vmatprep.subr.bf16.mxu0 %v5179_v47  ;;  %v5267_v47 = vld [vmem:[%s6753_s5 + $0x40] sm:$0xff] (!%p4280_p2)  }
 0x790   : > { %4840 = vmatpush3.bf16.msra.mxu1 %v5265_v50 }
 0x791   : > { %4841 = vmatprep.subr.bf16.mxu1 %v5396_v37 }
 0x794   : > { %4842 = vmatpush3.bf16.msra.mxu1 %v5266_v53 }
 0x795   : > { %4843 = vmatprep.subr.bf16.mxu1 %v5396_v37  ;;  %v5177_v37 = vld [vmem:[%s5524_s18 + $0x3a0] ss:$16 sps:$4 sm:$0xff]  }
 0x796   : > { %3457 = vmatpush1.bf16.msra.mxu0 %v5177_v37  ;;  %v5270_v37 = vld [vmem:[%s6753_s5 + $0x80] sm:$0xff] (!%p4280_p2)  }
 0x798   : > { %4844 = vmatpush3.bf16.msra.mxu1 %v6248_v52  ;;  %v5185_v52 = vld [vmem:[%s5524_s18 + $0x3c4] ss:$16 sps:$4 sm:$0xff]  }
 0x799   : > { %3495 = vmatprep.subr.bf16.mxu1 %v5176_v46  ;;  %3458 = vmatprep.subr.bf16.mxu0 %v5185_v52  ;;  %v5272_v52 = vld [vmem:[%s6753_s5 + $0xc8] sm:$0xff] (!%p4280_p2)  }
 0x79a   : > { %3459 = vmatpush1.bf16.msra.mxu0 %v5183_v16  ;;  %v5274_v16 = vld [vmem:[%s6753_s5 + $0x88] sm:$0xff] (!%p4280_p2)  }
 0x79b   : > { %4846 = vmatmul.mubr.msk.bf16.vlgmr.msra.gmra.mrb[72].mxu1 %vm647_vm2, %v3225_v59  ;;  %3460 = vmatprep.subr.bf16.mxu0 %v5191_v18  ;;  %v5276_v18 = vld [vmem:[%s6753_s5 + $0xd0] sm:$0xff] (!%p4280_p2)  }
 0x79c   : > { %3527 = vmatprep.mubr.bf16.mxu1 %v5398_v62  ;;  %3496 = vmatpush1.bf16.msra.mxu1 %v5174_v27  ;;  %v5180_v62 = vld [vmem:[%s5524_s18 + $0x3a8] ss:$16 sps:$4 sm:$0xff]   ;;  %v6771_v27 = vlaneseq }
 0x79d   : > { %3497 = vmatprep.subr.bf16.mxu1 %v5182_v26  ;;  %v5268_v26 = vld [vmem:[%s6753_s5 + $0xc0] sm:$0xff] (!%p4280_p2)  }
 0x79e   : > { %3461 = vmatpush1.bf16.msra.mxu0 %v5189_v20  ;;  %vm3568_vm3 = vcmp.lt.s32.totalorder %v6771_v27, 512  ;;  %v5278_v20 = vld [vmem:[%s6753_s5 + $0x90] sm:$0xff] (!%p4280_p2)  }
 0x79f   : > { %4709 = vmatprep.subr.bf16.mxu0 (!%p4280_p2), %v5267_v47 }
 0x7a0   : > { %3498 = vmatpush1.bf16.msra.mxu1 %v5180_v62  ;;  %v5271_v62 = vld [vmem:[%s6753_s5 + $0x48] sm:$0xff] (!%p4280_p2)  }
 0x7a1   : > { %3499 = vmatprep.subr.bf16.mxu1 %v5188_v51  ;;  %v5273_v51 = vld [vmem:[%s6753_s5 + $0x8] sm:$0xff] (!%p4280_p2)  }
 0x7a4   : > { %3500 = vmatpush1.bf16.msra.mxu1 %v5186_v17  ;;  %v5275_v17 = vld [vmem:[%s6753_s5 + $0x50] sm:$0xff] (!%p4280_p2)  }
 0x7a5   : > { %3501 = vmatprep.subr.bf16.mxu1 %v5194_v19  ;;  %v5277_v19 = vld [vmem:[%s6753_s5 + $0x10] sm:$0xff] (!%p4280_p2)  }
 0x7a8   : > { %3502 = vmatpush1.bf16.msra.mxu1 %v5192_v21  ;;  %v5279_v21 = vld [vmem:[%s6753_s5 + $0x58] sm:$0xff] (!%p4280_p2)  }
 0x7a9   : > { %4731 = vmatprep.subr.bf16.mxu1 (!%p4280_p2), %v5268_v26 }
 0x83e   : > { %v3112_v22 = vpop.f32.mrb[64].mxu1  ;;  %v3153_v23 = vpop.f32.mrb[68].mxu0 }
 0x83f   : > { %v3114_v24 = vpop.f32.mrb[65].mxu1  ;;  %v3155_v25 = vpop.f32.mrb[69].mxu0 }
 0x840   : > { %v3164_v28 = vcombine.low %v3112_v22, %v3114_v24  ;;  %v3165_v29 = vcombine.low %v3153_v23, %v3155_v25  ;;  %v3116_v30 = vpop.f32.mrb[66].mxu1  ;;  %v3157_v31 = vpop.f32.mrb[70].mxu0  ;;  %v5280_v22 = vld [vmem:[%s6753_s5 + $0xd8] sm:$0xff] (!%p4280_p2)   ;;  %v5283_v25 = vld [vmem:[%s6753_s5 + $0x60] sm:$0xff] (!%p4280_p2)  }
 0x841   : > { %v3117_v32 = vpop.f32.mrb[67].mxu1  ;;  %v3158_v36 = vpop.f32.mrb[71].mxu0  ;;  %v5281_v23 = vld [vmem:[%s6753_s5 + $0x18] sm:$0xff] (!%p4280_p2)   ;;  %v5286_v30 = vld [vmem:[%s6753_s5 + $0xa0] sm:$0xff] (!%p4280_p2)   ;;  %v5287_v31 = vld [vmem:[%s6753_s5 + $0x68] sm:$0xff] (!%p4280_p2)  }
 0x842   : > { %v3172_v41 = vrot.slane %v3164_v28, %v5853_v35  ;;  %v3179_v42 = vrot.slane %v3165_v29, %v5853_v35  ;;  %v5282_v24 = vld [vmem:[%s6753_s5 + $0x98] sm:$0xff] (!%p4280_p2)   ;;  %v5284_v28 = vld [vmem:[%s6753_s5 + $0xe0] sm:$0xff] (!%p4280_p2)   ;;  %v5288_v32 = vld [vmem:[%s6753_s5 + $0xe8] sm:$0xff] (!%p4280_p2)  }
 0x843   : > { %v5285_v29 = vld [vmem:[%s6753_s5 + $0x20] sm:$0xff] (!%p4280_p2)   ;;  %v5289_v36 = vld [vmem:[%s6753_s5 + $0x28] sm:$0xff] (!%p4280_p2)  }
 0x844   : > { %v3180_v43 = vcombine.low %v3172_v41, %v3179_v42  ;;  %v5290_v41 = vld [vmem:[%s6753_s5 + $0xa8] sm:$0xff] (!%p4280_p2)   ;;  %v5291_v42 = vld [vmem:[%s6753_s5 + $0x70] sm:$0xff] (!%p4280_p2)  }
 0x846   : > { %v3187_v61 = vrot.slane %v3180_v43, %v5853_v35  ;;  %v5292_v43 = vld [vmem:[%s6753_s5 + $0xf0] sm:$0xff] (!%p4280_p2)  }
 0x848   : > { %v3189_v54 = vadd.f32 %v3187_v61, %v6430_v7  ;;  %v5293_v61 = vld [vmem:[%s6753_s5 + $0x30] sm:$0xff] (!%p4280_p2)  }
 0x85e   : > { %v4676_v55 = vpop.f32.mrb[68].mxu1  ;;  %v4698_v56 = vpop.f32.mrb[72].mxu0 }
 0x85f   : > { %v4677_v57 = vpop.f32.mrb[69].mxu1  ;;  %v4699_v63 = vpop.f32.mrb[73].mxu0 }
 0x860   : > { %v4678_v33 = vadd.f32 %v4677_v57, %v4676_v55  ;;  %v4679_v34 = vpop.f32.mrb[70].mxu1  ;;  %v4700_v38 = vadd.f32 %v4699_v63, %v4698_v56  ;;  %v4701_v49 = vpop.f32.mrb[74].mxu0  ;;  %v5295_v55 = vld [vmem:[%s6753_s5 + $0x78] sm:$0xff] (!%p4280_p2)  }
 0x861   : > { %v4680_v40 = vpop.f32.mrb[71].mxu1  ;;  %v4702_v45 = vpop.f32.mrb[75].mxu0  ;;  %v5296_v56 = vld [vmem:[%s6753_s5 + $0xf8] sm:$0xff] (!%p4280_p2)   ;;  %v3576_v34 = vld [vmem:[%s6752_s4] sm:$0xf] (!%p4280_p2) }
 0x862   : > { %v3268_v2 = vadd.f32 %v6280_v11, %v4678_v33  ;;  %v5297_v57 = vld [vmem:[%s6753_s5 + $0x38] sm:$0xff] (!%p4280_p2)   ;;  %v3594_v40 = vsub.s32 (!%p4280_p2), 3, %v5850_v1  ;;  %v3582_v45 = vsub.s32 (!%p4280_p2), 0, %v5850_v1 }
 0x863   : > { %v5298_v63 = vld [vmem:[%s6753_s5 + $0xb8] sm:$0xff] (!%p4280_p2)  }
 0x864   : > { %v3308_v4 = vadd.f32 %v4700_v38, %v3268_v2  ;;  %v3586_v38 = vsub.s32 (!%p4280_p2), 1, %v5850_v1  ;;  %v3590_v2 = vsub.s32 (!%p4280_p2), 2, %v5850_v1  ;;  %v3668_v1 = vld [vmem:[%s6754_s6] sm:$0x1] (!%p4280_p2) }
 0x86e   : > { %v3347_v3 = vpop.f32.mrb[72].mxu1 }
 0x86f   : > { %v3348_v60 = vadd.f32 %v3347_v3, %v3308_v4  ;;  %v4847_v5 = vpop.f32.mrb[73].mxu1 }
 0x870   : > { %v3350_v6 = vpop.f32.mrb[74].mxu1 }
 0x871   : > { %v3353_v8 = vmax.f32 %v3348_v60, 0.0  ;;  %v4848_v9 = vpop.f32.mrb[75].mxu1 }
 0x873   : > { %v3354_v7 = vpack.c.bf16 %v3353_v8, %v3353_v8 }
 0x875   : > { %4278 = vmatmul.mubr.msk.bf16.vlgmr.msra.gmra.mrb[76].mxu0 %vm647_vm2, %v3354_v7  ;;  %4279 = vmatmul.mubr.msk.bf16.vlgmr.msra.gmra.mrb[76].mxu1 %vm647_vm2, %v3354_v7 }
 0x876   : > { %4732 = vmatpush3.bf16.msra.mxu1 (!%p4280_p2), %v5270_v37 }
 0x877   : > { %4733 = vmatprep.subr.bf16.mxu1 (!%p4280_p2), %v5272_v52 }
 0x87a   : > { %4734 = vmatpush3.bf16.msra.mxu1 (!%p4280_p2), %v5274_v16 }
 0x87b   : > { %4735 = vmatprep.subr.bf16.mxu1 (!%p4280_p2), %v5276_v18 }
 0x87e   : > { %4736 = vmatpush3.bf16.msra.mxu1 (!%p4280_p2), %v5278_v20 }
 0x87f   : > { %4737 = vmatprep.subr.bf16.mxu1 (!%p4280_p2), %v5280_v22 }
 0x882   : > { %4738 = vmatpush3.bf16.msra.mxu1 (!%p4280_p2), %v5282_v24 }
 0x883   : > { %4739 = vmatprep.subr.bf16.mxu1 (!%p4280_p2), %v5284_v28 }
 0x886   : > { %4740 = vmatpush3.bf16.msra.mxu1 (!%p4280_p2), %v5286_v30 }
 0x887   : > { %4741 = vmatprep.subr.bf16.mxu1 (!%p4280_p2), %v5288_v32 }
 0x88a   : > { %4742 = vmatpush3.bf16.msra.mxu1 (!%p4280_p2), %v5290_v41 }
 0x88b   : > { %4743 = vmatprep.subr.bf16.mxu1 (!%p4280_p2), %v5292_v43 }
 0x948   : > { %v3488_v10 = vpop.f32.mrb[76].mxu0  ;;  %v3529_v12 = vpop.f32.mrb[76].mxu1 }
 0x949   : > { %v3490_v0 = vpop.f32.mrb[77].mxu0  ;;  %v3531_v13 = vpop.f32.mrb[77].mxu1 }
 0x94a   : > { %v3540_v14 = vcombine.low %v3488_v10, %v3490_v0  ;;  %v3541_v44 = vcombine.low %v3529_v12, %v3531_v13  ;;  %v3492_v15 = vpop.f32.mrb[78].mxu0  ;;  %v3533_v11 = vpop.f32.mrb[78].mxu1 }
 0x94b   : > { %v3493_v50 = vpop.f32.mrb[79].mxu0  ;;  %v3534_v58 = vpop.f32.mrb[79].mxu1 }
 0x94c   : > { %v3548_v53 = vrot.slane %v3540_v14, %v5853_v35  ;;  %v3555_v59 = vrot.slane %v3541_v44, %v5853_v35 }
 0x94e   : > { %v3556_v39 = vcombine.low %v3548_v53, %v3555_v59  ;;  %3574 = sbr.rel (%p4280_p2) target bundleno = 2636 (0xa4c), region = 56 }
 0x950   : > { %v3563_v48 = vrot.slane %v3556_v39, %v5853_v35  ;;  %v5269_v35 = vld [vmem:[%s6753_s5] sm:$0xff] (!%p4280_p2)  }
 0x951   : > { %4710 = vmatpush3.bf16.msra.mxu0 (!%p4280_p2), %v5269_v35 }
 0x952   : > { %v3565_v46 = vadd.f32 %v3563_v48, %v3189_v54  ;;  %4711 = vmatprep.subr.bf16.mxu0 (!%p4280_p2), %v5271_v62  ;;  %v5294_v54 = vld [vmem:[%s6753_s5 + $0xb0] sm:$0xff] (!%p4280_p2)  }
 0x953   : > { %4744 = vmatpush3.bf16.msra.mxu1 (!%p4280_p2), %v5294_v54 }
 0x954   : > { %3570 = vst.msk [vmem:[#allocation2] sm:$0xf] %vm3568_vm3, %v3565_v46  ;;  %4745 = vmatprep.subr.bf16.mxu1 (!%p4280_p2), %v5296_v56 }
 0x955   : > { %4712 = vmatpush3.bf16.msra.mxu0 %v5273_v51 }
 0x956   : > { %4713 = vmatprep.subr.bf16.mxu0 %v5275_v17 }
 0x957   : > { %4746 = vmatpush3.bf16.msra.mxu1 %v5298_v63 }
 0x959   : > { %4714 = vmatpush3.bf16.msra.mxu0 %v5277_v19 }
 0x95a   : > { %4715 = vmatprep.subr.bf16.mxu0 %v5279_v21 }
 0x95b   : > { %v3575_v33 = vld [vmem:[#allocation2] sm:$0xf] }
 0x95c   : > { %v3577_v49 = vadd.f32 %v3576_v34, %v3575_v33 }
 0x95d   : > { %4716 = vmatpush3.bf16.msra.mxu0 %v5281_v23 }
 0x95e   : > { %4717 = vmatprep.subr.bf16.mxu0 %v5283_v25  ;;  %v3578_v4 = vmax.f32 %v3577_v49, 0.0 }
 0x960   : > { %v3587_v3 = vrot.slane %v3578_v4, %v3586_v38  ;;  %v3595_v60 = vrot.slane %v3578_v4, %v3594_v40  ;;  %v3583_v5 = vrot.slane %v3578_v4, %v3582_v45  ;;  %v3591_v6 = vrot.slane %v3578_v4, %v3590_v2 }
 0x961   : > { %4718 = vmatpush3.bf16.msra.mxu0 %v5285_v29 }
 0x962   : > { %4719 = vmatprep.subr.bf16.mxu0 %v5287_v31  ;;  %v3601_v8 = vpack.c.bf16 %v3587_v3, %v3587_v3  ;;  %v3603_v9 = vpack.c.bf16 %v3595_v60, %v3595_v60  ;;  %v3600_v7 = vpack.c.bf16 %v3583_v5, %v3583_v5  ;;  %v3602_v10 = vpack.c.bf16 %v3591_v6, %v3591_v6 }
 0x964   : > { %3893 = vmatprep.mubr.bf16.mxu0 %v3601_v8  ;;  %3933 = vmatprep.mubr.bf16.mxu1 %v3603_v9 }
 0x965   : > { %4720 = vmatpush3.bf16.msra.mxu0 %v5289_v36  ;;  %3934 = vmatmul.mubr.bf16.vlgmr.msra.gmra.mrb[0].mxu1 %v3602_v10 }
 0x966   : > { %4721 = vmatprep.subr.bf16.mxu0 %v5291_v42 }
 0x969   : > { %4722 = vmatpush3.bf16.msra.mxu0 %v5293_v61 }
 0x96a   : > { %4723 = vmatprep.subr.bf16.mxu0 %v5295_v55 }
 0x96d   : > { %4724 = vmatpush3.bf16.msra.mxu0 %v5297_v57 }
 0x970   : > { %3894 = vmatmul.mubr.bf16.vlgmr.msra.gmra.mrb[0].mxu0 %v3600_v7 }
 0xa38   : > { %v4747_v0 = vpop.f32.mrb[0].mxu1 }
 0xa39   : > { %v4748_v14 = vpop.f32.mrb[1].mxu1 }
 0xa3a   : > { %v4749_v15 = vadd.f32 %v4748_v14, %v4747_v0  ;;  %v4750_v50 = vpop.f32.mrb[2].mxu1 }
 0xa3b   : > { %v4751_v53 = vpop.f32.mrb[3].mxu1 }
 0xa43   : > { %v4725_v12 = vpop.f32.mrb[0].mxu0 }
 0xa44   : > { %v4726_v13 = vpop.f32.mrb[1].mxu0 }
 0xa45   : > { %v4727_v44 = vadd.f32 %v4726_v13, %v4725_v12  ;;  %v4728_v11 = vpop.f32.mrb[2].mxu0 }
 0xa46   : > { %v4729_v58 = vpop.f32.mrb[3].mxu0 }
 0xa47   : > { %v3896_v59 = vadd.f32 %v4727_v44, %v3668_v1 }
 0xa49   : > { %v3936_v39 = vadd.f32 %v4749_v15, %v3896_v59 }
 0xa4b   : > { %3941 = vst [vmem:[%s5528_s26] sm:$0x1] %v3936_v39 }
 0xa4c PF: > { %s4313_s16 = sshll.u32 %s5381_s28, 4  ;;  %s3955_s27 = sshll.u32 %s5528_s26, 4  ;;  %s3956_s27 = int_to_ptr.vmem [resolvable:$true] %s3955_s27 }
 0xa4d   : > { %s6698_s21 = scalar_lea.hbm %s6755_s7, %s4313_s16  ;;  %s6772_s29 = sand.u32 1, %s5369_s25  }
 0xa4e   : > { %s3943_s30 = scalar_lea.sflag [#allocation4], %s6772_s29  ;;  %s5299_s11 = scalar_lea.vmem %s3956_s27, 16 }
 0xa4f   : > { %p5300_p4 = scmp.ne.s32.totalorder %s3956_s27, %s5299_s11  ;;  %s5400_s17 = smov [#allocation3]  }
 0xa50   : > { %s5303_s22 = sshll.u32 %s5400_s17, 4  ;;  %s5304_s22 = int_to_ptr.vmem [resolvable:$false] %s5303_s22 }
 0xa51   : > { %p5301_p5 = pnand %p5300_p4, %p5490_p3  ;;  %s5305_s23 = scalar_lea.vmem %s5304_s22, 32 }
 0xa52   : > { %p5306_p7 = scmp.lt.s32.totalorder %s3956_s27, %s5304_s22  ;;  %p5307_p8 = scmp.lt.s32.totalorder %s5305_s23, %s5299_s11 }
 0xa53   : > { %p5302_p6 = pneg %p5301_p5 }
 0xa54   : > { %p5308_p10 = por %p5307_p8, %p5306_p7 }
 0xa56   : > { %p5309_p11 = pnand %p5308_p10, %p5302_p6 }
 0xa58   : > { %5312 = shalt.err (!%p5309_p11)
}
 0xa59   : > { %s5313_s26 = scalar_lea.hbm %s6698_s21, 16  ;;  %s5317_s12 = scalar_lea.hbm %s6755_s7, 32 }
 0xa5a   : > { %p5314_p12 = scmp.ne.s32.totalorder %s6698_s21, %s5313_s26  ;;  %p5318_p1 = scmp.lt.u32.totalorder %s6698_s21, %s6755_s7 }
 0xa5b   : > { %p5319_p2 = scmp.lt.u32.totalorder %s5317_s12, %s5313_s26  ;;  %p5321_p5 = scmp.lt.u32.totalorder %s5313_s26, %s6698_s21 }
 0xa5c   : > { %p5315_p13 = pnand %p5314_p12, %p5490_p3 }
 0xa5d   : > { %p5320_p4 = por %p5319_p2, %p5318_p1 }
 0xa5e   : > { %p5316_p0 = pneg %p5315_p13 }
 0xa5f   : > { %p5322_p6 = por %p5321_p5, %p5320_p4 }
 0xa61   : > { %p5323_p7 = pnand %p5322_p6, %p5316_p0 }
 0xa63   : > { %5326 = shalt.err (!%p5323_p7)
}
 0xa64   : > { %4851 = dma.vmem_to_hbm [thread:$0]  (%p5490_p3), %s3956_s27, 16, %s6698_s21, %s3943_s30  }
 0xa65 PF: > { %p4857_p8 = scmp.ge.s32.totalorder %s5393_s8, 2  ;;  %s3967_s15 = sand.u32 1, %s5365_s24  }
 0xa66   : > { %s3968_s16 = scalar_lea.sflag [#allocation4], %s3967_s15 }
 0xa67   : > { %p4854_p10 = pnand %p4857_p8, %p5500_p9 }
 0xa69   : > { %5360 = dma.done.wait (!%p4854_p10), %s3968_s16, 16  }
 0xa6a   : > { %5362 = vsyncadd (!%p4854_p10), %s3968_s16, 4294967280  ;;  %s20_s8 = sadd.s32 1, %s5393_s8   ;;  %s6773_s19 = sld [smem:[#allocation6_spill]] }
 0xa6b   : > { %p17_p11 = scmp.ge.s32.totalorder %s20_s8, 16   ;;  %s6774_s26 = sld [smem:[#allocation11_spill]] }
 0xa6c   : > { %s6775_s27 = sld [smem:[#allocation7_spill]]  ;;  %s6776_s28 = sld [smem:[#allocation8_spill]] }
 0xa6d   : > { %s6777_s29 = sld [smem:[#allocation9_spill]]  ;;  %s6778_s30 = sld [smem:[#allocation10_spill]] }
 0xa6e   : > { %s6779_s24 = smov %s5369_s25  ;;  %19 = sbr.rel (!%p17_p11) target bundleno = 5 (0x5), region = 94 }
 0xa70   : > { %s6780_s25 = smov %s6773_s19 }
 0xa75   :  { %3972 = vsyncpa [#allocation4], 1 }
 0xa76   :  { %3974 = vsyncpa [#allocation4 + $0x1], 1 }

</bundles_post_ra>
